<compile_context>
chip_gen: v7x
topology: tpu7x:2x2x1
jax: 0.10.0
libtpu: 0.0.40
codegen_flags: <defaults>
</compile_context>

<pallas_src>
import functools

import jax
import jax.numpy as jnp
from jax.experimental import pallas as pl
from jax.experimental.pallas import tpu as pltpu


# ------------------------------- tiling helper --------------------------------

def _pick_tile(full, want, quantum):
    """Largest legal tile <= want (multiple of `quantum`), else the full dim."""
    if full <= want:
        return full
    t = (want // quantum) * quantum
    return t if t >= quantum else full


# ------------------------- Pallas: dense linear layers ------------------------

def _linear_kernel(x_ref, w_ref, b_ref, o_ref):
    y = jnp.dot(x_ref[...], w_ref[...], preferred_element_type=jnp.float32)
    o_ref[...] = (y + b_ref[...].astype(jnp.float32)).astype(o_ref.dtype)


def linear_pallas(x, w, b, block_m=256, block_n=512):
    """Standard layout: x (M, Cin) @ w (Cin, Cout) + b -> (M, Cout)."""
    M, Cin = x.shape
    Cout = w.shape[1]
    bm = _pick_tile(M, block_m, 8)          # >=2 M-steps at these sizes (v7x)
    bn = _pick_tile(Cout, block_n, 128)     # Cout tile (full here; tiled when large)
    grid = (pl.cdiv(M, bm), pl.cdiv(Cout, bn))
    cost = pl.CostEstimate(
        flops=int(2 * M * Cin * Cout), transcendentals=0,
        bytes_accessed=int(x.dtype.itemsize * (M * Cin + Cin * Cout + Cout + M * Cout)))
    return pl.pallas_call(
        _linear_kernel,
        out_shape=jax.ShapeDtypeStruct((M, Cout), x.dtype),
        grid_spec=pltpu.PrefetchScalarGridSpec(
            num_scalar_prefetch=0, grid=grid,
            in_specs=[pl.BlockSpec((bm, Cin), lambda i, j: (i, 0)),
                      pl.BlockSpec((Cin, bn), lambda i, j: (0, j)),
                      pl.BlockSpec((1, bn), lambda i, j: (0, j))],
            out_specs=pl.BlockSpec((bm, bn), lambda i, j: (i, j))),
        compiler_params=pltpu.CompilerParams(
            dimension_semantics=("parallel", "parallel"),
            vmem_limit_bytes=32 * 1024 * 1024),
        cost_estimate=cost,
    )(x, w, b.reshape(1, Cout))


def _linear_t_kernel(x_ref, w_ref, b_ref, o_ref):
    # (Cout_tile, M_tile) = (x_tile @ w_tile)^T, contraction on Cin; MXU, f32 acc.
    y = jax.lax.dot_general(w_ref[...], x_ref[...], (((0,), (1,)), ((), ())),
                            preferred_element_type=jnp.float32)
    o_ref[...] = (y + b_ref[...].astype(jnp.float32)).astype(o_ref.dtype)


def linear_transposed_pallas(x, w, b, block_m=256, block_n=512):
    """x (M, Cin) @ w (Cin, Cout) + b returned TRANSPOSED as (Cout, M).

    Output lane axis is M (large) -> unmasked lane-dense stores, and the result
    is already channels-first for the attention kernel.
    """
    M, Cin = x.shape
    Cout = w.shape[1]
    bm = _pick_tile(M, block_m, 128)        # lane dim of output
    bn = _pick_tile(Cout, block_n, 128)     # sublane dim of output / lane dim of w
    grid = (pl.cdiv(M, bm), pl.cdiv(Cout, bn))
    cost = pl.CostEstimate(
        flops=int(2 * M * Cin * Cout), transcendentals=0,
        bytes_accessed=int(x.dtype.itemsize * (M * Cin + Cin * Cout + Cout + M * Cout)))
    return pl.pallas_call(
        _linear_t_kernel,
        out_shape=jax.ShapeDtypeStruct((Cout, M), x.dtype),
        grid_spec=pltpu.PrefetchScalarGridSpec(
            num_scalar_prefetch=0, grid=grid,
            in_specs=[pl.BlockSpec((bm, Cin), lambda i, j: (i, 0)),
                      pl.BlockSpec((Cin, bn), lambda i, j: (0, j)),
                      pl.BlockSpec((bn, 1), lambda i, j: (j, 0))],
            out_specs=pl.BlockSpec((bn, bm), lambda i, j: (j, i))),
        compiler_params=pltpu.CompilerParams(
            dimension_semantics=("parallel", "parallel"),
            vmem_limit_bytes=32 * 1024 * 1024),
        cost_estimate=cost,
    )(x, w, b.reshape(Cout, 1))


# --------------------------- Pallas: neighborhood attn ------------------------

def _na2d_attn_kernel(qkv_ref, qb_ref, kc_ref, o_ref, *,
                      kernel_sizes, heads, hd, scale, hw):
    # Per-branch kernel size via a scalar where-chain on the branch grid index
    # (no SMEM / scalar-prefetch input needed).
    g = pl.program_id(0)
    ks = jnp.int32(kernel_sizes[0])
    for i in range(1, len(kernel_sizes)):
        ks = jnp.where(g == i, jnp.int32(kernel_sizes[i]), ks)

    # Neighborhood mask as an additive bias, built ONCE per (branch, batch) step
    # and shared by every head.  Query-side clamped window starts arrive packed
    # ((start_row << 16) | start_col) with queries on sublanes; key coordinates
    # arrive packed the same way with keys on lanes.
    qb = qb_ref[0]                                   # (HW, 1) int32
    sr = qb >> 16
    sc = qb & 0xFFFF
    kco = kc_ref[...]                                # (1, HW) int32
    kr = kco >> 16
    kc = kco & 0xFFFF
    in_win = (kr >= sr) & (kr < sr + ks) & (kc >= sc) & (kc < sc + ks)  # (HW, HW)
    neg = jnp.where(in_win, 0.0, -1e30)              # f32 additive bias

    dt = qkv_ref.dtype
    ones_row = jnp.ones((1, hw), dtype=dt)           # for the softmax denominator

    for h in range(heads):                           # heads per branch is tiny (1 here)
        lo, hi = h * hd, (h + 1) * hd                # sublane-aligned slices (hd = 8)
        q = qkv_ref[0, 0, 0, lo:hi, :] * scale       # (hd, HW)  scale folded into q
        k = qkv_ref[0, 1, 0, lo:hi, :]               # (hd, HW)
        v = qkv_ref[0, 2, 0, lo:hi, :]               # (hd, HW)

        # Logits: queries on sublanes, keys on lanes.  MXU, f32 accumulation.
        logits = jax.lax.dot_general(q, k, (((0,), (0,)), ((), ())),
                                     preferred_element_type=jnp.float32)  # (HW, HW)
        logits = logits + neg
        m = jnp.max(logits, axis=-1, keepdims=True)
        p = jnp.exp(logits - m)                      # un-normalized probabilities
        pv = p.astype(dt)                            # bf16 operands when inputs are bf16

        # Deferred normalization: PV product and row-sums both leave the MXU
        # already transposed to (*, HW) -> lane-dense output stores.
        out_t = jax.lax.dot_general(v, pv, (((1,), (1,)), ((), ())),
                                    preferred_element_type=jnp.float32)   # (hd, HW)
        den_t = jax.lax.dot_general(ones_row, pv, (((1,), (1,)), ((), ())),
                                    preferred_element_type=jnp.float32)   # (1, HW)
        o_ref[0, 0, lo:hi, :] = (out_t * pl.reciprocal(den_t)).astype(o_ref.dtype)


def na2d_attention_pallas(qkv5, qbounds, kcoords, kernel_sizes, heads, hd, scale):
    """Grouped neighborhood attention.

    qkv5:     (G, 3, B, C3, HW)  channels on sublanes, HW on lanes
    qbounds:  (G, HW, 1) int32   packed (start_row << 16 | start_col) per query
    kcoords:  (1, HW)    int32   packed (row << 16 | col) per key position
    returns   (G, B, C3, HW)
    """
    G, three, B, C3, HW = qkv5.shape
    assert three == 3 and heads * hd == C3 and len(kernel_sizes) == G
    itemsize = qkv5.dtype.itemsize
    cost = pl.CostEstimate(
        flops=int(G * B * heads * (4 * HW * HW * hd + 8 * HW * HW)),
        transcendentals=int(G * B * heads * HW * HW),
        bytes_accessed=int(itemsize * 4 * G * B * C3 * HW + 4 * (G + 1) * HW))
    kernel = functools.partial(_na2d_attn_kernel, kernel_sizes=tuple(kernel_sizes),
                               heads=heads, hd=hd, scale=scale, hw=HW)
    return pl.pallas_call(
        kernel,
        out_shape=jax.ShapeDtypeStruct((G, B, C3, HW), qkv5.dtype),
        grid_spec=pltpu.PrefetchScalarGridSpec(
            num_scalar_prefetch=0,
            grid=(G, B),   # full image per step; 3x2=6 parallel steps (3/3 on v7x)
            in_specs=[pl.BlockSpec((1, 3, 1, C3, HW), lambda g, b: (g, 0, b, 0, 0)),
                      pl.BlockSpec((1, HW, 1), lambda g, b: (g, 0, 0)),
                      pl.BlockSpec((1, HW), lambda g, b: (0, 0))],
            out_specs=pl.BlockSpec((1, 1, C3, HW), lambda g, b: (g, b, 0, 0))),
        compiler_params=pltpu.CompilerParams(
            dimension_semantics=("parallel", "parallel"),
            vmem_limit_bytes=32 * 1024 * 1024),
        cost_estimate=cost,
    )(qkv5, qbounds, kcoords)


# ------------------------------ host-side helpers ------------------------------

def _branch_channels(dim, k):
    channels = []
    for i in range(k):
        if i == 0:
            channels.append(dim * 3 - dim * 3 // k * (k - 1))
        else:
            channels.append(dim * 3 // k)
    return channels


def _packed_window_starts(H, W, ks, dilation):
    """Clamped NATTEN window start per query, packed (start_row<<16 | start_col)."""
    assert dilation == 1  # TODO(synk): dilation > 1 window logic not implemented
    pos = jnp.arange(H * W, dtype=jnp.int32)
    row = pos // W
    col = pos - row * W
    sr = jnp.clip(row - ks // 2, 0, H - ks)
    sc = jnp.clip(col - ks // 2, 0, W - ks)
    return ((sr << 16) | sc).astype(jnp.int32).reshape(H * W, 1)


def _packed_key_coords(H, W):
    pos = jnp.arange(H * W, dtype=jnp.int32)
    row = pos // W
    col = pos - row * W
    return ((row << 16) | col).astype(jnp.int32).reshape(1, H * W)


def _jax_linear(x, w, b):
    return x @ w + b


def _neighborhood_indices(length, ks, dilation=1):
    assert dilation == 1
    i = jnp.arange(length)
    start = jnp.clip(i - ks // 2, 0, length - ks)
    return start[:, None] + jnp.arange(ks)[None, :]


def _jax_na2d_attention(q, k, v, H, W, ks, dilation, heads, hd, scale):
    """Unfold-based pure-JAX reference (independent formulation, for checking)."""
    B = q.shape[0]

    def to5(t):
        return t.reshape(B, H, W, heads, hd).transpose(0, 3, 1, 2, 4)

    q5 = to5(q) * scale
    k5, v5 = to5(k), to5(v)
    idx_h = _neighborhood_indices(H, ks, dilation)
    idx_w = _neighborhood_indices(W, ks, dilation)
    k_nb = k5[:, :, idx_h, :, :][:, :, :, :, idx_w, :]
    v_nb = v5[:, :, idx_h, :, :][:, :, :, :, idx_w, :]
    k_nb = jnp.transpose(k_nb, (0, 1, 2, 4, 3, 5, 6)).reshape(B, heads, H, W, ks * ks, hd)
    v_nb = jnp.transpose(v_nb, (0, 1, 2, 4, 3, 5, 6)).reshape(B, heads, H, W, ks * ks, hd)
    logits = jnp.einsum("bhxyd,bhxykd->bhxyk", q5, k_nb)
    attn = jax.nn.softmax(logits, axis=-1)
    y = jnp.einsum("bhxyk,bhxykd->bhxyd", attn, v_nb)
    return y.transpose(0, 2, 3, 1, 4).reshape(B, H * W, heads * hd)


# --------------------------------- forward ------------------------------------

def neighborhood_attention_2d(x, params, num_head, kernel_sizes=(7, 9, 11),
                              dilations=(1, 1, 1), use_pallas=True):
    """Forward pass matching NeighborhoodAttention2D (eval mode, no rpb)."""
    B, H, W, dim = x.shape
    kb = len(kernel_sizes)
    head_dim = dim // num_head
    scale = head_dim ** (-0.5)
    channels = _branch_channels(dim, kb)
    HW = H * W
    M = B * HW

    if not use_pallas:  # pure-JAX reference path
        qkv = _jax_linear(x.reshape(M, dim), params["qkv_w"], params["qkv_b"])
        qkv = qkv.reshape(B, HW, dim * 3)
        outs, off = [], 0
        for i, ks in enumerate(kernel_sizes):
            C = channels[i]
            C3 = C // 3
            heads = C3 // head_dim
            slab = qkv[:, :, off:off + C]
            off += C
            q, k, v = slab[..., :C3], slab[..., C3:2 * C3], slab[..., 2 * C3:]
            outs.append(_jax_na2d_attention(q, k, v, H, W, ks, dilations[i],
                                            heads, head_dim, scale))
        y = jnp.concatenate(outs, axis=-1)
        out = _jax_linear(y.reshape(M, dim), params["proj_w"], params["proj_b"])
        return out.reshape(B, H, W, dim)

    # QKV projection, produced channels-first (3*dim, M): lane-dense stores and
    # already in the channels-on-sublane layout the attention kernel expects.
    qkv_t = linear_transposed_pallas(x.reshape(M, dim), params["qkv_w"], params["qkv_b"])

    kcoords = _packed_key_coords(H, W)
    if all(c == channels[0] for c in channels):
        # All branches share the channel width -> one fused pallas_call with a
        # leading 'parallel' branch axis.
        C = channels[0]
        C3 = C // 3
        heads = C3 // head_dim
        qkv5 = qkv_t.reshape(kb, 3, C3, B, HW).transpose(0, 1, 3, 2, 4)  # tiny relayout
        qbounds = jnp.stack([_packed_window_starts(H, W, ks, d)
                             for ks, d in zip(kernel_sizes, dilations)])
        y = na2d_attention_pallas(qkv5, qbounds, kcoords, kernel_sizes,
                                  heads, head_dim, scale)                # (kb,B,C3,HW)
        y = y.transpose(1, 3, 0, 2).reshape(M, dim)                      # concat branches
    else:
        # Unequal per-branch channel widths: one call per branch (G = 1).
        outs, off = [], 0
        for i, ks in enumerate(kernel_sizes):
            C = channels[i]
            C3 = C // 3
            heads = C3 // head_dim
            slab = qkv_t[off:off + C, :]
            off += C
            qkv5 = slab.reshape(1, 3, C3, B, HW).transpose(0, 1, 3, 2, 4)
            qbounds = _packed_window_starts(H, W, ks, dilations[i])[None]
            yi = na2d_attention_pallas(qkv5, qbounds, kcoords, (ks,),
                                       heads, head_dim, scale)
            outs.append(yi.transpose(1, 3, 0, 2).reshape(M, C3))
        y = jnp.concatenate(outs, axis=-1)

    out = linear_pallas(y, params["proj_w"], params["proj_b"])
    return out.reshape(B, H, W, dim)


# ------------------------------------ main -------------------------------------

if __name__ == "__main__":
    # Module defaults: k=3 branches -> num_head divisible by 3.
    num_head = 3
    head_dim = 8
    dim = num_head * head_dim              # 24
    kernel_sizes = (7, 9, 11)
    dilations = (1, 1, 1)
    B, H, W = 2, 16, 16                    # spatial >= max(kernel_sizes)

    key = jax.random.PRNGKey(0)
    kx, kw1, kb1, kw2, kb2 = jax.random.split(key, 5)
    x = jax.random.normal(kx, (B, H, W, dim), jnp.float32)

    params = {
        # nn.Linear(dim, 3*dim, bias=True)  (stored as (in, out))
        "qkv_w": jax.random.normal(kw1, (dim, dim * 3), jnp.float32) * 0.02,
        "qkv_b": jax.random.normal(kb1, (dim * 3,), jnp.float32) * 0.02,
        # nn.Linear(dim, dim)
        "proj_w": jax.random.normal(kw2, (dim, dim), jnp.float32) * 0.02,
        "proj_b": jnp.zeros((dim,), jnp.float32),
    }

    fwd = jax.jit(functools.partial(
        neighborhood_attention_2d, num_head=num_head, kernel_sizes=kernel_sizes,
        dilations=dilations, use_pallas=True))
    out = jax.block_until_ready(fwd(x, params))
    assert out.shape == (B, H, W, dim) and out.dtype == jnp.float32

    # Correctness check against an unfold-based pure-JAX reference.
    ref = jax.block_until_ready(
        neighborhood_attention_2d(x, params, num_head, kernel_sizes, dilations,
                                  use_pallas=False))
    max_err = float(jnp.max(jnp.abs(out - ref)))
    assert jnp.allclose(out, ref, atol=2e-3, rtol=2e-3), f"mismatch vs reference: {max_err}"

    print("KERNEL_OK")
</pallas_src>

<mosaic_0001>
module attributes {stable_mosaic.version = 11 : i64} {
  func.func @_linear_t_kernel(%arg0: i32, %arg1: i32, %arg2: memref<256x24xf32, #tpu.memory_space<vmem>>, %arg3: memref<24x72xf32, #tpu.memory_space<vmem>>, %arg4: memref<72x1xf32, #tpu.memory_space<vmem>>, %arg5: memref<72x256xf32, #tpu.memory_space<vmem>>) attributes {dimension_semantics = [#tpu.dimension_semantics<parallel>, #tpu.dimension_semantics<parallel>], iteration_bounds = array<i64: 2, 1>, scalar_prefetch = 0 : i64, scratch_operands = 0 : i64, tpu.core_type = #tpu.core_type<tc>, window_params = [{transform_indices = @transform_0, window_bounds = array<i64: 256, 24>}, {transform_indices = @transform_1, window_bounds = array<i64: 24, 72>}, {transform_indices = @transform_2, window_bounds = array<i64: 72, 1>}, {transform_indices = @transform_3, window_bounds = array<i64: 72, 256>}]} {
    %c0 = arith.constant 0 : index
    %c0_0 = arith.constant 0 : index
    %0 = vector.load %arg3[%c0, %c0_0] : memref<24x72xf32, #tpu.memory_space<vmem>>, vector<24x72xf32>
    %c0_1 = arith.constant 0 : index
    %c0_2 = arith.constant 0 : index
    %1 = vector.load %arg2[%c0_1, %c0_2] : memref<256x24xf32, #tpu.memory_space<vmem>>, vector<256x24xf32>
    %cst = arith.constant dense<0.000000e+00> : vector<72x256xf32>
    %2 = tpu.matmul %0, %1, %cst {dimension_numbers = #tpu.dot_dimension_numbers<[0], [1], [1], [0], [0, 1, 1, 0], [], []>} : vector<24x72xf32>, vector<256x24xf32>, vector<72x256xf32> -> vector<72x256xf32>
    %c0_3 = arith.constant 0 : index
    %c0_4 = arith.constant 0 : index
    %3 = vector.load %arg4[%c0_3, %c0_4] : memref<72x1xf32, #tpu.memory_space<vmem>>, vector<72x1xf32>
    %4 = vector.broadcast %3 : vector<72x1xf32> to vector<72x256xf32>
    %5 = arith.addf %2, %4 : vector<72x256xf32>
    %c0_5 = arith.constant 0 : index
    %c0_6 = arith.constant 0 : index
    %6 = vector.load %arg5[%c0_5, %c0_6] : memref<72x256xf32, #tpu.memory_space<vmem>>, vector<72x256xf32>
    tpu.vector_store %arg5[%c0_5, %c0_6], %5 {strides = array<i32>} : memref<72x256xf32, #tpu.memory_space<vmem>>, vector<72x256xf32>,
    return
  }
  func.func @transform_0(%arg0: i32, %arg1: i32) -> (i32, i32) {
    %c0_i32 = arith.constant 0 : i32
    %c0_i32_0 = arith.constant 0 : i32
    return %arg0, %c0_i32 : i32, i32
  }
  func.func @transform_1(%arg0: i32, %arg1: i32) -> (i32, i32) {
    %c0_i32 = arith.constant 0 : i32
    %c0_i32_0 = arith.constant 0 : i32
    return %c0_i32, %arg1 : i32, i32
  }
  func.func @transform_2(%arg0: i32, %arg1: i32) -> (i32, i32) {
    %c0_i32 = arith.constant 0 : i32
    %c0_i32_0 = arith.constant 0 : i32
    return %arg1, %c0_i32 : i32, i32
  }
  func.func @transform_3(%arg0: i32, %arg1: i32) -> (i32, i32) {
    %c0_i32 = arith.constant 0 : i32
    return %arg1, %arg0 : i32, i32
  }
}

module attributes {stable_mosaic.version = 11 : i64} {
  func.func @_na2d_attn_kernel(%arg0: i32, %arg1: i32, %arg2: memref<1x3x1x8x256xf32, #tpu.memory_space<vmem>>, %arg3: memref<1x256x1xi32, #tpu.memory_space<vmem>>, %arg4: memref<1x256xi32, #tpu.memory_space<vmem>>, %arg5: memref<1x1x8x256xf32, #tpu.memory_space<vmem>>) attributes {dimension_semantics = [#tpu.dimension_semantics<parallel>, #tpu.dimension_semantics<parallel>], iteration_bounds = array<i64: 3, 2>, scalar_prefetch = 0 : i64, scratch_operands = 0 : i64, tpu.core_type = #tpu.core_type<tc>, window_params = [{transform_indices = @transform_0, window_bounds = array<i64: 1, 3, 1, 8, 256>}, {transform_indices = @transform_1, window_bounds = array<i64: 1, 256, 1>}, {pipeline_mode = #tpu.pipeline_mode<synchronous>, transform_indices = @transform_2, window_bounds = array<i64: 1, 256>}, {transform_indices = @transform_3, window_bounds = array<i64: 1, 1, 8, 256>}]} {
    %c1_i32 = arith.constant 1 : i32
    %0 = arith.cmpi eq, %arg0, %c1_i32 : i32
    %c9_i32 = arith.constant 9 : i32
    %c7_i32 = arith.constant 7 : i32
    %1 = arith.select %0, %c9_i32, %c7_i32 : i32
    %c2_i32 = arith.constant 2 : i32
    %2 = arith.cmpi eq, %arg0, %c2_i32 : i32
    %c11_i32 = arith.constant 11 : i32
    %3 = arith.select %2, %c11_i32, %1 : i32
    %c0 = arith.constant 0 : index
    %c0_0 = arith.constant 0 : index
    %c0_1 = arith.constant 0 : index
    %4 = vector.load %arg3[%c0, %c0_0, %c0_1] : memref<1x256x1xi32, #tpu.memory_space<vmem>>, vector<1x256x1xi32>
    %5 = vector.shape_cast %4 : vector<1x256x1xi32> to vector<256x1xi32>
    %c16_i32 = arith.constant 16 : i32
    %6 = vector.broadcast %c16_i32 : i32 to vector<256x1xi32>
    %7 = arith.shrsi %5, %6 : vector<256x1xi32>
    %c65535_i32 = arith.constant 65535 : i32
    %8 = vector.broadcast %c65535_i32 : i32 to vector<256x1xi32>
    %9 = arith.andi %5, %8 : vector<256x1xi32>
    %c0_2 = arith.constant 0 : index
    %c0_3 = arith.constant 0 : index
    %10 = vector.load %arg4[%c0_2, %c0_3] : memref<1x256xi32, #tpu.memory_space<vmem>>, vector<1x256xi32>
    %c16_i32_4 = arith.constant 16 : i32
    %11 = vector.broadcast %c16_i32_4 : i32 to vector<1x256xi32>
    %12 = arith.shrsi %10, %11 : vector<1x256xi32>
    %c65535_i32_5 = arith.constant 65535 : i32
    %13 = vector.broadcast %c65535_i32_5 : i32 to vector<1x256xi32>
    %14 = arith.andi %10, %13 : vector<1x256xi32>
    %15 = vector.broadcast %12 : vector<1x256xi32> to vector<256x256xi32>
    %16 = vector.broadcast %7 : vector<256x1xi32> to vector<256x256xi32>
    %17 = arith.cmpi sge, %15, %16 : vector<256x256xi32>
    %18 = vector.broadcast %3 : i32 to vector<256x1xi32>
    %19 = arith.addi %7, %18 : vector<256x1xi32>
    %20 = vector.broadcast %12 : vector<1x256xi32> to vector<256x256xi32>
    %21 = vector.broadcast %19 : vector<256x1xi32> to vector<256x256xi32>
    %22 = arith.cmpi slt, %20, %21 : vector<256x256xi32>
    %23 = arith.andi %17, %22 : vector<256x256xi1>
    %24 = vector.broadcast %14 : vector<1x256xi32> to vector<256x256xi32>
    %25 = vector.broadcast %9 : vector<256x1xi32> to vector<256x256xi32>
    %26 = arith.cmpi sge, %24, %25 : vector<256x256xi32>
    %27 = arith.andi %23, %26 : vector<256x256xi1>
    %28 = vector.broadcast %3 : i32 to vector<256x1xi32>
    %29 = arith.addi %9, %28 : vector<256x1xi32>
    %30 = vector.broadcast %14 : vector<1x256xi32> to vector<256x256xi32>
    %31 = vector.broadcast %29 : vector<256x1xi32> to vector<256x256xi32>
    %32 = arith.cmpi slt, %30, %31 : vector<256x256xi32>
    %33 = arith.andi %27, %32 : vector<256x256xi1>
    %cst = arith.constant 0.000000e+00 : f32
    %cst_6 = arith.constant -1.000000e+30 : f32
    %34 = vector.broadcast %cst : f32 to vector<256x256xf32>
    %35 = vector.broadcast %cst_6 : f32 to vector<256x256xf32>
    %36 = arith.select %33, %34, %35 : vector<256x256xi1>, vector<256x256xf32>
    %cst_7 = arith.constant 1.000000e+00 : f32
    %37 = vector.broadcast %cst_7 : f32 to vector<1x256xf32>
    %c0_8 = arith.constant 0 : index
    %c0_9 = arith.constant 0 : index
    %c0_10 = arith.constant 0 : index
    %c0_11 = arith.constant 0 : index
    %c0_12 = arith.constant 0 : index
    %38 = vector.load %arg2[%c0_8, %c0_9, %c0_10, %c0_11, %c0_12] : memref<1x3x1x8x256xf32, #tpu.memory_space<vmem>>, vector<1x1x1x8x256xf32>
    %39 = vector.shape_cast %38 : vector<1x1x1x8x256xf32> to vector<8x256xf32>
    %cst_13 = arith.constant 0.353553385 : f32
    %40 = vector.broadcast %cst_13 : f32 to vector<8x256xf32>
    %41 = arith.mulf %39, %40 : vector<8x256xf32>
    %c0_14 = arith.constant 0 : index
    %c1 = arith.constant 1 : index
    %c0_15 = arith.constant 0 : index
    %c0_16 = arith.constant 0 : index
    %c0_17 = arith.constant 0 : index
    %42 = vector.load %arg2[%c0_14, %c1, %c0_15, %c0_16, %c0_17] : memref<1x3x1x8x256xf32, #tpu.memory_space<vmem>>, vector<1x1x1x8x256xf32>
    %43 = vector.shape_cast %42 : vector<1x1x1x8x256xf32> to vector<8x256xf32>
    %c0_18 = arith.constant 0 : index
    %c2 = arith.constant 2 : index
    %c0_19 = arith.constant 0 : index
    %c0_20 = arith.constant 0 : index
    %c0_21 = arith.constant 0 : index
    %44 = vector.load %arg2[%c0_18, %c2, %c0_19, %c0_20, %c0_21] : memref<1x3x1x8x256xf32, #tpu.memory_space<vmem>>, vector<1x1x1x8x256xf32>
    %45 = vector.shape_cast %44 : vector<1x1x1x8x256xf32> to vector<8x256xf32>
    %cst_22 = arith.constant dense<0.000000e+00> : vector<256x256xf32>
    %46 = tpu.matmul %41, %43, %cst_22 {dimension_numbers = #tpu.dot_dimension_numbers<[0], [0], [1], [1], [0, 1, 1, 1], [], []>} : vector<8x256xf32>, vector<8x256xf32>, vector<256x256xf32> -> vector<256x256xf32>
    %47 = arith.addf %46, %36 : vector<256x256xf32>
    %cst_23 = arith.constant dense<0xFF800000> : vector<256xf32>
    %48 = vector.multi_reduction <maximumf>, %47, %cst_23 [1] : vector<256x256xf32> to vector<256xf32>
    %49 = vector.shape_cast %48 : vector<256xf32> to vector<256x1xf32>
    %50 = vector.broadcast %49 : vector<256x1xf32> to vector<256x256xf32>
    %51 = arith.subf %47, %50 : vector<256x256xf32>
    %52 = math.exp %51 : vector<256x256xf32>
    %cst_24 = arith.constant dense<0.000000e+00> : vector<8x256xf32>
    %53 = tpu.matmul %45, %52, %cst_24 {dimension_numbers = #tpu.dot_dimension_numbers<[1], [1], [0], [0], [0, 0, 1, 0], [], []>} : vector<8x256xf32>, vector<256x256xf32>, vector<8x256xf32> -> vector<8x256xf32>
    %cst_25 = arith.constant dense<0.000000e+00> : vector<1x256xf32>
    %54 = tpu.matmul %37, %52, %cst_25 {dimension_numbers = #tpu.dot_dimension_numbers<[1], [1], [0], [0], [0, 0, 1, 0], [], []>} : vector<1x256xf32>, vector<256x256xf32>, vector<1x256xf32> -> vector<1x256xf32>
    %55 = tpu.reciprocal %54 : vector<1x256xf32> -> vector<1x256xf32>
    %56 = vector.broadcast %55 : vector<1x256xf32> to vector<8x256xf32>
    %57 = arith.mulf %53, %56 : vector<8x256xf32>
    %c0_26 = arith.constant 0 : index
    %c0_27 = arith.constant 0 : index
    %c0_28 = arith.constant 0 : index
    %c0_29 = arith.constant 0 : index
    %58 = vector.load %arg5[%c0_26, %c0_27, %c0_28, %c0_29] : memref<1x1x8x256xf32, #tpu.memory_space<vmem>>, vector<1x1x8x256xf32>
    %59 = vector.shape_cast %58 : vector<1x1x8x256xf32> to vector<8x256xf32>
    %60 = vector.shape_cast %57 : vector<8x256xf32> to vector<1x1x8x256xf32>
    tpu.vector_store %arg5[%c0_26, %c0_27, %c0_28, %c0_29], %60 {strides = array<i32>} : memref<1x1x8x256xf32, #tpu.memory_space<vmem>>, vector<1x1x8x256xf32>,
    return
  }
  func.func @transform_0(%arg0: i32, %arg1: i32) -> (i32, i32, i32, i32, i32) {
    %c0_i32 = arith.constant 0 : i32
    %c0_i32_0 = arith.constant 0 : i32
    %c0_i32_1 = arith.constant 0 : i32
    %c0_i32_2 = arith.constant 0 : i32
    return %arg0, %c0_i32, %arg1, %c0_i32_0, %c0_i32_1 : i32, i32, i32, i32, i32
  }
  func.func @transform_1(%arg0: i32, %arg1: i32) -> (i32, i32, i32) {
    %c0_i32 = arith.constant 0 : i32
    %c0_i32_0 = arith.constant 0 : i32
    %c0_i32_1 = arith.constant 0 : i32
    return %arg0, %c0_i32, %c0_i32_0 : i32, i32, i32
  }
  func.func @transform_2(%arg0: i32, %arg1: i32) -> (i32, i32) {
    %c0_i32 = arith.constant 0 : i32
    %c0_i32_0 = arith.constant 0 : i32
    %c0_i32_1 = arith.constant 0 : i32
    return %c0_i32, %c0_i32_0 : i32, i32
  }
  func.func @transform_3(%arg0: i32, %arg1: i32) -> (i32, i32, i32, i32) {
    %c0_i32 = arith.constant 0 : i32
    %c0_i32_0 = arith.constant 0 : i32
    %c0_i32_1 = arith.constant 0 : i32
    return %arg0, %arg1, %c0_i32, %c0_i32_0 : i32, i32, i32, i32
  }
}

module attributes {stable_mosaic.version = 11 : i64} {
  func.func @_linear_kernel(%arg0: i32, %arg1: i32, %arg2: memref<256x24xf32, #tpu.memory_space<vmem>>, %arg3: memref<24x24xf32, #tpu.memory_space<vmem>>, %arg4: memref<1x24xf32, #tpu.memory_space<vmem>>, %arg5: memref<256x24xf32, #tpu.memory_space<vmem>>) attributes {dimension_semantics = [#tpu.dimension_semantics<parallel>, #tpu.dimension_semantics<parallel>], iteration_bounds = array<i64: 2, 1>, scalar_prefetch = 0 : i64, scratch_operands = 0 : i64, tpu.core_type = #tpu.core_type<tc>, window_params = [{transform_indices = @transform_0, window_bounds = array<i64: 256, 24>}, {transform_indices = @transform_1, window_bounds = array<i64: 24, 24>}, {transform_indices = @transform_2, window_bounds = array<i64: 1, 24>}, {transform_indices = @transform_3, window_bounds = array<i64: 256, 24>}]} {
    %c0 = arith.constant 0 : index
    %c0_0 = arith.constant 0 : index
    %0 = vector.load %arg2[%c0, %c0_0] : memref<256x24xf32, #tpu.memory_space<vmem>>, vector<256x24xf32>
    %c0_1 = arith.constant 0 : index
    %c0_2 = arith.constant 0 : index
    %1 = vector.load %arg3[%c0_1, %c0_2] : memref<24x24xf32, #tpu.memory_space<vmem>>, vector<24x24xf32>
    %cst = arith.constant dense<0.000000e+00> : vector<256x24xf32>
    %2 = tpu.matmul %0, %1, %cst {dimension_numbers = #tpu.dot_dimension_numbers<[1], [0], [0], [1], [0, 0, 1, 1], [], []>} : vector<256x24xf32>, vector<24x24xf32>, vector<256x24xf32> -> vector<256x24xf32>
    %c0_3 = arith.constant 0 : index
    %c0_4 = arith.constant 0 : index
    %3 = vector.load %arg4[%c0_3, %c0_4] : memref<1x24xf32, #tpu.memory_space<vmem>>, vector<1x24xf32>
    %4 = vector.broadcast %3 : vector<1x24xf32> to vector<256x24xf32>
    %5 = arith.addf %2, %4 : vector<256x24xf32>
    %c0_5 = arith.constant 0 : index
    %c0_6 = arith.constant 0 : index
    %6 = vector.load %arg5[%c0_5, %c0_6] : memref<256x24xf32, #tpu.memory_space<vmem>>, vector<256x24xf32>
    tpu.vector_store %arg5[%c0_5, %c0_6], %5 {strides = array<i32>} : memref<256x24xf32, #tpu.memory_space<vmem>>, vector<256x24xf32>,
    return
  }
  func.func @transform_0(%arg0: i32, %arg1: i32) -> (i32, i32) {
    %c0_i32 = arith.constant 0 : i32
    %c0_i32_0 = arith.constant 0 : i32
    return %arg0, %c0_i32 : i32, i32
  }
  func.func @transform_1(%arg0: i32, %arg1: i32) -> (i32, i32) {
    %c0_i32 = arith.constant 0 : i32
    %c0_i32_0 = arith.constant 0 : i32
    return %c0_i32, %arg1 : i32, i32
  }
  func.func @transform_2(%arg0: i32, %arg1: i32) -> (i32, i32) {
    %c0_i32 = arith.constant 0 : i32
    %c0_i32_0 = arith.constant 0 : i32
    return %c0_i32, %arg1 : i32, i32
  }
  func.func @transform_3(%arg0: i32, %arg1: i32) -> (i32, i32) {
    %c0_i32 = arith.constant 0 : i32
    return %arg0, %arg1 : i32, i32
  }
}

</mosaic_0001>

<bundles_post_ra>
// kernel: neighborhood_attention_2d.3
= control target key start
LH: loop header
LB: loop body
LE: loop exit
PB: predicated region body
PF: predicated region fallthrough
CT: control target
= control target key end

     0   :  { %8 = vsyncpa [#allocation3], 0  ;;  %s1480_s0 = inlined_call_operand.hbm [shape: f32[512,24], index: 0, kind: input, shape index: {}]   ;;  %s1481_s1 = inlined_call_operand.vmem [shape: f32[24,72], index: 1, kind: input, shape index: {}]   ;;  %s1482_s2 = inlined_call_operand.vmem [shape: f32[72,1], index: 2, kind: input, shape index: {}]   ;;  %s1483_s3 = inlined_call_operand.vmem [shape: f32[72,512], index: 3, kind: output, shape index: {}]  }
   0x1   :  { %10 = vsyncpa [#allocation3 + $0x1], 0  ;;  %s1130_s12 = smov 0   ;;  %s1132_s13 = smov 0  }
   0x2   :  { %s1134_s14 = smov 0   ;;  %s1136_s15 = smov 0  }
   0x3   :  { %s1138_s16 = smov 0   ;;  %s1140_s17 = smov 0  }
   0x4 LB: > { %s790_s18 = sadd.s32 4294967295, %s1104_s17   ;;  %s28_s19 = sadd.s32 1, %s1100_s16  ;;  %s1104_s17 = sphi %s1140_s17, %s16_s17   ;;  %s1100_s16 = sphi %s1138_s16, %s1495_s16   ;;  %s1096_s15 = sphi %s1136_s15, %s1494_s15   ;;  %s1092_s14 = sphi %s1134_s14, %s1493_s14   ;;  %s1088_s13 = sphi %s1132_s13, %s1492_s13   ;;  %s1084_s12 = sphi %s1130_s12, %s1491_s12  }
   0x5   : > { %p30_p0 = scmp.ge.s32.totalorder %s28_s19, 2  ;;  %s35_s20 = sadd.s32 1, %s1092_s14 }
   0x6   : > { %p42_p1 = scmp.ne.s32.totalorder %s1092_s14, %s1088_s13  ;;  %p43_p2 = scmp.eq.s32.totalorder %s1104_s17, 0 }
   0x7   : > { %s1497_s19 = smov (%p30_p0, %s28_s19), 0  ;;  %p48_p4 = scmp.ne.s32.totalorder %s1088_s13, %s1084_s12 }
   0x8   : > { %p1166_p3 = por %p43_p2, %p42_p1  ;;  %s32_s22 = ssub.s32 %s1100_s16, %s1497_s19 }
   0x9   : > { %p49_p5 = scmp.eq.s32.totalorder %s790_s18, 0  ;;  %p33_p6 = scmp.eq.s32.totalorder %s32_s22, 0 }
   0xa   : > { %p126_p7 = scmp.eq.s32.totalorder %s790_s18, 1  ;;  %p969_p10 = scmp.lt.s32.totalorder %s1104_s17, 2 }
   0xb   : > { %p1173_p8 = por %p49_p5, %p48_p4  ;;  %s168_s26 = sand.u32 1, %s1092_s14  }
   0xc   : > { %s1178_s24 = scalar_select %p33_p6, %s1092_s14, %s35_s20  }
   0xd   : > { %p1180_p9 = por %p126_p7, %p42_p1  ;;  %s846_s27 = sshll.u32 %s1100_s16, 12 }
   0xe   : > { %s796_s28 = sshll.u32 %s168_s26, 8  ;;  %s1190_s4 = scalar_lea.hbm %s1480_s0, %s846_s27 }
   0xf   : > { %s1486_s25 = scalar_select %p1180_p9, 1, 0 }
  0x10   : > { %s172_s5 = scalar_lea.vmem [#allocation2], %s796_s28  ;;  %p1194_p11 = pnand %p969_p10, %p1166_p3 }
  0x11   : > { %s179_s6 = sshll.u32 %s172_s5, 4  ;;  %s1200_s8 = scalar_lea.sflag [#allocation3], %s168_s26  ;;  %s1198_s6 = int_to_ptr.vmem [resolvable:$true] %s179_s6 }
  0x12   : > { %s1024_s9 = scalar_lea.hbm %s1190_s4, 4096  ;;  %p1026_p13 = pneg %p1194_p11 }
  0x13   : > { %p1025_p12 = scmp.ne.s32.totalorder %s1190_s4, %s1024_s9  ;;  %s1029_s12 = scalar_lea.hbm %s1480_s0, 8192 }
  0x14   : > { %p1030_p2 = scmp.lt.u32.totalorder %s1190_s4, %s1480_s0  ;;  %p1031_p3 = scmp.lt.u32.totalorder %s1029_s12, %s1024_s9 }
  0x15   : > { %p1027_p0 = pnand %p1026_p13, %p1025_p12  ;;  %p1033_p5 = scmp.lt.u32.totalorder %s1024_s9, %s1190_s4 }
  0x16   : > { %p1032_p4 = por %p1031_p3, %p1030_p2 }
  0x17   : > { %p1028_p1 = pneg %p1027_p0 }
  0x18   : > { %p1034_p6 = por %p1033_p5, %p1032_p4 }
  0x1a   : > { %p1035_p7 = pnand %p1034_p6, %p1028_p1 }
  0x1c   : > { %1038 = shalt.err (!%p1035_p7)
}
  0x1d   : > { %s1039_s21 = scalar_lea.vmem %s1198_s6, 4096  ;;  %s1106_s22 = smov [#allocation2]  }
  0x1e   : > { %p1040_p10 = scmp.ne.s32.totalorder %s1198_s6, %s1039_s21  ;;  %s1044_s26 = sshll.u32 %s1106_s22, 4  ;;  %s1045_s26 = int_to_ptr.vmem [resolvable:$false] %s1044_s26 }
  0x1f   : > { %s1046_s27 = scalar_lea.vmem %s1045_s26, 8192  ;;  %p1047_p9 = scmp.lt.s32.totalorder %s1198_s6, %s1045_s26 }
  0x20   : > { %p1042_p12 = pnand %p1040_p10, %p1026_p13  ;;  %p1048_p2 = scmp.lt.s32.totalorder %s1046_s27, %s1039_s21 }
  0x22   : > { %p1043_p0 = pneg %p1042_p12  ;;  %p1049_p3 = por %p1048_p2, %p1047_p9 }
  0x24   : > { %p1050_p4 = pnand %p1049_p3, %p1043_p0 }
  0x26   : > { %1053 = shalt.err (!%p1050_p4)
}
  0x27   : > { %s1107_s28 = smov 128   ;;  %s1108_s29 = smov 8  }
  0x28   : > { %968 = dma.hbm_to_vmem [thread:$0]  (!%p1194_p11), %s1190_s4, 4096, %s1198_s6, %s1200_s8, %s1107_s28, %s1107_s28, %s1108_s29  }
  0x29   : > { %p799_p13 = scmp.ge.s32.totalorder %s1104_s17, 1  ;;  %p187_p1 = scmp.lt.s32.totalorder %s1104_s17, 3 }
  0x2b   : > { %p188_p5 = pnand %p799_p13, %p187_p1 }
  0x2c   : > { %s1231_s30 = sand.u32 (!%p188_p5), 1, %s1088_s13  }
  0x2d   : > { %191 = sbr.rel (%p188_p5) target bundleno = 440 (0x1b8), region = 32  ;;  %s800_s5 = sshll.u32 (!%p188_p5), %s1231_s30, 8 }
  0x2e   : > { %s194_s9 = scalar_lea.sflag (!%p188_p5), [#allocation3], %s1231_s30  ;;  %s1235_s10 = scalar_lea.vmem (!%p188_p5), [#allocation2], %s800_s5 }
  0x34   : > { %1079 = dma.done.wait (%p1173_p8), %s194_s9, 4096  }
  0x35   : > { %1081 = vsyncadd (%p1173_p8), %s194_s9, 4294963200  ;;  %vm362_vm0 = vcmask 195584   ;;  %v241_v0 = vld [vmem:[%s1481_s1] sm:$0xff]  ;;  %v242_v1 = vld [vmem:[%s1481_s1 + $0x8] sm:$0xff]  ;;  %v1109_v38 = vmov 0   ;;  %s962_s12 = smul.u32 144, %s1231_s30 }
  0x36   : > { %vm1249_vm1 = vmpackc.low %vm362_vm0, %vm362_vm0  ;;  %330 = vxpose.xlu0.b32.start [1/3] (short) (narrow) %v241_v0, 72  ;;  %v260_v3 = vld [vmem:[%s1235_s10 + $0x80] sm:$0xff]  ;;  %v261_v4 = vld [vmem:[%s1235_s10 + $0x88] sm:$0xff]  ;;  %1022 = vset.pattern.permute.xlu1 %v1109_v38  ;;  %p1490_p8 = scmp.ne.s32.totalorder %s1486_s25, 0 }
  0x37   : > { %v244_v5 = vld [vmem:[%s1235_s10] sm:$0xff]  ;;  %v898_v6 = vpack.c.bf16 %v261_v4, %v260_v3  ;;  %v245_v7 = vld [vmem:[%s1235_s10 + $0x8] sm:$0xff]  ;;  %v262_v8 = vld [vmem:[%s1235_s10 + $0x90] sm:$0xff]  ;;  %s1398_s18 = scalar_lea.vmem [#allocation4], %s962_s12  ;;  %s847_s30 = sshll.u32 (%p1490_p8), %s1096_s15, 4 }
  0x38   : > { %v263_v9 = vld [vmem:[%s1235_s10 + $0x98] sm:$0xff]  ;;  %v901_v10 = vpack.c.bf16 %v245_v7, %v244_v5  ;;  %v243_v12 = vld [vmem:[%s1481_s1 + $0x10] sm:$0xff]  ;;  %v264_v15 = vld [vmem:[%s1235_s10 + $0xa0] sm:$0xff]  ;;  %s1427_s22 = scalar_lea.vmem (%p1490_p8), %s1483_s3, %s847_s30 }
  0x39   : > { %v904_v11 = vpack.c.bf16 %v263_v9, %v262_v8  ;;  %900 = vmatprep.subr.msk.bf16.mxu0 %vm1249_vm1, %v898_v6  ;;  %946 = vmatprep.subr.msk.bf16.mxu1 %vm1249_vm1, %v898_v6  ;;  %v246_v13 = vld [vmem:[%s1235_s10 + $0x10] sm:$0xff]  ;;  %v247_v14 = vld [vmem:[%s1235_s10 + $0x18] sm:$0xff]  ;;  %v265_v16 = vld [vmem:[%s1235_s10 + $0xa8] sm:$0xff] }
  0x3a   : > { %331 = vxpose.xlu0.b32.cont [2/3] (short) (narrow) %v242_v1, 72  ;;  %903 = vmatpush3.bf16.xpose.msk.msra.mxu0 %vm1249_vm1, %v901_v10  ;;  %v907_v17 = vpack.c.bf16 %v247_v14, %v246_v13  ;;  %v910_v18 = vpack.c.bf16 %v265_v16, %v264_v15  ;;  %v248_v19 = vld [vmem:[%s1235_s10 + $0x20] sm:$0xff]  ;;  %v249_v20 = vld [vmem:[%s1235_s10 + $0x28] sm:$0xff]  ;;  %v266_v21 = vld [vmem:[%s1235_s10 + $0xb0] sm:$0xff] }
  0x3b   : > { %906 = vmatprep.subr.msk.bf16.mxu0 %vm1249_vm1, %v904_v11  ;;  %954 = vmatpush3.bf16.xpose.msk.msra.mxu1 %vm1249_vm1, %v901_v10  ;;  %v267_v22 = vld [vmem:[%s1235_s10 + $0xb8] sm:$0xff]  ;;  %v913_v23 = vpack.c.bf16 %v249_v20, %v248_v19  ;;  %v250_v25 = vld [vmem:[%s1235_s10 + $0x30] sm:$0xff]  ;;  %v268_v27 = vld [vmem:[%s1235_s10 + $0xc0] sm:$0xff] }
  0x3c   : > { %947 = vmatprep.subr.msk.bf16.mxu1 %vm1249_vm1, %v904_v11  ;;  %v916_v24 = vpack.c.bf16 %v267_v22, %v266_v21  ;;  %v251_v26 = vld [vmem:[%s1235_s10 + $0x38] sm:$0xff]  ;;  %v269_v28 = vld [vmem:[%s1235_s10 + $0xc8] sm:$0xff]  ;;  %v252_v31 = vld [vmem:[%s1235_s10 + $0x40] sm:$0xff] }
  0x3d   : > { %v919_v29 = vpack.c.bf16 %v251_v26, %v250_v25  ;;  %v922_v30 = vpack.c.bf16 %v269_v28, %v268_v27  ;;  %v253_v32 = vld [vmem:[%s1235_s10 + $0x48] sm:$0xff]  ;;  %v270_v33 = vld [vmem:[%s1235_s10 + $0xd0] sm:$0xff]  ;;  %v271_v34 = vld [vmem:[%s1235_s10 + $0xd8] sm:$0xff] }
  0x3e   : > { %332 = vxpose.xlu0.b32.end [3/3] (short) (narrow) %v243_v12, 72  ;;  %v925_v35 = vpack.c.bf16 %v253_v32, %v252_v31  ;;  %v928_v36 = vpack.c.bf16 %v271_v34, %v270_v33  ;;  %v276_v37 = vld [vmem:[%s1482_s2] sm:$0xff]  ;;  %v254_v39 = vld [vmem:[%s1235_s10 + $0x50] sm:$0xff]  ;;  %v255_v40 = vld [vmem:[%s1235_s10 + $0x58] sm:$0xff] }
  0x3f   : > { %287 = vperm.xlu1 %1022, %v276_v37   ;;  %v277_v41 = vld [vmem:[%s1482_s2 + $0x8] sm:$0xff]  ;;  %v272_v42 = vld [vmem:[%s1235_s10 + $0xe0] sm:$0xff]  ;;  %v931_v44 = vpack.c.bf16 %v255_v40, %v254_v39  ;;  %v278_v46 = vld [vmem:[%s1482_s2 + $0x10] sm:$0xff] }
  0x40   : > { %v273_v43 = vld [vmem:[%s1235_s10 + $0xe8] sm:$0xff]  ;;  %v256_v47 = vld [vmem:[%s1235_s10 + $0x60] sm:$0xff]  ;;  %v274_v50 = vld [vmem:[%s1235_s10 + $0xf0] sm:$0xff] }
  0x41   : > { %v934_v45 = vpack.c.bf16 %v273_v43, %v272_v42  ;;  %v257_v48 = vld [vmem:[%s1235_s10 + $0x68] sm:$0xff]  ;;  %v280_v49 = vld [vmem:[%s1482_s2 + $0x20] sm:$0xff]  ;;  %v275_v51 = vld [vmem:[%s1235_s10 + $0xf8] sm:$0xff] }
  0x42   : > { %909 = vmatpush3.bf16.xpose.msk.msra.mxu0 %vm1249_vm1, %v907_v17  ;;  %v937_v52 = vpack.c.bf16 %v257_v48, %v256_v47  ;;  %v940_v53 = vpack.c.bf16 %v275_v51, %v274_v50  ;;  %v281_v54 = vld [vmem:[%s1482_s2 + $0x28] sm:$0xff]  ;;  %v258_v55 = vld [vmem:[%s1235_s10 + $0x70] sm:$0xff]  ;;  %v259_v56 = vld [vmem:[%s1235_s10 + $0x78] sm:$0xff] }
  0x43   : > { %912 = vmatprep.subr.msk.bf16.mxu0 %vm1249_vm1, %v910_v18  ;;  %955 = vmatpush3.bf16.xpose.msk.msra.mxu1 %vm1249_vm1, %v907_v17  ;;  %v282_v57 = vld [vmem:[%s1482_s2 + $0x30] sm:$0xff]  ;;  %v943_v58 = vpack.c.bf16 %v259_v56, %v258_v55  ;;  %v283_v59 = vld [vmem:[%s1482_s2 + $0x38] sm:$0xff]  ;;  %v284_v60 = vld [vmem:[%s1482_s2 + $0x40] sm:$0xff] }
  0x44   : > { %948 = vmatprep.subr.msk.bf16.mxu1 %vm1249_vm1, %v910_v18  ;;  %292 = vperm.xlu1 %1022, %v277_v41   ;;  %v279_v61 = vld [vmem:[%s1482_s2 + $0x18] sm:$0xff] }
  0x48   : > { %297 = vperm.xlu1 %1022, %v278_v46  }
  0x4a   : > { %915 = vmatpush3.bf16.xpose.msk.msra.mxu0 %vm1249_vm1, %v913_v23 }
  0x4b   : > { %918 = vmatprep.subr.msk.bf16.mxu0 %vm1249_vm1, %v916_v24  ;;  %956 = vmatpush3.bf16.xpose.msk.msra.mxu1 %vm1249_vm1, %v913_v23 }
  0x4c   : > { %949 = vmatprep.subr.msk.bf16.mxu1 %vm1249_vm1, %v916_v24  ;;  %307 = vperm.xlu1 %1022, %v280_v49  }
  0x50   : > { %312 = vperm.xlu1 %1022, %v281_v54  }
  0x52   : > { %921 = vmatpush3.bf16.xpose.msk.msra.mxu0 %vm1249_vm1, %v919_v29 }
  0x53   : > { %924 = vmatprep.subr.msk.bf16.mxu0 %vm1249_vm1, %v922_v30  ;;  %957 = vmatpush3.bf16.xpose.msk.msra.mxu1 %vm1249_vm1, %v919_v29 }
  0x54   : > { %950 = vmatprep.subr.msk.bf16.mxu1 %vm1249_vm1, %v922_v30  ;;  %317 = vperm.xlu1 %1022, %v282_v57  }
  0x58   : > { %322 = vperm.xlu1 %1022, %v283_v59  }
  0x5a   : > { %927 = vmatpush3.bf16.xpose.msk.msra.mxu0 %vm1249_vm1, %v925_v35 }
  0x5b   : > { %930 = vmatprep.subr.msk.bf16.mxu0 %vm1249_vm1, %v928_v36  ;;  %958 = vmatpush3.bf16.xpose.msk.msra.mxu1 %vm1249_vm1, %v925_v35 }
  0x5c   : > { %951 = vmatprep.subr.msk.bf16.mxu1 %vm1249_vm1, %v928_v36  ;;  %327 = vperm.xlu1 %1022, %v284_v60  }
  0x62   : > { %933 = vmatpush3.bf16.xpose.msk.msra.mxu0 %vm1249_vm1, %v931_v44 }
  0x63   : > { %936 = vmatprep.subr.msk.bf16.mxu0 %vm1249_vm1, %v934_v45  ;;  %959 = vmatpush3.bf16.xpose.msk.msra.mxu1 %vm1249_vm1, %v931_v44 }
  0x64   : > { %952 = vmatprep.subr.msk.bf16.mxu1 %vm1249_vm1, %v934_v45 }
  0x67   : > { %1023 = vset.pattern.permute.xlu0 %v1109_v38 }
  0x6a   : > { %939 = vmatpush3.bf16.xpose.msk.msra.mxu0 %vm1249_vm1, %v937_v52 }
  0x6b   : > { %942 = vmatprep.subr.msk.bf16.mxu0 %vm1249_vm1, %v940_v53  ;;  %960 = vmatpush3.bf16.xpose.msk.msra.mxu1 %vm1249_vm1, %v937_v52 }
  0x6c   : > { %953 = vmatprep.subr.msk.bf16.mxu1 %vm1249_vm1, %v940_v53 }
  0x72   : > { %945 = vmatpush3.bf16.xpose.msk.msra.mxu0 %vm1249_vm1, %v943_v58 }
  0x73   : > { %961 = vmatpush3.bf16.xpose.msk.msra.mxu1 %vm1249_vm1, %v943_v58 }
  0x7f   : > { %302 = vperm.xlu0 %1023, %v279_v61  }
  0xb6   : > { %v346_v62 = vpop.trf.xlu0 }
  0xb7   : > { %880 = vmatprep.mubr.msk.f32.mxu0 %vm362_vm0, %v346_v62 }
  0xb8   : > { %881 = vmatmul.mubr.msk.f32.vlgmr.msra.gmra.mrb[0].mxu0 %vm362_vm0, %v346_v62 }
  0xba   : > { %v347_v63 = vpop.trf.xlu0 }
  0xbb   : > { %882 = vmatprep.mubr.msk.f32.mxu0 %vm362_vm0, %v347_v63 }
  0xbc   : > { %883 = vmatmul.mubr.msk.f32.gmra.mrb[2].mxu0 %vm362_vm0, %v347_v63 }
  0xbe   : > { %v348_v0 = vpop.trf.xlu0  ;;  %v288_v7 = vpop.permute.xlu1 %287 }
  0xbf   : > { %884 = vmatprep.mubr.msk.f32.mxu0 %vm362_vm0, %v348_v0 }
  0xc0   : > { %885 = vmatmul.mubr.msk.f32.gmra.mrb[4].mxu0 %vm362_vm0, %v348_v0 }
  0xc2   : > { %v349_v1 = vpop.trf.xlu0 }
  0xc3   : > { %886 = vmatprep.mubr.msk.f32.mxu0 %vm362_vm0, %v349_v1  ;;  %v293_v8 = vpop.permute.xlu1 %292 }
  0xc4   : > { %887 = vmatmul.mubr.msk.f32.gmra.mrb[6].mxu0 %vm362_vm0, %v349_v1 }
  0xc6   : > { %v350_v2 = vpop.trf.xlu0 }
  0xc7   : > { %888 = vmatprep.mubr.msk.f32.mxu0 %vm362_vm0, %v350_v2  ;;  %v298_v12 = vpop.permute.xlu1 %297 }
  0xc8   : > { %889 = vmatmul.mubr.msk.f32.gmra.mrb[8].mxu0 %vm362_vm0, %v350_v2 }
  0xca   : > { %v351_v3 = vpop.trf.xlu0 }
  0xcb   : > { %890 = vmatprep.mubr.msk.f32.mxu1 %vm362_vm0, %v351_v3  ;;  %v308_v18 = vpop.permute.xlu1 %307 }
  0xcc   : > { %891 = vmatmul.mubr.msk.f32.vlgmr.msra.gmra.mrb[0].mxu1 %vm362_vm0, %v351_v3 }
  0xce   : > { %v352_v4 = vpop.trf.xlu0 }
  0xcf   : > { %892 = vmatprep.mubr.msk.f32.mxu1 %vm362_vm0, %v352_v4  ;;  %v313_v27 = vpop.permute.xlu1 %312 }
  0xd0   : > { %893 = vmatmul.mubr.msk.f32.gmra.mrb[2].mxu1 %vm362_vm0, %v352_v4 }
  0xd2   : > { %v353_v5 = vpop.trf.xlu0 }
  0xd3   : > { %894 = vmatprep.mubr.msk.f32.mxu1 %vm362_vm0, %v353_v5  ;;  %v318_v33 = vpop.permute.xlu1 %317 }
  0xd4   : > { %895 = vmatmul.mubr.msk.f32.gmra.mrb[4].mxu1 %vm362_vm0, %v353_v5 }
  0xd6   : > { %v354_v6 = vpop.trf.xlu0 }
  0xd7   : > { %896 = vmatprep.mubr.msk.f32.mxu1 %vm362_vm0, %v354_v6  ;;  %v323_v41 = vpop.permute.xlu1 %322 }
  0xd8   : > { %897 = vmatmul.mubr.msk.f32.gmra.mrb[6].mxu1 %vm362_vm0, %v354_v6 }
  0xdb   : > { %v328_v47 = vpop.permute.xlu1 %327 }
  0xfe   : > { %v303_v23 = vpop.permute.xlu0 %302 }
 0x18b   : > { %v552_v9 = vpop.f32.mrb[0].mxu0 }
 0x18c   : > { %v553_v10 = vadd.f32 %v552_v9, %v288_v7  ;;  %v554_v11 = vpop.f32.mrb[1].mxu0 }
 0x18d   : > { %v555_v13 = vadd.f32 %v554_v11, %v288_v7 }
 0x18e   : > { %605 = vst [vmem:[%s1398_s18] sm:$0xff] %v553_v10 }
 0x18f   : > { %606 = vst [vmem:[%s1398_s18 + $0x8] sm:$0xff] %v555_v13  ;;  %v558_v14 = vpop.f32.mrb[2].mxu0 }
 0x190   : > { %v559_v15 = vadd.f32 %v558_v14, %v293_v8  ;;  %v560_v16 = vpop.f32.mrb[3].mxu0 }
 0x191   : > { %v561_v17 = vadd.f32 %v560_v16, %v293_v8 }
 0x192   : > { %607 = vst [vmem:[%s1398_s18 + $0x10] sm:$0xff] %v559_v15 }
 0x193   : > { %608 = vst [vmem:[%s1398_s18 + $0x18] sm:$0xff] %v561_v17  ;;  %v564_v19 = vpop.f32.mrb[4].mxu0 }
 0x194   : > { %v565_v20 = vadd.f32 %v564_v19, %v298_v12  ;;  %v566_v21 = vpop.f32.mrb[5].mxu0 }
 0x195   : > { %v567_v22 = vadd.f32 %v566_v21, %v298_v12  ;;  %v648_v52 = vld [vmem:[%s1398_s18] sm:$0xff] (%p1490_p8) }
 0x196   : > { %609 = vst [vmem:[%s1398_s18 + $0x20] sm:$0xff] %v565_v20  ;;  %v650_v53 = vld [vmem:[%s1398_s18 + $0x8] sm:$0xff] (%p1490_p8)  ;;  %649 = vst [vmem:[%s1427_s22] sm:$0xff] (%p1490_p8), %v648_v52 }
 0x197   : > { %610 = vst [vmem:[%s1398_s18 + $0x28] sm:$0xff] %v567_v22  ;;  %v570_v24 = vpop.f32.mrb[6].mxu0  ;;  %651 = vst [vmem:[%s1427_s22 + $0x8] sm:$0xff] (%p1490_p8), %v650_v53 }
 0x198   : > { %v571_v25 = vadd.f32 %v570_v24, %v303_v23  ;;  %v572_v26 = vpop.f32.mrb[7].mxu0 }
 0x199   : > { %v573_v28 = vadd.f32 %v572_v26, %v303_v23  ;;  %v652_v54 = vld [vmem:[%s1398_s18 + $0x10] sm:$0xff] (%p1490_p8) }
 0x19a   : > { %611 = vst [vmem:[%s1398_s18 + $0x30] sm:$0xff] %v571_v25  ;;  %v654_v55 = vld [vmem:[%s1398_s18 + $0x18] sm:$0xff] (%p1490_p8)  ;;  %653 = vst [vmem:[%s1427_s22 + $0x20] sm:$0xff] (%p1490_p8), %v652_v54 }
 0x19b   : > { %612 = vst [vmem:[%s1398_s18 + $0x38] sm:$0xff] %v573_v28  ;;  %v576_v29 = vpop.f32.mrb[8].mxu0  ;;  %655 = vst [vmem:[%s1427_s22 + $0x28] sm:$0xff] (%p1490_p8), %v654_v55 }
 0x19c   : > { %v577_v30 = vadd.f32 %v576_v29, %v308_v18  ;;  %v578_v31 = vpop.f32.mrb[9].mxu0 }
 0x19d   : > { %v579_v32 = vadd.f32 %v578_v31, %v308_v18  ;;  %v656_v56 = vld [vmem:[%s1398_s18 + $0x20] sm:$0xff] (%p1490_p8) }
 0x19e   : > { %613 = vst [vmem:[%s1398_s18 + $0x40] sm:$0xff] %v577_v30  ;;  %v658_v57 = vld [vmem:[%s1398_s18 + $0x28] sm:$0xff] (%p1490_p8)  ;;  %657 = vst [vmem:[%s1427_s22 + $0x40] sm:$0xff] (%p1490_p8), %v656_v56 }
 0x19f   : > { %614 = vst [vmem:[%s1398_s18 + $0x48] sm:$0xff] %v579_v32  ;;  %v582_v34 = vpop.f32.mrb[0].mxu1  ;;  %659 = vst [vmem:[%s1427_s22 + $0x48] sm:$0xff] (%p1490_p8), %v658_v57 }
 0x1a0   : > { %v583_v35 = vadd.f32 %v582_v34, %v313_v27  ;;  %v584_v36 = vpop.f32.mrb[1].mxu1 }
 0x1a1   : > { %v585_v37 = vadd.f32 %v584_v36, %v313_v27  ;;  %v660_v58 = vld [vmem:[%s1398_s18 + $0x30] sm:$0xff] (%p1490_p8) }
 0x1a2   : > { %615 = vst [vmem:[%s1398_s18 + $0x50] sm:$0xff] %v583_v35  ;;  %v662_v59 = vld [vmem:[%s1398_s18 + $0x38] sm:$0xff] (%p1490_p8)  ;;  %661 = vst [vmem:[%s1427_s22 + $0x60] sm:$0xff] (%p1490_p8), %v660_v58 }
 0x1a3   : > { %616 = vst [vmem:[%s1398_s18 + $0x58] sm:$0xff] %v585_v37  ;;  %v588_v38 = vpop.f32.mrb[2].mxu1  ;;  %663 = vst [vmem:[%s1427_s22 + $0x68] sm:$0xff] (%p1490_p8), %v662_v59 }
 0x1a4   : > { %v589_v39 = vadd.f32 %v588_v38, %v318_v33  ;;  %v590_v40 = vpop.f32.mrb[3].mxu1 }
 0x1a5   : > { %v591_v42 = vadd.f32 %v590_v40, %v318_v33  ;;  %v664_v60 = vld [vmem:[%s1398_s18 + $0x40] sm:$0xff] (%p1490_p8) }
 0x1a6   : > { %617 = vst [vmem:[%s1398_s18 + $0x60] sm:$0xff] %v589_v39  ;;  %665 = vst [vmem:[%s1427_s22 + $0x80] sm:$0xff] (%p1490_p8), %v664_v60  ;;  %v666_v61 = vld [vmem:[%s1398_s18 + $0x48] sm:$0xff] (%p1490_p8) }
 0x1a7   : > { %618 = vst [vmem:[%s1398_s18 + $0x68] sm:$0xff] %v591_v42  ;;  %v594_v43 = vpop.f32.mrb[4].mxu1  ;;  %667 = vst [vmem:[%s1427_s22 + $0x88] sm:$0xff] (%p1490_p8), %v666_v61 }
 0x1a8   : > { %v595_v44 = vadd.f32 %v594_v43, %v323_v41  ;;  %v596_v45 = vpop.f32.mrb[5].mxu1 }
 0x1a9   : > { %v597_v46 = vadd.f32 %v596_v45, %v323_v41  ;;  %629 = sbr.rel (!%p1490_p8) target bundleno = 440 (0x1b8), region = 40  ;;  %v668_v62 = vld [vmem:[%s1398_s18 + $0x50] sm:$0xff] (%p1490_p8) }
 0x1aa   : > { %619 = vst [vmem:[%s1398_s18 + $0x70] sm:$0xff] %v595_v44  ;;  %v670_v63 = vld [vmem:[%s1398_s18 + $0x58] sm:$0xff] (%p1490_p8)  ;;  %669 = vst [vmem:[%s1427_s22 + $0xa0] sm:$0xff] (%p1490_p8), %v668_v62 }
 0x1ab   : > { %620 = vst [vmem:[%s1398_s18 + $0x78] sm:$0xff] %v597_v46  ;;  %v600_v48 = vpop.f32.mrb[6].mxu1  ;;  %671 = vst [vmem:[%s1427_s22 + $0xa8] sm:$0xff] (%p1490_p8), %v670_v63 }
 0x1ac   : > { %v601_v49 = vadd.f32 %v600_v48, %v328_v47  ;;  %v602_v50 = vpop.f32.mrb[7].mxu1 }
 0x1ad   : > { %v603_v51 = vadd.f32 %v602_v50, %v328_v47  ;;  %v672_v0 = vld [vmem:[%s1398_s18 + $0x60] sm:$0xff] (%p1490_p8) }
 0x1ae   : > { %621 = vst [vmem:[%s1398_s18 + $0x80] sm:$0xff] %v601_v49  ;;  %v674_v1 = vld [vmem:[%s1398_s18 + $0x68] sm:$0xff] (%p1490_p8)  ;;  %673 = vst [vmem:[%s1427_s22 + $0xc0] sm:$0xff] (%p1490_p8), %v672_v0 }
 0x1af   : > { %622 = vst [vmem:[%s1398_s18 + $0x88] sm:$0xff] %v603_v51  ;;  %675 = vst [vmem:[%s1427_s22 + $0xc8] sm:$0xff] (%p1490_p8), %v674_v1 }
 0x1b1   : > { %v676_v2 = vld [vmem:[%s1398_s18 + $0x70] sm:$0xff] }
 0x1b2   : > { %677 = vst [vmem:[%s1427_s22 + $0xe0] sm:$0xff] %v676_v2  ;;  %v678_v3 = vld [vmem:[%s1398_s18 + $0x78] sm:$0xff] }
 0x1b3   : > { %679 = vst [vmem:[%s1427_s22 + $0xe8] sm:$0xff] %v678_v3 }
 0x1b5   : > { %v680_v4 = vld [vmem:[%s1398_s18 + $0x80] sm:$0xff] }
 0x1b6   : > { %v682_v5 = vld [vmem:[%s1398_s18 + $0x88] sm:$0xff]  ;;  %681 = vst [vmem:[%s1427_s22 + $0x100] sm:$0xff] %v680_v4 }
 0x1b7   : > { %683 = vst [vmem:[%s1427_s22 + $0x108] sm:$0xff] %v682_v5 }
 0x1b8 PF: > { %s16_s17 = sadd.s32 1, %s1104_s17   ;;  %s1491_s12 = smov %s1088_s13 }
 0x1b9   : > { %p13_p9 = scmp.ge.s32.totalorder %s16_s17, 4   ;;  %s1492_s13 = smov %s1092_s14 }
 0x1ba   : > { %s1493_s14 = smov %s1178_s24  ;;  %s1494_s15 = smov %s1100_s16 }
 0x1bb   : > { %s1495_s16 = smov %s1497_s19  ;;  %15 = sbr.rel (!%p13_p9) target bundleno = 4 (0x4), region = 101 }
 0x1c2   :  { %699 = vsyncpa [#allocation3], 1 }
 0x1c3   :  { %701 = vsyncpa [#allocation3 + $0x1], 1 }

// kernel: neighborhood_attention_2d.5
= control target key start
LH: loop header
LB: loop body
LE: loop exit
PB: predicated region body
PF: predicated region fallthrough
CT: control target
= control target key end

     0   :  { %8 = vsyncpa [#allocation3], 0  ;;  %s1330_s0 = inlined_call_operand.vmem [shape: f32[512,24], index: 0, kind: input, shape index: {}]   ;;  %s1331_s1 = inlined_call_operand.vmem [shape: f32[24,24], index: 1, kind: input, shape index: {}]   ;;  %s1332_s2 = inlined_call_operand.vmem [shape: f32[1,24], index: 2, kind: input, shape index: {}]   ;;  %s1333_s3 = inlined_call_operand.hbm [shape: f32[512,24], index: 3, kind: output, shape index: {}]  }
   0x1   :  { %10 = vsyncpa [#allocation3 + $0x1], 0  ;;  %s1033_s12 = smov 0   ;;  %s1035_s13 = smov 0  }
   0x2   :  { %s1037_s14 = smov 0   ;;  %s1039_s15 = smov 0  }
   0x3   :  { %s1041_s16 = smov 0   ;;  %s1043_s17 = smov 0  }
   0x4 LB: > { %s727_s18 = sadd.s32 4294967295, %s1008_s17   ;;  %s728_s19 = sadd.s32 4294967294, %s1008_s17   ;;  %s1008_s17 = sphi %s1043_s17, %s16_s17   ;;  %s1004_s16 = sphi %s1041_s16, %s1340_s16   ;;  %s1000_s15 = sphi %s1039_s15, %s1339_s15   ;;  %s996_s14 = sphi %s1037_s14, %s1338_s14   ;;  %s992_s13 = sphi %s1035_s13, %s1337_s13   ;;  %s988_s12 = sphi %s1033_s12, %s1336_s12  }
   0x5   : > { %s28_s20 = sadd.s32 1, %s1004_s16  ;;  %s115_s21 = sadd.s32 1, %s996_s14 }
   0x6   : > { %p30_p0 = scmp.ge.s32.totalorder %s28_s20, 2  ;;  %p125_p1 = scmp.ne.s32.totalorder %s996_s14, %s992_s13 }
   0x7   : > { %p126_p2 = scmp.eq.s32.totalorder %s727_s18, 1  ;;  %p131_p3 = scmp.ne.s32.totalorder %s992_s13, %s988_s12 }
   0x8   : > { %s1342_s20 = smov (%p30_p0, %s28_s20), 0  ;;  %p132_p5 = scmp.eq.s32.totalorder %s728_s19, 1 }
   0x9   : > { %p1073_p4 = por %p126_p2, %p125_p1  ;;  %s110_s23 = ssub.s32 %s1004_s16, %s1342_s20 }
   0xa   : > { %p733_p6 = scmp.ge.s32.totalorder %s1008_s17, 1  ;;  %p113_p7 = scmp.eq.s32.totalorder %s110_s23, 0 }
   0xb   : > { %p1080_p8 = por %p132_p5, %p131_p3  ;;  %p172_p9 = scmp.lt.s32.totalorder %s1008_s17, 3 }
   0xc   : > { %s1086_s25 = scalar_select %p113_p7, %s996_s14, %s115_s21  }
   0xd   : > { %p173_p10 = pnand %p733_p6, %p172_p9 }
   0xe   : > { %v249_v0 = vld [vmem:[%s1331_s1] sm:$0xff] (!%p173_p10)  ;;  %v250_v1 = vld [vmem:[%s1331_s1 + $0x8] sm:$0xff] (!%p173_p10)  ;;  %s735_s30 = sshll.u32 (!%p173_p10), %s1000_s15, 5  ;;  %v251_v3 = vld [vmem:[%s1331_s1 + $0x10] sm:$0xff] (!%p173_p10)  ;;  %vm259_vm0 = vcmask (!%p173_p10), 195584   ;;  %s200_s10 = sand.u32 (!%p173_p10), 1, %s992_s13  }
   0xf   : > { %176 = sbr.rel (%p173_p10) target bundleno = 286 (0x11e), region = 32  ;;  %v865_v2 = vpack.c.bf16 (!%p173_p10), %v250_v1, %v249_v0  ;;  %p204_p11 = scmp.lt.s32.totalorder (!%p173_p10), %s735_s30, 63  ;;  %v1173_v36 = vld [vmem:[%s1332_s2] ss:$0 sm:$0xff] (!%p173_p10) }
  0x10   : > { %s734_s11 = sshll.u32 (!%p173_p10), %s200_s10, 8  ;;  %s775_s23 = sshll.u32 (!%p173_p10), %s1000_s15, 12 }
  0x11   : > { %866 = vmatprep.subr.bf16.mxu0 (!%p173_p10), %v865_v2  ;;  %869 = vmatprep.subr.bf16.mxu1 (!%p173_p10), %v865_v2  ;;  %s1179_s21 = scalar_lea.vmem (!%p173_p10), [#allocation2], %s734_s11  ;;  %s1268_s28 = scalar_lea.hbm (!%p173_p10), %s1333_s3, %s775_s23 }
  0x12   : > { %868 = vmatpush3.bf16.msra.mxu0 (!%p173_p10), %v865_v2  ;;  %871 = vmatpush3.bf16.msra.mxu1 (!%p173_p10), %v865_v2  ;;  %s628_s26 = sshll.u32 (!%p173_p10), %s1179_s21, 4  ;;  %s1284_s29 = scalar_lea.sflag (!%p173_p10), [#allocation3], %s200_s10  ;;  %s1270_s26 = int_to_ptr.vmem [resolvable:$true] %s628_s26 }
  0x13   : > { %815 = vmatprep.subr.mxu0 (!%p173_p10), %v251_v3  ;;  %870 = vmatprep.subr.mxu1 (!%p173_p10), %v251_v3  ;;  %s1010_s4 = smov (!%p173_p10), [#allocation2]  }
  0x14   : > { %s934_s5 = sshll.u32 (!%p173_p10), %s1010_s4, 4  ;;  %s935_s5 = int_to_ptr.vmem [resolvable:$false] %s934_s5 }
  0x15   : > { %p937_p1 = scmp.lt.s32.totalorder (!%p173_p10), %s1270_s26, %s935_s5 }
  0x16   : > { %s1344_s30 = smov (!%p204_p11, %s735_s30), 63  ;;  %816 = vmatpush3.msra.mxu0 %v251_v3  ;;  %872 = vmatpush3.msra.mxu1 %v251_v3 }
  0x17   : > { %s736_s6 = sshll.u32 %s1344_s30, 3  ;;  %s930_s30 = scalar_lea.vmem %s1270_s26, 4096 }
  0x18   : > { %s1101_s9 = scalar_lea.vmem %s1330_s0, %s736_s6  ;;  %p931_p12 = scmp.ne.s32.totalorder %s1270_s26, %s930_s30 }
  0x19   : > { %v217_v4 = vld [vmem:[%s1101_s9] sm:$0xff]  ;;  %v218_v6 = vld [vmem:[%s1101_s9 + $0x8] sm:$0xff]  ;;  %v219_v8 = vld [vmem:[%s1101_s9 + $0x10] sm:$0xff]  ;;  %s936_s6 = scalar_lea.vmem %s935_s5, 8192 }
  0x1a   : > { %v233_v5 = vld [vmem:[%s1101_s9 + $0x80] sm:$0xff]  ;;  %v234_v7 = vld [vmem:[%s1101_s9 + $0x88] sm:$0xff]  ;;  %v235_v9 = vld [vmem:[%s1101_s9 + $0x90] sm:$0xff]  ;;  %817 = vmatprep.mubr.msk.f32.mxu0 %vm259_vm0, %v217_v4  ;;  %p932_p13 = pnand %p931_p12, %p1073_p4  ;;  %p938_p2 = scmp.lt.s32.totalorder %s936_s6, %s930_s30 }
  0x1b   : > { %841 = vmatprep.mubr.msk.f32.mxu1 %vm259_vm0, %v233_v5  ;;  %818 = vmatmul.mubr.msk.f32.vlgmr.msra.gmra.mrb[0].mxu0 %vm259_vm0, %v218_v6  ;;  %v220_v10 = vld [vmem:[%s1101_s9 + $0x18] sm:$0xff]  ;;  %v221_v12 = vld [vmem:[%s1101_s9 + $0x20] sm:$0xff]  ;;  %v222_v14 = vld [vmem:[%s1101_s9 + $0x28] sm:$0xff] }
  0x1c   : > { %842 = vmatmul.mubr.msk.f32.vlgmr.msra.gmra.mrb[0].mxu1 %vm259_vm0, %v234_v7  ;;  %820 = vmatprep.mubr.msk.f32.mxu0 %vm259_vm0, %v219_v8  ;;  %v236_v11 = vld [vmem:[%s1101_s9 + $0x98] sm:$0xff]  ;;  %v237_v13 = vld [vmem:[%s1101_s9 + $0xa0] sm:$0xff]  ;;  %v238_v15 = vld [vmem:[%s1101_s9 + $0xa8] sm:$0xff]  ;;  %p933_p0 = pneg %p932_p13  ;;  %p939_p3 = por %p938_p2, %p937_p1 }
  0x1d   : > { %844 = vmatprep.mubr.msk.f32.mxu1 %vm259_vm0, %v235_v9  ;;  %v223_v16 = vld [vmem:[%s1101_s9 + $0x30] sm:$0xff]  ;;  %v224_v18 = vld [vmem:[%s1101_s9 + $0x38] sm:$0xff]  ;;  %v225_v20 = vld [vmem:[%s1101_s9 + $0x40] sm:$0xff] }
  0x1e   : > { %v239_v17 = vld [vmem:[%s1101_s9 + $0xb0] sm:$0xff]  ;;  %v240_v19 = vld [vmem:[%s1101_s9 + $0xb8] sm:$0xff]  ;;  %v241_v21 = vld [vmem:[%s1101_s9 + $0xc0] sm:$0xff]  ;;  %p940_p5 = pnand %p939_p3, %p933_p0 }
  0x1f   : > { %821 = vmatmul.mubr.msk.f32.gmra.mrb[2].mxu0 %vm259_vm0, %v220_v10  ;;  %v226_v22 = vld [vmem:[%s1101_s9 + $0x48] sm:$0xff]  ;;  %v227_v24 = vld [vmem:[%s1101_s9 + $0x50] sm:$0xff]  ;;  %v228_v26 = vld [vmem:[%s1101_s9 + $0x58] sm:$0xff] }
  0x20   : > { %845 = vmatmul.mubr.msk.f32.gmra.mrb[2].mxu1 %vm259_vm0, %v236_v11  ;;  %823 = vmatprep.mubr.msk.f32.mxu0 %vm259_vm0, %v221_v12  ;;  %v242_v23 = vld [vmem:[%s1101_s9 + $0xc8] sm:$0xff]  ;;  %v243_v25 = vld [vmem:[%s1101_s9 + $0xd0] sm:$0xff]  ;;  %v244_v27 = vld [vmem:[%s1101_s9 + $0xd8] sm:$0xff] }
  0x21   : > { %847 = vmatprep.mubr.msk.f32.mxu1 %vm259_vm0, %v237_v13  ;;  %v229_v28 = vld [vmem:[%s1101_s9 + $0x60] sm:$0xff]  ;;  %v230_v30 = vld [vmem:[%s1101_s9 + $0x68] sm:$0xff]  ;;  %v231_v32 = vld [vmem:[%s1101_s9 + $0x70] sm:$0xff] }
  0x22   : > { %v245_v29 = vld [vmem:[%s1101_s9 + $0xe0] sm:$0xff]  ;;  %v246_v31 = vld [vmem:[%s1101_s9 + $0xe8] sm:$0xff]  ;;  %v247_v33 = vld [vmem:[%s1101_s9 + $0xf0] sm:$0xff] }
  0x23   : > { %824 = vmatmul.mubr.msk.f32.gmra.mrb[4].mxu0 %vm259_vm0, %v222_v14  ;;  %v232_v34 = vld [vmem:[%s1101_s9 + $0x78] sm:$0xff] }
  0x24   : > { %848 = vmatmul.mubr.msk.f32.gmra.mrb[4].mxu1 %vm259_vm0, %v238_v15  ;;  %826 = vmatprep.mubr.msk.f32.mxu0 %vm259_vm0, %v223_v16  ;;  %v248_v35 = vld [vmem:[%s1101_s9 + $0xf8] sm:$0xff] }
  0x25   : > { %850 = vmatprep.mubr.msk.f32.mxu1 %vm259_vm0, %v239_v17 }
  0x27   : > { %827 = vmatmul.mubr.msk.f32.gmra.mrb[6].mxu0 %vm259_vm0, %v224_v18 }
  0x28   : > { %851 = vmatmul.mubr.msk.f32.gmra.mrb[6].mxu1 %vm259_vm0, %v240_v19  ;;  %829 = vmatprep.mubr.msk.f32.mxu0 %vm259_vm0, %v225_v20 }
  0x29   : > { %853 = vmatprep.mubr.msk.f32.mxu1 %vm259_vm0, %v241_v21 }
  0x2b   : > { %830 = vmatmul.mubr.msk.f32.gmra.mrb[8].mxu0 %vm259_vm0, %v226_v22 }
  0x2c   : > { %854 = vmatmul.mubr.msk.f32.gmra.mrb[8].mxu1 %vm259_vm0, %v242_v23  ;;  %832 = vmatprep.mubr.msk.f32.mxu0 %vm259_vm0, %v227_v24 }
  0x2d   : > { %856 = vmatprep.mubr.msk.f32.mxu1 %vm259_vm0, %v243_v25 }
  0x2f   : > { %833 = vmatmul.mubr.msk.f32.gmra.mrb[10].mxu0 %vm259_vm0, %v228_v26 }
  0x30   : > { %857 = vmatmul.mubr.msk.f32.gmra.mrb[10].mxu1 %vm259_vm0, %v244_v27  ;;  %835 = vmatprep.mubr.msk.f32.mxu0 %vm259_vm0, %v229_v28 }
  0x31   : > { %859 = vmatprep.mubr.msk.f32.mxu1 %vm259_vm0, %v245_v29 }
  0x33   : > { %836 = vmatmul.mubr.msk.f32.gmra.mrb[12].mxu0 %vm259_vm0, %v230_v30 }
  0x34   : > { %860 = vmatmul.mubr.msk.f32.gmra.mrb[12].mxu1 %vm259_vm0, %v246_v31  ;;  %838 = vmatprep.mubr.msk.f32.mxu0 %vm259_vm0, %v231_v32 }
  0x35   : > { %862 = vmatprep.mubr.msk.f32.mxu1 %vm259_vm0, %v247_v33 }
  0x37   : > { %839 = vmatmul.mubr.msk.f32.gmra.mrb[14].mxu0 %vm259_vm0, %v232_v34 }
  0x38   : > { %863 = vmatmul.mubr.msk.f32.gmra.mrb[14].mxu1 %vm259_vm0, %v248_v35 }
  0xee   : > { %v819_v37 = vpop.f32.mrb[0].mxu0 }
  0xef   : > { %v843_v38 = vpop.f32.mrb[0].mxu1  ;;  %v428_v39 = vadd.f32 %v819_v37, %v1173_v36  ;;  %v422_v41 = vpop.f32.mrb[1].mxu0 }
  0xf0   : > { %v508_v40 = vadd.f32 %v843_v38, %v1173_v36  ;;  %v502_v42 = vpop.f32.mrb[1].mxu1  ;;  %v423_v43 = vadd.f32 %v1173_v36, %v422_v41 }
  0xf1   : > { %v503_v44 = vadd.f32 %v1173_v36, %v502_v42  ;;  %582 = vst.msk [vmem:[%s1179_s21 + $0x8] sm:$0xff] %vm259_vm0, %v428_v39 }
  0xf2   : > { %598 = vst.msk [vmem:[%s1179_s21 + $0x88] sm:$0xff] %vm259_vm0, %v508_v40  ;;  %581 = vst.msk [vmem:[%s1179_s21] sm:$0xff] %vm259_vm0, %v423_v43  ;;  %v822_v45 = vpop.f32.mrb[2].mxu0 }
  0xf3   : > { %597 = vst.msk [vmem:[%s1179_s21 + $0x80] sm:$0xff] %vm259_vm0, %v503_v44  ;;  %v846_v46 = vpop.f32.mrb[2].mxu1  ;;  %v438_v47 = vadd.f32 %v822_v45, %v1173_v36  ;;  %v432_v49 = vpop.f32.mrb[3].mxu0 }
  0xf4   : > { %v518_v48 = vadd.f32 %v846_v46, %v1173_v36  ;;  %v512_v50 = vpop.f32.mrb[3].mxu1  ;;  %v433_v51 = vadd.f32 %v1173_v36, %v432_v49 }
  0xf5   : > { %v513_v52 = vadd.f32 %v1173_v36, %v512_v50  ;;  %584 = vst.msk [vmem:[%s1179_s21 + $0x18] sm:$0xff] %vm259_vm0, %v438_v47 }
  0xf6   : > { %600 = vst.msk [vmem:[%s1179_s21 + $0x98] sm:$0xff] %vm259_vm0, %v518_v48  ;;  %583 = vst.msk [vmem:[%s1179_s21 + $0x10] sm:$0xff] %vm259_vm0, %v433_v51  ;;  %v825_v53 = vpop.f32.mrb[4].mxu0 }
  0xf7   : > { %599 = vst.msk [vmem:[%s1179_s21 + $0x90] sm:$0xff] %vm259_vm0, %v513_v52  ;;  %v849_v54 = vpop.f32.mrb[4].mxu1  ;;  %v448_v55 = vadd.f32 %v825_v53, %v1173_v36  ;;  %v442_v57 = vpop.f32.mrb[5].mxu0 }
  0xf8   : > { %v528_v56 = vadd.f32 %v849_v54, %v1173_v36  ;;  %v522_v58 = vpop.f32.mrb[5].mxu1  ;;  %v443_v59 = vadd.f32 %v1173_v36, %v442_v57 }
  0xf9   : > { %v523_v60 = vadd.f32 %v1173_v36, %v522_v58  ;;  %586 = vst.msk [vmem:[%s1179_s21 + $0x28] sm:$0xff] %vm259_vm0, %v448_v55 }
  0xfa   : > { %602 = vst.msk [vmem:[%s1179_s21 + $0xa8] sm:$0xff] %vm259_vm0, %v528_v56  ;;  %585 = vst.msk [vmem:[%s1179_s21 + $0x20] sm:$0xff] %vm259_vm0, %v443_v59  ;;  %v828_v61 = vpop.f32.mrb[6].mxu0 }
  0xfb   : > { %601 = vst.msk [vmem:[%s1179_s21 + $0xa0] sm:$0xff] %vm259_vm0, %v523_v60  ;;  %v852_v62 = vpop.f32.mrb[6].mxu1  ;;  %v458_v63 = vadd.f32 %v828_v61, %v1173_v36  ;;  %v452_v1 = vpop.f32.mrb[7].mxu0 }
  0xfc   : > { %v538_v0 = vadd.f32 %v852_v62, %v1173_v36  ;;  %v532_v2 = vpop.f32.mrb[7].mxu1  ;;  %v453_v3 = vadd.f32 %v1173_v36, %v452_v1 }
  0xfd   : > { %v533_v4 = vadd.f32 %v1173_v36, %v532_v2  ;;  %588 = vst.msk [vmem:[%s1179_s21 + $0x38] sm:$0xff] %vm259_vm0, %v458_v63 }
  0xfe   : > { %604 = vst.msk [vmem:[%s1179_s21 + $0xb8] sm:$0xff] %vm259_vm0, %v538_v0  ;;  %587 = vst.msk [vmem:[%s1179_s21 + $0x30] sm:$0xff] %vm259_vm0, %v453_v3  ;;  %v831_v5 = vpop.f32.mrb[8].mxu0 }
  0xff   : > { %603 = vst.msk [vmem:[%s1179_s21 + $0xb0] sm:$0xff] %vm259_vm0, %v533_v4  ;;  %v855_v6 = vpop.f32.mrb[8].mxu1  ;;  %v468_v7 = vadd.f32 %v831_v5, %v1173_v36  ;;  %v462_v9 = vpop.f32.mrb[9].mxu0 }
 0x100   : > { %v548_v8 = vadd.f32 %v855_v6, %v1173_v36  ;;  %v542_v10 = vpop.f32.mrb[9].mxu1  ;;  %v463_v11 = vadd.f32 %v1173_v36, %v462_v9 }
 0x101   : > { %v543_v12 = vadd.f32 %v1173_v36, %v542_v10  ;;  %590 = vst.msk [vmem:[%s1179_s21 + $0x48] sm:$0xff] %vm259_vm0, %v468_v7 }
 0x102   : > { %606 = vst.msk [vmem:[%s1179_s21 + $0xc8] sm:$0xff] %vm259_vm0, %v548_v8  ;;  %589 = vst.msk [vmem:[%s1179_s21 + $0x40] sm:$0xff] %vm259_vm0, %v463_v11  ;;  %v834_v13 = vpop.f32.mrb[10].mxu0 }
 0x103   : > { %605 = vst.msk [vmem:[%s1179_s21 + $0xc0] sm:$0xff] %vm259_vm0, %v543_v12  ;;  %v858_v14 = vpop.f32.mrb[10].mxu1  ;;  %v478_v15 = vadd.f32 %v834_v13, %v1173_v36  ;;  %v472_v17 = vpop.f32.mrb[11].mxu0 }
 0x104   : > { %v558_v16 = vadd.f32 %v858_v14, %v1173_v36  ;;  %v552_v18 = vpop.f32.mrb[11].mxu1  ;;  %v473_v19 = vadd.f32 %v1173_v36, %v472_v17 }
 0x105   : > { %v553_v20 = vadd.f32 %v1173_v36, %v552_v18  ;;  %592 = vst.msk [vmem:[%s1179_s21 + $0x58] sm:$0xff] %vm259_vm0, %v478_v15 }
 0x106   : > { %608 = vst.msk [vmem:[%s1179_s21 + $0xd8] sm:$0xff] %vm259_vm0, %v558_v16  ;;  %591 = vst.msk [vmem:[%s1179_s21 + $0x50] sm:$0xff] %vm259_vm0, %v473_v19  ;;  %v837_v21 = vpop.f32.mrb[12].mxu0 }
 0x107   : > { %607 = vst.msk [vmem:[%s1179_s21 + $0xd0] sm:$0xff] %vm259_vm0, %v553_v20  ;;  %v861_v22 = vpop.f32.mrb[12].mxu1  ;;  %v488_v23 = vadd.f32 %v837_v21, %v1173_v36  ;;  %v482_v25 = vpop.f32.mrb[13].mxu0 }
 0x108   : > { %v568_v24 = vadd.f32 %v861_v22, %v1173_v36  ;;  %v562_v26 = vpop.f32.mrb[13].mxu1  ;;  %v483_v27 = vadd.f32 %v1173_v36, %v482_v25 }
 0x109   : > { %v563_v28 = vadd.f32 %v1173_v36, %v562_v26  ;;  %594 = vst.msk [vmem:[%s1179_s21 + $0x68] sm:$0xff] %vm259_vm0, %v488_v23 }
 0x10a   : > { %610 = vst.msk [vmem:[%s1179_s21 + $0xe8] sm:$0xff] %vm259_vm0, %v568_v24  ;;  %593 = vst.msk [vmem:[%s1179_s21 + $0x60] sm:$0xff] %vm259_vm0, %v483_v27  ;;  %v840_v29 = vpop.f32.mrb[14].mxu0 }
 0x10b   : > { %609 = vst.msk [vmem:[%s1179_s21 + $0xe0] sm:$0xff] %vm259_vm0, %v563_v28  ;;  %v864_v30 = vpop.f32.mrb[14].mxu1  ;;  %v498_v31 = vadd.f32 %v840_v29, %v1173_v36  ;;  %v492_v33 = vpop.f32.mrb[15].mxu0 }
 0x10c   : > { %v578_v32 = vadd.f32 %v864_v30, %v1173_v36  ;;  %v572_v34 = vpop.f32.mrb[15].mxu1  ;;  %v493_v35 = vadd.f32 %v1173_v36, %v492_v33 }
 0x10d   : > { %v573_v37 = vadd.f32 %v1173_v36, %v572_v34  ;;  %596 = vst.msk [vmem:[%s1179_s21 + $0x78] sm:$0xff] %vm259_vm0, %v498_v31 }
 0x10e   : > { %612 = vst.msk [vmem:[%s1179_s21 + $0xf8] sm:$0xff] %vm259_vm0, %v578_v32  ;;  %595 = vst.msk [vmem:[%s1179_s21 + $0x70] sm:$0xff] %vm259_vm0, %v493_v35 }
 0x10f   : > { %611 = vst.msk [vmem:[%s1179_s21 + $0xf0] sm:$0xff] %vm259_vm0, %v573_v37 }
 0x110   : > { %943 = shalt.err (!%p940_p5)
}
 0x111   : > { %s944_s7 = scalar_lea.hbm %s1268_s28, 4096  ;;  %s948_s10 = scalar_lea.hbm %s1333_s3, 8192 }
 0x112   : > { %p945_p6 = scmp.ne.s32.totalorder %s1268_s28, %s944_s7  ;;  %p949_p10 = scmp.lt.u32.totalorder %s1268_s28, %s1333_s3 }
 0x113   : > { %p950_p11 = scmp.lt.u32.totalorder %s948_s10, %s944_s7  ;;  %p952_p13 = scmp.lt.u32.totalorder %s944_s7, %s1268_s28 }
 0x114   : > { %p946_p7 = pnand %p945_p6, %p1073_p4 }
 0x115   : > { %p951_p12 = por %p950_p11, %p949_p10 }
 0x116   : > { %p947_p9 = pneg %p946_p7 }
 0x117   : > { %p953_p0 = por %p952_p13, %p951_p12 }
 0x119   : > { %p954_p1 = pnand %p953_p0, %p947_p9 }
 0x11b   : > { %957 = shalt.err (!%p954_p1)
}
 0x11c   : > { %s1011_s19 = smov 128   ;;  %s1012_s21 = smov 8  }
 0x11d   : > { %873 = dma.vmem_to_hbm [thread:$0]  (%p1073_p4), %s1270_s26, 4096, %s1268_s28, %s1284_s29, %s1011_s19, %s1011_s19, %s1012_s21  }
 0x11e PF: > { %p879_p2 = scmp.ge.s32.totalorder %s1008_s17, 2  ;;  %s643_s23 = sand.u32 1, %s988_s12  }
 0x11f   : > { %s644_s15 = scalar_lea.sflag [#allocation3], %s643_s23 }
 0x120   : > { %p876_p3 = pnand %p879_p2, %p1080_p8 }
 0x122   : > { %983 = dma.done.wait (!%p876_p3), %s644_s15, 4096  }
 0x123   : > { %985 = vsyncadd (!%p876_p3), %s644_s15, 4294963200  ;;  %s16_s17 = sadd.s32 1, %s1008_s17   ;;  %s1336_s12 = smov %s992_s13 }
 0x124   : > { %p13_p5 = scmp.ge.s32.totalorder %s16_s17, 4   ;;  %s1337_s13 = smov %s996_s14 }
 0x125   : > { %s1338_s14 = smov %s1086_s25  ;;  %s1339_s15 = smov %s1004_s16 }
 0x126   : > { %s1340_s16 = smov %s1342_s20  ;;  %15 = sbr.rel (!%p13_p5) target bundleno = 4 (0x4), region = 73 }
 0x12d   :  { %649 = vsyncpa [#allocation3], 1 }
 0x12e   :  { %651 = vsyncpa [#allocation3 + $0x1], 1 }

// kernel: neighborhood_attention_2d.4
= control target key start
LH: loop header
LB: loop body
LE: loop exit
PB: predicated region body
PF: predicated region fallthrough
CT: control target
= control target key end

     0   :  { %s2762_s12 = smov 0   ;;  %s2764_s13 = smov 0   ;;  %s4674_s0 = inlined_call_operand.vmem [shape: f32[3,3,2,8,256], index: 0, kind: input, shape index: {}]   ;;  %s4675_s1 = inlined_call_operand.vmem [shape: s32[3,256,1], index: 1, kind: input, shape index: {}]   ;;  %s4676_s2 = inlined_call_operand.vmem [shape: s32[1,256], index: 2, kind: input, shape index: {}]   ;;  %s4677_s3 = inlined_call_operand.vmem [shape: f32[3,2,8,256], index: 3, kind: output, shape index: {}]  }
   0x1   :  { %s2766_s14 = smov 0   ;;  %s2768_s15 = smov 0  }
   0x2   :  { %s2770_s16 = smov 0   ;;  %s2772_s17 = smov 0  }
   0x3   :  { %s2774_s18 = smov 0  }
   0x4 LB: > { %s22_s19 = sadd.s32 1, %s2728_s16  ;;  %s25_s20 = sadd.s32 1, %s2732_s17  ;;  %s2736_s18 = sphi %s2774_s18, %s13_s18   ;;  %s2732_s17 = sphi %s2772_s17, %s4937_s17   ;;  %s2728_s16 = sphi %s2770_s16, %s4936_s16   ;;  %s2724_s15 = sphi %s2768_s15, %s4935_s15   ;;  %s2720_s14 = sphi %s2766_s14, %s4934_s14   ;;  %s2716_s13 = sphi %s2764_s13, %s4933_s13   ;;  %s2712_s12 = sphi %s2762_s12, %s4932_s12  }
   0x5   : > { %p23_p0 = scmp.ge.s32.totalorder %s22_s19, 2  ;;  %p41_p1 = scmp.ne.s32.totalorder %s2716_s13, %s2712_s12 }
   0x6   : > { %p42_p2 = scmp.eq.s32.totalorder %s2736_s18, 0  ;;  %s34_s24 = sadd.s32 1, %s2716_s13 }
   0x7   : > { %s4939_s19 = smov (%p23_p0, %s22_s19), 0  ;;  %s4941_s20 = smov (!%p23_p0, %s25_s20), %s2732_s17 }
   0x8   : > { %p43_p3 = por %p42_p2, %p41_p1  ;;  %p27_p4 = scmp.ge.s32.totalorder %s4941_s20, 3 }
   0x9   : > { %s30_s21 = ssub.s32 %s2728_s16, %s4939_s19  ;;  %p2309_p6 = scmp.ge.s32.totalorder %s2736_s18, 6 }
   0xa   : > { %s4943_s20 = smov (%p27_p4, %s4941_s20), 0 }
   0xb   : > { %s29_s22 = ssub.s32 %s2732_s17, %s4943_s20  ;;  %145 = sbr.rel (%p2309_p6) target bundleno = 29 (0x1d), region = 20 }
   0xc   : > { %s31_s23 = sor.u32 %s30_s21, %s29_s22 }
   0xd   : > { %p32_p5 = scmp.eq.s32.totalorder %s31_s23, 0 }
   0xf   : > { %s2813_s25 = scalar_select %p32_p5, %s2716_s13, %s34_s24  }
  0x12   : > { %148 = sbr.rel (!%p43_p3) target bundleno = 29 (0x1d), region = 24  ;;  %s150_s26 = sand.u32 (%p43_p3), 1, %s2716_s13  }
  0x13   : > { %s2485_s27 = smul.u32 (%p43_p3), 48, %s150_s26  ;;  %s2310_s28 = sshll.u32 (%p43_p3), %s2728_s16, 1 }
  0x14   : > { %s2486_s29 = smul.u32 (%p43_p3), 12, %s2732_s17 }
  0x15   : > { %s152_s8 = scalar_lea.vmem (%p43_p3), [#allocation2], %s2485_s27 }
  0x16   : > { %s155_s30 = sadd.s32 (%p43_p3), %s2486_s29, %s2310_s28 }
  0x17   : > { %s2311_s4 = sshll.u32 (%p43_p3), %s155_s30, 3 }
  0x18   : > { %s157_s7 = scalar_lea.vmem (%p43_p3), %s4674_s0, %s2311_s4 }
  0x19   : > { %v170_v0 = vld [vmem:[%s157_s7] sm:$0xff]  ;;  %v172_v1 = vld [vmem:[%s157_s7 + $0x8] sm:$0xff] }
  0x1a   : > { %v174_v2 = vld [vmem:[%s157_s7 + $0x20] sm:$0xff]  ;;  %171 = vst [vmem:[%s152_s8] sm:$0xff] %v170_v0  ;;  %173 = vst [vmem:[%s152_s8 + $0x8] sm:$0xff] %v172_v1  ;;  %v176_v3 = vld [vmem:[%s157_s7 + $0x28] sm:$0xff] }
  0x1b   : > { %175 = vst [vmem:[%s152_s8 + $0x10] sm:$0xff] %v174_v2  ;;  %v178_v4 = vld [vmem:[%s157_s7 + $0x40] sm:$0xff]  ;;  %v180_v5 = vld [vmem:[%s157_s7 + $0x48] sm:$0xff]  ;;  %177 = vst [vmem:[%s152_s8 + $0x18] sm:$0xff] %v176_v3 }
  0x1c   : > { %179 = vst [vmem:[%s152_s8 + $0x20] sm:$0xff] %v178_v4  ;;  %181 = vst [vmem:[%s152_s8 + $0x28] sm:$0xff] %v180_v5 }
  0x1d PF: > { %p2312_p7 = scmp.ge.s32.totalorder %s2736_s18, 1  ;;  %p194_p8 = scmp.lt.s32.totalorder %s2736_s18, 7 }
  0x1f   : > { %p195_p9 = pnand %p2312_p7, %p194_p8 }
  0x21   : > { %198 = sbr.rel (%p195_p9) target bundleno = 1150 (0x47e), region = 51 }
  0x28   : > { %s201_s9 = sand.u32 1, %s2712_s12   ;;  %v2738_v12 = vmov 0.0   ;;  %v2739_v13 = vmov 0   ;;  %p233_p10 = scmp.lt.s32.totalorder %s2724_s15, 2  ;;  %vm1401_vm0 = vcmask 64512  }
  0x29   : > { %s2487_s10 = smul.u32 48, %s201_s9  ;;  %1562 = vmatprep.mubr.f32.mxu0 %v2738_v12  ;;  %p247_p11 = scmp.eq.s32.totalorder %s2724_s15, 1 }
  0x2a   : > { %s2834_s12 = scalar_select %p233_p10, %s2724_s15, 2 }
  0x2b   : > { %s2825_s11 = scalar_lea.vmem [#allocation2], %s2487_s10  ;;  %p249_p12 = scmp.eq.s32.totalorder %s2724_s15, 2 }
  0x2c   : > { %v1328_v6 = vld [vmem:[%s2825_s11 + $0x8] sm:$0xff]  ;;  %v1327_v7 = vld [vmem:[%s2825_s11] sm:$0xff]  ;;  %v2319_v10 = vld [vmem:[%s2825_s11 + $0x18] sm:$0xff]  ;;  %s2356_s21 = sshll.u32 %s2834_s12, 8  ;;  %p240_p13 = scmp.lt.s32.totalorder %s2720_s14, 1 }
  0x2d   : > { %v1330_v8 = vmul.f32 0.35355338, %v1328_v6  ;;  %v1329_v9 = vmul.f32 0.35355338, %v1327_v7  ;;  %v2318_v11 = vld [vmem:[%s2825_s11 + $0x10] sm:$0xff]  ;;  %1498 = vmatprep.subr.mxu0 %v2319_v10  ;;  %s2840_s24 = scalar_lea.vmem %s4675_s1, %s2356_s21  ;;  %s2316_s29 = sshll.u32 %s2834_s12, 2 }
  0x2e   : > { %1499 = vmatpush1.msra.mxu0 %v2318_v11  ;;  %v252_v14 = vld [vmem:[%s2840_s24 + $0x8] sm:$0xff]  ;;  %v2844_v16 = vld [vmem:[%s2840_s24 + $0x10] sm:$0xff]  ;;  %v2848_v18 = vld [vmem:[%s2840_s24 + $0x18] sm:$0xff]  ;;  %s248_s26 = scalar_select %p247_p11, 9, 7 }
  0x2f   : > { %1369 = vxpose.xlu1.b32.start.end [1/1] (short) %v1330_v8, 128  ;;  %1337 = vxpose.xlu0.b32.start.end [1/1] (short) %v1329_v9, 128  ;;  %v284_v15 = vshra.s32 %v252_v14, 16  ;;  %v285_v17 = vshra.s32 %v2844_v16, 16  ;;  %v286_v19 = vshra.s32 %v2848_v18, 16  ;;  %v251_v20 = vld [vmem:[%s2840_s24] sm:$0xff]  ;;  %v2857_v24 = vld [vmem:[%s2840_s24 + $0x28] sm:$0xff]  ;;  %v2861_v25 = vld [vmem:[%s2840_s24 + $0x30] sm:$0xff] }
  0x30   : > { %v2853_v21 = vld [vmem:[%s2840_s24 + $0x20] sm:$0xff]  ;;  %v283_v22 = vshra.s32 %v251_v20, 16  ;;  %v288_v26 = vshra.s32 %v2857_v24, 16  ;;  %v289_v27 = vshra.s32 %v2861_v25, 16  ;;  %v2867_v28 = vld [vmem:[%s2840_s24 + $0x38] sm:$0xff]  ;;  %v2877_v32 = vld [vmem:[%s2840_s24 + $0x48] sm:$0xff] }
  0x31   : > { %v287_v23 = vshra.s32 %v2853_v21, 16  ;;  %v2870_v29 = vld [vmem:[%s2840_s24 + $0x40] sm:$0xff]  ;;  %v290_v30 = vshra.s32 %v2867_v28, 16  ;;  %s4945_s26 = smov (%p249_p12, %s248_s26), 11  ;;  %v2880_v33 = vld [vmem:[%s2840_s24 + $0x50] sm:$0xff]  ;;  %v292_v34 = vshra.s32 %v2877_v32, 16 }
  0x32   : > { %v291_v31 = vshra.s32 %v2870_v29, 16  ;;  %v293_v35 = vshra.s32 %v2880_v33, 16  ;;  %v2888_v36 = vstv %s4945_s26  ;;  %v315_v39 = vand.u32 65535, %v251_v20  ;;  %s4947_s14 = smov (!%p240_p13, %s2720_s14), 1 }
  0x33   : > { %v519_v37 = vadd.s32 %v2888_v36, %v283_v22  ;;  %v520_v38 = vadd.s32 %v2888_v36, %v284_v15  ;;  %v316_v40 = vand.u32 65535, %v252_v14  ;;  %v521_v43 = vadd.s32 %v2888_v36, %v285_v17  ;;  %s2315_s28 = sshll.u32 %s4947_s14, 1 }
  0x34   : > { %v1007_v41 = vadd.s32 %v2888_v36, %v315_v39  ;;  %v522_v44 = vadd.s32 %v2888_v36, %v286_v19  ;;  %v317_v46 = vand.u32 65535, %v2844_v16  ;;  %v318_v47 = vand.u32 65535, %v2848_v18  ;;  %s244_s30 = sadd.s32 %s2316_s29, %s2315_s28 }
  0x35   : > { %v1008_v42 = vadd.s32 %v2888_v36, %v316_v40  ;;  %v523_v53 = vadd.s32 %v2888_v36, %v287_v23  ;;  %v524_v55 = vadd.s32 %v2888_v36, %v288_v26  ;;  %v319_v57 = vand.u32 65535, %v2853_v21  ;;  %s2317_s4 = sshll.u32 %s244_s30, 3 }
  0x36   : > { %v1009_v50 = vadd.s32 %v2888_v36, %v317_v46  ;;  %v1010_v51 = vadd.s32 %v2888_v36, %v318_v47  ;;  %v320_v58 = vand.u32 65535, %v2857_v24  ;;  %v525_v0 = vadd.s32 %v2888_v36, %v289_v27  ;;  %s246_s7 = scalar_lea.vmem %s4677_s3, %s2317_s4 }
  0x37   : > { %v1011_v61 = vadd.s32 %v2888_v36, %v319_v57  ;;  %v526_v2 = vadd.s32 %v2888_v36, %v290_v30  ;;  %v321_v4 = vand.u32 65535, %v2861_v25  ;;  %v322_v5 = vand.u32 65535, %v2867_v28 }
  0x38   : > { %v1012_v62 = vadd.s32 %v2888_v36, %v320_v58  ;;  %v527_v11 = vadd.s32 %v2888_v36, %v291_v31  ;;  %v528_v14 = vadd.s32 %v2888_v36, %v292_v34  ;;  %v323_v16 = vand.u32 65535, %v2870_v29 }
  0x39   : > { %v1013_v8 = vadd.s32 %v2888_v36, %v321_v4  ;;  %v1014_v9 = vadd.s32 %v2888_v36, %v322_v5  ;;  %v325_v29 = vand.u32 65535, %v2880_v33 }
  0x3a   : > { %v1015_v20 = vadd.s32 %v2888_v36, %v323_v16 }
  0x4d   : > { %2549 = vset.pattern.permute.xlu1 %v2739_v13 }
  0x58   : > { %2548 = vset.pattern.permute.xlu0 %v2739_v13 }
  0x89   : > { %362 = vperm.xlu1 %2549, %v284_v15  }
  0x8d   : > { %365 = vperm.xlu1 %2549, %v285_v17   ;;  %v324_v17 = vand.u32 65535, %v2877_v32 }
  0x8f   : > { %v1016_v21 = vadd.s32 %v2888_v36, %v324_v17 }
  0x91   : > { %368 = vperm.xlu1 %2549, %v286_v19  }
  0x94   : > { %359 = vperm.xlu0 %2548, %v283_v22   ;;  %v262_v22 = vld [vmem:[%s2840_s24 + $0x58] sm:$0xff] }
  0x95   : > { %371 = vperm.xlu1 %2549, %v287_v23   ;;  %v294_v24 = vshra.s32 %v262_v22, 16  ;;  %v326_v32 = vand.u32 65535, %v262_v22 }
  0x97   : > { %v530_v28 = vadd.s32 %v2888_v36, %v294_v24 }
  0x98   : > { %374 = vperm.xlu0 %2548, %v288_v26   ;;  %v529_v26 = vadd.s32 %v2888_v36, %v293_v35 }
  0x99   : > { %377 = vperm.xlu1 %2549, %v289_v27  }
  0x9c   : > { %380 = vperm.xlu0 %2548, %v290_v30  }
  0x9d   : > { %383 = vperm.xlu1 %2549, %v291_v31  }
  0xa0   : > { %386 = vperm.xlu0 %2548, %v292_v34   ;;  %v1017_v34 = vadd.s32 %v2888_v36, %v325_v29 }
  0xa1   : > { %389 = vperm.xlu1 %2549, %v293_v35  }
  0xa4   : > { %552 = vperm.xlu0 %2548, %v519_v37  }
  0xa5   : > { %555 = vperm.xlu1 %2549, %v520_v38   ;;  %v1018_v38 = vadd.s32 %v2888_v36, %v326_v32 }
  0xa8   : > { %784 = vperm.xlu0 %2548, %v315_v39  }
  0xa9   : > { %787 = vperm.xlu1 %2549, %v316_v40  }
  0xac   : > { %1040 = vperm.xlu0 %2548, %v1007_v41  }
  0xad   : > { %1043 = vperm.xlu1 %2549, %v1008_v42  }
  0xaf   : > { %v1353_v45 = vpop.trf.xlu0  ;;  %v2904_v48 = vpop.trf.xlu1 }
  0xb0   : > { %558 = vperm.xlu0 %2548, %v521_v43   ;;  %2322 = vmatmul.mubr.msk.f32.vlgmr.msra.gmra.mrb[0].mxu0 %vm1401_vm0, %v1353_v45 }
  0xb1   : > { %561 = vperm.xlu1 %2549, %v522_v44   ;;  %1568 = vmatprep.mubr.f32.mxu0 %v2738_v12 }
  0xb3   : > { %v1354_v49 = vpop.trf.xlu0  ;;  %v2912_v54 = vpop.trf.xlu1 }
  0xb4   : > { %790 = vperm.xlu0 %2548, %v317_v46   ;;  %2323 = vmatmul.mubr.msk.f32.gmra.mrb[2].mxu0 %vm1401_vm0, %v1354_v49 }
  0xb5   : > { %793 = vperm.xlu1 %2549, %v318_v47   ;;  %1574 = vmatprep.mubr.f32.mxu0 %v2738_v12 }
  0xb7   : > { %v1355_v52 = vpop.trf.xlu0  ;;  %v2920_v59 = vpop.trf.xlu1 }
  0xb8   : > { %1046 = vperm.xlu0 %2548, %v1009_v50   ;;  %2324 = vmatmul.mubr.msk.f32.gmra.mrb[4].mxu0 %vm1401_vm0, %v1355_v52 }
  0xb9   : > { %1049 = vperm.xlu1 %2549, %v1010_v51   ;;  %1580 = vmatprep.mubr.f32.mxu0 %v2738_v12 }
  0xbb   : > { %v1356_v56 = vpop.trf.xlu0  ;;  %v2930_v1 = vpop.trf.xlu1 }
  0xbc   : > { %564 = vperm.xlu0 %2548, %v523_v53   ;;  %2325 = vmatmul.mubr.msk.f32.gmra.mrb[6].mxu0 %vm1401_vm0, %v1356_v56 }
  0xbd   : > { %567 = vperm.xlu1 %2549, %v524_v55   ;;  %1586 = vmatprep.mubr.f32.mxu0 %v2738_v12 }
  0xbf   : > { %v1357_v60 = vpop.trf.xlu0  ;;  %v2940_v6 = vpop.trf.xlu1 }
  0xc0   : > { %796 = vperm.xlu0 %2548, %v319_v57   ;;  %2326 = vmatmul.mubr.msk.f32.gmra.mrb[8].mxu0 %vm1401_vm0, %v1357_v60 }
  0xc1   : > { %799 = vperm.xlu1 %2549, %v320_v58   ;;  %1592 = vmatprep.mubr.f32.mxu0 %v2738_v12 }
  0xc3   : > { %v1358_v63 = vpop.trf.xlu0  ;;  %v2950_v13 = vpop.trf.xlu1 }
  0xc4   : > { %1052 = vperm.xlu0 %2548, %v1011_v61   ;;  %2327 = vmatmul.mubr.msk.f32.gmra.mrb[10].mxu0 %vm1401_vm0, %v1358_v63 }
  0xc5   : > { %1055 = vperm.xlu1 %2549, %v1012_v62   ;;  %1598 = vmatprep.mubr.f32.mxu0 %v2738_v12 }
  0xc7   : > { %v1359_v3 = vpop.trf.xlu0  ;;  %v1391_v18 = vpop.trf.xlu1 }
  0xc8   : > { %570 = vperm.xlu0 %2548, %v525_v0   ;;  %2328 = vmatmul.mubr.msk.f32.gmra.mrb[12].mxu0 %vm1401_vm0, %v1359_v3 }
  0xc9   : > { %573 = vperm.xlu1 %2549, %v526_v2   ;;  %1604 = vmatprep.mubr.f32.mxu0 %v2738_v12 }
  0xcb   : > { %v1360_v7 = vpop.trf.xlu0  ;;  %v1392_v25 = vpop.trf.xlu1 }
  0xcc   : > { %802 = vperm.xlu0 %2548, %v321_v4   ;;  %2329 = vmatmul.mubr.msk.f32.gmra.mrb[14].mxu0 %vm1401_vm0, %v1360_v7  ;;  %v350_v4 = vlaneseq  ;;  %v347_v7 = vld [vmem:[%s4676_s2] sm:$0x3] }
  0xcd   : > { %805 = vperm.xlu1 %2549, %v322_v5   ;;  %1610 = vmatprep.mubr.f32.mxu0 %v2738_v12 }
  0xcf   : > { %v1361_v10 = vpop.trf.xlu0  ;;  %v1393_v30 = vpop.trf.xlu1 }
  0xd0   : > { %1058 = vperm.xlu0 %2548, %v1013_v8   ;;  %2330 = vmatmul.mubr.msk.f32.gmra.mrb[16].mxu0 %vm1401_vm0, %v1361_v10  ;;  %v348_v10 = vshra.s32 %v347_v7, 16 }
  0xd1   : > { %1061 = vperm.xlu1 %2549, %v1014_v9   ;;  %1616 = vmatprep.mubr.f32.mxu0 %v2738_v12 }
  0xd3   : > { %v1362_v15 = vpop.trf.xlu0  ;;  %v1394_v37 = vpop.trf.xlu1 }
  0xd4   : > { %576 = vperm.xlu0 %2548, %v527_v11   ;;  %2331 = vmatmul.mubr.msk.f32.gmra.mrb[18].mxu0 %vm1401_vm0, %v1362_v15 }
  0xd5   : > { %579 = vperm.xlu1 %2549, %v528_v14   ;;  %1622 = vmatprep.mubr.f32.mxu0 %v2738_v12 }
  0xd7   : > { %v1363_v19 = vpop.trf.xlu0  ;;  %v1395_v39 = vpop.trf.xlu1 }
  0xd8   : > { %808 = vperm.xlu0 %2548, %v323_v16   ;;  %2332 = vmatmul.mubr.msk.f32.gmra.mrb[20].mxu0 %vm1401_vm0, %v1363_v19  ;;  %v349_v16 = vand.u32 65535, %v347_v7 }
  0xd9   : > { %811 = vperm.xlu1 %2549, %v324_v17   ;;  %1628 = vmatprep.mubr.f32.mxu0 %v2738_v12 }
  0xdb   : > { %v1364_v23 = vpop.trf.xlu0  ;;  %v1396_v40 = vpop.trf.xlu1 }
  0xdc   : > { %1064 = vperm.xlu0 %2548, %v1015_v20   ;;  %2333 = vmatmul.mubr.msk.f32.gmra.mrb[22].mxu0 %vm1401_vm0, %v1364_v23 }
  0xdd   : > { %1067 = vperm.xlu1 %2549, %v1016_v21   ;;  %1634 = vmatprep.mubr.f32.mxu0 %v2738_v12 }
  0xdf   : > { %v1365_v27 = vpop.trf.xlu0  ;;  %v1397_v41 = vpop.trf.xlu1 }
  0xe0   : > { %392 = vperm.xlu0 %2548, %v294_v24   ;;  %2334 = vmatmul.mubr.msk.f32.gmra.mrb[24].mxu0 %vm1401_vm0, %v1365_v27  ;;  %v4689_v27 = vmov 0 }
  0xe1   : > { %582 = vperm.xlu1 %2549, %v529_v26   ;;  %1640 = vmatprep.mubr.f32.mxu0 %v2738_v12  ;;  %v4687_v26 = vmov 0 }
  0xe3   : > { %v1366_v31 = vpop.trf.xlu0  ;;  %v1398_v42 = vpop.trf.xlu1 }
  0xe4   : > { %585 = vperm.xlu0 %2548, %v530_v28   ;;  %2335 = vmatmul.mubr.msk.f32.gmra.mrb[26].mxu0 %vm1401_vm0, %v1366_v31 }
  0xe5   : > { %814 = vperm.xlu1 %2549, %v325_v29   ;;  %1646 = vmatprep.mubr.f32.mxu0 %v2738_v12  ;;  %v4691_v29 = vmov 0 }
  0xe7   : > { %v1367_v35 = vpop.trf.xlu0  ;;  %v1399_v43 = vpop.trf.xlu1 }
  0xe8   : > { %817 = vperm.xlu0 %2548, %v326_v32   ;;  %2336 = vmatmul.mubr.msk.f32.gmra.mrb[28].mxu0 %vm1401_vm0, %v1367_v35 }
  0xe9   : > { %1070 = vperm.xlu1 %2549, %v1017_v34   ;;  %1652 = vmatprep.mubr.f32.mxu0 %v2738_v12 }
  0xeb   : > { %v1368_v33 = vpop.trf.xlu0  ;;  %v1400_v44 = vpop.trf.xlu1 }
  0xec   : > { %1073 = vperm.xlu0 %2548, %v1018_v38   ;;  %2337 = vmatmul.mubr.msk.f32.gmra.mrb[30].mxu0 %vm1401_vm0, %v1368_v33  ;;  %v4707_v38 = vmov 0 }
  0xed   : > { %1658 = vmatprep.mubr.f32.mxu0 %v2738_v12 }
  0xf0   : > { %2338 = vmatmul.mubr.msk.f32.gmra.mrb[32].mxu0 %vm1401_vm0, %v2904_v48 }
  0xf1   : > { %1664 = vmatprep.mubr.f32.mxu0 %v2738_v12 }
  0xf4   : > { %2339 = vmatmul.mubr.msk.f32.gmra.mrb[34].mxu0 %vm1401_vm0, %v2912_v54 }
  0xf5   : > { %1670 = vmatprep.mubr.f32.mxu0 %v2738_v12 }
  0xf8   : > { %2340 = vmatmul.mubr.msk.f32.gmra.mrb[36].mxu0 %vm1401_vm0, %v2920_v59 }
  0xf9   : > { %1676 = vmatprep.mubr.f32.mxu0 %v2738_v12 }
  0xfc   : > { %2341 = vmatmul.mubr.msk.f32.gmra.mrb[38].mxu0 %vm1401_vm0, %v2930_v1 }
  0xfd   : > { %1682 = vmatprep.mubr.f32.mxu0 %v2738_v12 }
 0x100   : > { %2342 = vmatmul.mubr.msk.f32.gmra.mrb[40].mxu0 %vm1401_vm0, %v2940_v6  ;;  %v351_v6 = vshrl.u32 %v350_v4, 7 }
 0x101   : > { %1688 = vmatprep.mubr.f32.mxu0 %v2738_v12 }
 0x102   : > { %v3062_v11 = vsub.s32 0, %v351_v6 }
 0x104   : > { %2343 = vmatmul.mubr.msk.f32.gmra.mrb[42].mxu0 %vm1401_vm0, %v2950_v13  ;;  %4682 = vst [vmem:[#allocation3_spill] sm:$0xff] %v3062_v11  ;;  %v356_v13 = vsub.s32 1, %v351_v6  ;;  %v3067_v15 = vrot.slane %v348_v10, %v3062_v11  ;;  %v3081_v19 = vrot.slane %v349_v16, %v3062_v11 }
 0x105   : > { %1694 = vmatprep.mubr.f32.mxu0 %v2738_v12 }
 0x106   : > { %v3069_v17 = vrot.slane %v348_v10, %v356_v13  ;;  %v3086_v20 = vrot.slane %v349_v16, %v356_v13 }
 0x108   : > { %2344 = vmatmul.mubr.msk.f32.gmra.mrb[44].mxu0 %vm1401_vm0, %v1391_v18  ;;  %v3006_v45 = vpop.permute.xlu1 %362 }
 0x109   : > { %1700 = vmatprep.mubr.f32.mxu0 %v2738_v12  ;;  %vm456_vm5 = vcmp.ge.s32.totalorder %v3067_v15, %v3006_v45  ;;  %vm457_vm7 = vcmp.ge.s32.totalorder %v3069_v17, %v3006_v45 }
 0x10c   : > { %2345 = vmatmul.mubr.msk.f32.gmra.mrb[46].mxu0 %vm1401_vm0, %v1392_v25  ;;  %v3010_v46 = vpop.permute.xlu1 %365 }
 0x10d   : > { %1706 = vmatprep.mubr.f32.mxu0 %v2738_v12 }
 0x110   : > { %2346 = vmatmul.mubr.msk.f32.gmra.mrb[48].mxu0 %vm1401_vm0, %v1393_v30  ;;  %v3016_v47 = vpop.permute.xlu1 %368  ;;  %v4693_v30 = vmov 0 }
 0x111   : > { %1712 = vmatprep.mubr.f32.mxu0 %v2738_v12 }
 0x113   : > { %v360_v48 = vpop.permute.xlu0 %359 }
 0x114   : > { %2347 = vmatmul.mubr.msk.f32.gmra.mrb[50].mxu0 %vm1401_vm0, %v1394_v37  ;;  %v3020_v49 = vpop.permute.xlu1 %371  ;;  %vm454_vm1 = vcmp.ge.s32.totalorder %v3067_v15, %v360_v48  ;;  %vm455_vm3 = vcmp.ge.s32.totalorder %v3069_v17, %v360_v48 }
 0x115   : > { %1718 = vmatprep.mubr.f32.mxu0 %v2738_v12 }
 0x117   : > { %v3024_v50 = vpop.permute.xlu0 %374 }
 0x118   : > { %2348 = vmatmul.mubr.msk.f32.gmra.mrb[52].mxu0 %vm1401_vm0, %v1395_v39  ;;  %v3028_v51 = vpop.permute.xlu1 %377 }
 0x119   : > { %1724 = vmatprep.mubr.f32.mxu0 %v2738_v12 }
 0x11b   : > { %v3031_v52 = vpop.permute.xlu0 %380 }
 0x11c   : > { %2349 = vmatmul.mubr.msk.f32.gmra.mrb[54].mxu0 %vm1401_vm0, %v1396_v40  ;;  %v3033_v53 = vpop.permute.xlu1 %383 }
 0x11d   : > { %1730 = vmatprep.mubr.f32.mxu0 %v2738_v12 }
 0x11f   : > { %v3035_v54 = vpop.permute.xlu0 %386 }
 0x120   : > { %2350 = vmatmul.mubr.msk.f32.gmra.mrb[56].mxu0 %vm1401_vm0, %v1397_v41  ;;  %v3037_v55 = vpop.permute.xlu1 %389  ;;  %v4714_v41 = vmov 0 }
 0x121   : > { %1736 = vmatprep.mubr.f32.mxu0 %v2738_v12 }
 0x123   : > { %v553_v56 = vpop.permute.xlu0 %552 }
 0x124   : > { %2351 = vmatmul.mubr.msk.f32.gmra.mrb[58].mxu0 %vm1401_vm0, %v1398_v42  ;;  %v556_v57 = vpop.permute.xlu1 %555  ;;  %vm647_vm2 = vcmp.lt.s32.totalorder %v3067_v15, %v553_v56  ;;  %vm648_vm4 = vcmp.lt.s32.totalorder %v3069_v17, %v553_v56 }
 0x125   : > { %1742 = vmatprep.mubr.f32.mxu0 %v2738_v12  ;;  %vm649_vm6 = vcmp.lt.s32.totalorder %v3067_v15, %v556_v57  ;;  %vm650_vm8 = vcmp.lt.s32.totalorder %v3069_v17, %v556_v57  ;;  %vm711_vm9 = vmand %vm454_vm1, %vm647_vm2  ;;  %vm458_vm2 = vcmp.ge.s32.totalorder %v3067_v15, %v3010_v46 }
 0x126   : > { %vm712_vm11 = vmand %vm455_vm3, %vm648_vm4 }
 0x127   : > { %v785_v58 = vpop.permute.xlu0 %784  ;;  %vm713_vm13 = vmand %vm456_vm5, %vm649_vm6  ;;  %vm461_vm6 = vcmp.ge.s32.totalorder %v3069_v17, %v3016_v47 }
 0x128   : > { %2352 = vmatmul.mubr.msk.f32.gmra.mrb[60].mxu0 %vm1401_vm0, %v1399_v43  ;;  %v788_v59 = vpop.permute.xlu1 %787  ;;  %vm879_vm10 = vcmp.ge.s32.totalorder %v3081_v19, %v785_v58  ;;  %vm880_vm12 = vcmp.ge.s32.totalorder %v3086_v20, %v785_v58  ;;  %vm714_vm15 = vmand %vm457_vm7, %vm650_vm8 }
 0x129   : > { %1748 = vmatprep.mubr.f32.mxu0 %v2738_v12  ;;  %vm881_vm14 = vcmp.ge.s32.totalorder %v3081_v19, %v788_v59  ;;  %vm3096_vm1 = vmand %vm711_vm9, %vm879_vm10  ;;  %vm460_vm10 = vcmp.ge.s32.totalorder %v3067_v15, %v3016_v47  ;;  %v4678_v47 = vmov -1e+30  }
 0x12a   : > { %vm3104_vm5 = vmand %vm712_vm11, %vm880_vm12 }
 0x12b   : > { %v1041_v60 = vpop.permute.xlu0 %1040  ;;  %vm3114_vm9 = vmand %vm713_vm13, %vm881_vm14 }
 0x12c   : > { %2353 = vmatmul.mubr.msk.f32.gmra.mrb[62].mxu0 %vm1401_vm0, %v1400_v44  ;;  %v3039_v61 = vpop.permute.xlu1 %1043  ;;  %vm882_vm0 = vcmp.ge.s32.totalorder %v3086_v20, %v788_v59  ;;  %vm1135_vm4 = vcmp.lt.s32.totalorder %v3081_v19, %v1041_v60  ;;  %vm1136_vm8 = vcmp.lt.s32.totalorder %v3086_v20, %v1041_v60  ;;  %v4688_v26 = vsel %vm3114_vm9, 4294967295, %v4687_v26 }
 0x12d   : > { %vm3122_vm12 = vmand %vm714_vm15, %vm882_vm0 }
 0x12e   : > { %v4690_v27 = vsel %vm3122_vm12, 4294967295, %v4689_v27  ;;  %vm3134_vm13 = vmand %vm3096_vm1, %vm1135_vm4  ;;  %vm1137_vm1 = vcmp.lt.s32.totalorder %v3081_v19, %v3039_v61 }
 0x12f   : > { %v559_v12 = vpop.permute.xlu0 %558  ;;  %v4692_v29 = vsel %vm3134_vm13, 4294967295, %v4691_v29  ;;  %vm3147_vm0 = vmand %vm3104_vm5, %vm1136_vm8  ;;  %vm4696_vm13 = vcmp.ge.s32.totalorder %v3069_v17, %v3010_v46 }
 0x130   : > { %v3041_v62 = vpop.permute.xlu1 %561  ;;  %vm651_vm3 = vcmp.lt.s32.totalorder %v3067_v15, %v559_v12  ;;  %v4694_v30 = vsel %vm3147_vm0, 4294967295, %v4693_v30  ;;  %vm4695_vm4 = vcmp.lt.s32.totalorder %v3069_v17, %v559_v12 }
 0x131   : > { %vm653_vm11 = vcmp.lt.s32.totalorder %v3067_v15, %v3041_v62  ;;  %vm654_vm7 = vcmp.lt.s32.totalorder %v3069_v17, %v3041_v62  ;;  %vm715_vm14 = vmand %vm458_vm2, %vm651_vm3  ;;  %vm1138_vm3 = vcmp.lt.s32.totalorder %v3086_v20, %v3039_v61 }
 0x132   : > { %vm716_vm12 = vmand %vm4696_vm13, %vm4695_vm4  ;;  %vm4701_vm4 = vnez %v4688_v26 }
 0x133   : > { %v3043_v63 = vpop.permute.xlu0 %790  ;;  %vm3162_vm9 = vmand %vm460_vm10, %vm653_vm11  ;;  %vm4706_vm11 = vnez %v4690_v27 }
 0x134   : > { %v3045_v0 = vpop.permute.xlu1 %793  ;;  %vm883_vm15 = vcmp.ge.s32.totalorder %v3081_v19, %v3043_v63  ;;  %vm884_vm2 = vcmp.ge.s32.totalorder %v3086_v20, %v3043_v63  ;;  %vm3168_vm8 = vmand %vm461_vm6, %vm654_vm7 }
 0x135   : > { %vm885_vm5 = vcmp.ge.s32.totalorder %v3081_v19, %v3045_v0  ;;  %vm3178_vm0 = vmand %vm4701_vm4, %vm1137_vm1 }
 0x136   : > { %vm3182_vm10 = vmand %vm715_vm14, %vm883_vm15 }
 0x137   : > { %v3047_v1 = vpop.permute.xlu0 %1046  ;;  %vm3192_vm13 = vmand %vm4706_vm11, %vm1138_vm3  ;;  %vm4711_vm11 = vcmp.ge.s32.totalorder %v3086_v20, %v3045_v0 }
 0x138   : > { %v3049_v2 = vpop.permute.xlu1 %1049  ;;  %v4708_v38 = vsel %vm3192_vm13, 4294967295, %v4707_v38  ;;  %vm1139_vm1 = vcmp.lt.s32.totalorder %v3081_v19, %v3047_v1  ;;  %vm948_vm4 = vmand %vm716_vm12, %vm884_vm2  ;;  %vm1140_vm6 = vcmp.lt.s32.totalorder %v3086_v20, %v3047_v1  ;;  %vm464_vm12 = vcmp.ge.s32.totalorder %v3067_v15, %v3024_v50 }
 0x139   : > { %vm3211_vm3 = vmand %vm3162_vm9, %vm885_vm5  ;;  %v1265_v1 = vsel %vm3178_vm0, 0.0, %v4678_v47  ;;  %vm4747_vm0 = vnez %v4708_v38 }
 0x13a   : > { %vm3224_vm14 = vmand %vm3168_vm8, %vm4711_vm11  ;;  %vm4717_vm8 = vcmp.ge.s32.totalorder %v3067_v15, %v3020_v49  ;;  %v1266_v7 = vsel %vm4747_vm0, 0.0, %v4678_v47 }
 0x13b   : > { %v3051_v3 = vpop.permute.xlu0 %564  ;;  %vm3234_vm7 = vmand %vm3182_vm10, %vm1139_vm1  ;;  %vm1141_vm10 = vcmp.lt.s32.totalorder %v3081_v19, %v3049_v2  ;;  %vm4722_vm1 = vcmp.ge.s32.totalorder %v3069_v17, %v3020_v49 }
 0x13c   : > { %v3053_v5 = vpop.permute.xlu1 %567  ;;  %vm656_vm15 = vcmp.lt.s32.totalorder %v3069_v17, %v3051_v3  ;;  %v4715_v41 = vsel %vm3234_vm7, 4294967295, %v4714_v41  ;;  %vm4716_vm13 = vcmp.lt.s32.totalorder %v3067_v15, %v3051_v3  ;;  %vm3250_vm5 = vmand %vm948_vm4, %vm1140_vm6 }
 0x13d   : > { %vm657_vm2 = vcmp.lt.s32.totalorder %v3067_v15, %v3053_v5  ;;  %vm3244_vm11 = vmand %vm4717_vm8, %vm4716_vm13  ;;  %vm4729_vm13 = vcmp.ge.s32.totalorder %v3069_v17, %v3024_v50 }
 0x13e   : > { %vm3259_vm7 = vmand %vm4722_vm1, %vm656_vm15  ;;  %vm4727_vm15 = vnez %v4692_v29  ;;  %vm4728_vm1 = vcmp.lt.s32.totalorder %v3069_v17, %v3053_v5 }
 0x13f   : > { %v3058_v8 = vpop.permute.xlu0 %796  ;;  %vm3269_vm4 = vmand %vm464_vm12, %vm657_vm2  ;;  %v1263_v48 = vsel %vm4727_vm15, 0.0, %v4678_v47  ;;  %vm4732_vm2 = vnez %v4694_v30  ;;  %v1268_v30 = vsel %vm3250_vm5, 0.0, %v4678_v47 }
 0x140   : > { %v3060_v9 = vpop.permute.xlu1 %799  ;;  %vm887_vm9 = vcmp.ge.s32.totalorder %v3081_v19, %v3058_v8  ;;  %vm3284_vm6 = vmand %vm4729_vm13, %vm4728_vm1  ;;  %v1264_v59 = vsel %vm4732_vm2, 0.0, %v4678_v47  ;;  %vm4737_vm1 = vcmp.lt.s32.totalorder %v3086_v20, %v3049_v2 }
 0x141   : > { %vm889_vm8 = vcmp.ge.s32.totalorder %v3081_v19, %v3060_v9  ;;  %vm890_vm12 = vcmp.ge.s32.totalorder %v3086_v20, %v3060_v9  ;;  %vm3302_vm13 = vmand %vm3211_vm3, %vm1141_vm10 }
 0x142   : > { %vm3311_vm15 = vmand %vm3244_vm11, %vm887_vm9  ;;  %vm4740_vm9 = vcmp.ge.s32.totalorder %v3086_v20, %v3058_v8 }
 0x143   : > { %v3064_v14 = vpop.permute.xlu0 %1052  ;;  %vm3322_vm3 = vmand %vm3224_vm14, %vm4737_vm1  ;;  %vm466_vm1 = vcmp.ge.s32.totalorder %v3067_v15, %v3028_v51 }
 0x144   : > { %v3071_v18 = vpop.permute.xlu1 %1055  ;;  %vm1143_vm10 = vcmp.lt.s32.totalorder %v3081_v19, %v3064_v14  ;;  %vm3333_vm11 = vmand %vm3259_vm7, %vm4740_vm9  ;;  %vm1144_vm2 = vcmp.lt.s32.totalorder %v3086_v20, %v3064_v14  ;;  %v1270_v43 = vsel %vm3322_vm3, 0.0, %v4678_v47 }
 0x145   : > { %vm3344_vm14 = vmand %vm3269_vm4, %vm889_vm8  ;;  %vm1146_vm8 = vcmp.lt.s32.totalorder %v3086_v20, %v3071_v18 }
 0x146   : > { %vm3362_vm4 = vmand %vm3284_vm6, %vm890_vm12 }
 0x147   : > { %v3088_v21 = vpop.permute.xlu0 %570  ;;  %vm3382_vm6 = vmand %vm3311_vm15, %vm1143_vm10  ;;  %vm1145_vm15 = vcmp.lt.s32.totalorder %v3081_v19, %v3071_v18  ;;  %vm4754_vm10 = vnez %v4715_v41 }
 0x148   : > { %v3092_v22 = vpop.permute.xlu1 %573  ;;  %vm659_vm7 = vcmp.lt.s32.totalorder %v3067_v15, %v3088_v21  ;;  %vm660_vm9 = vcmp.lt.s32.totalorder %v3069_v17, %v3088_v21  ;;  %vm3397_vm0 = vmand %vm3333_vm11, %vm1144_vm2  ;;  %v1267_v23 = vsel %vm4754_vm10, 0.0, %v4678_v47 }
 0x149   : > { %vm662_vm12 = vcmp.lt.s32.totalorder %v3069_v17, %v3092_v22  ;;  %vm3417_vm11 = vmand %vm466_vm1, %vm659_vm7  ;;  %vm4755_vm1 = vcmp.ge.s32.totalorder %v3069_v17, %v3028_v51  ;;  %v1272_v61 = vsel %vm3397_vm0, 0.0, %v4678_v47 }
 0x14a   : > { %vm3434_vm7 = vmand %vm4755_vm1, %vm660_vm9  ;;  %vm4760_vm9 = vcmp.lt.s32.totalorder %v3067_v15, %v3092_v22  ;;  %vm4761_vm1 = vcmp.ge.s32.totalorder %v3067_v15, %v3031_v52 }
 0x14b   : > { %v3111_v25 = vpop.permute.xlu0 %802  ;;  %vm3450_vm10 = vmand %vm3344_vm14, %vm1145_vm15  ;;  %vm4766_vm15 = vcmp.ge.s32.totalorder %v3069_v17, %v3031_v52  ;;  %v1269_v52 = vsel %vm3302_vm13, 0.0, %v4678_v47 }
 0x14c   : > { %v3130_v28 = vpop.permute.xlu1 %805  ;;  %vm3460_vm2 = vmand %vm4761_vm1, %vm4760_vm9 }
 0x14d   : > { %vm893_vm5 = vcmp.ge.s32.totalorder %v3081_v19, %v3130_v28  ;;  %vm3473_vm14 = vmand %vm3362_vm4, %vm1146_vm8  ;;  %vm894_vm1 = vcmp.ge.s32.totalorder %v3086_v20, %v3130_v28  ;;  %vm4769_vm4 = vcmp.ge.s32.totalorder %v3081_v19, %v3111_v25  ;;  %v1271_v28 = vsel %vm3382_vm6, 0.0, %v4678_v47 }
 0x14e   : > { %vm3483_vm9 = vmand %vm4766_vm15, %vm662_vm12  ;;  %vm4772_vm15 = vcmp.ge.s32.totalorder %v3086_v20, %v3111_v25  ;;  %v1274_v9 = vsel %vm3473_vm14, 0.0, %v4678_v47 }
 0x14f   : > { %v3174_v34 = vpop.permute.xlu0 %1058  ;;  %vm3496_vm8 = vmand %vm3417_vm11, %vm4769_vm4 }
 0x150   : > { %v3202_v33 = vpop.permute.xlu1 %1061  ;;  %vm1147_vm12 = vcmp.lt.s32.totalorder %v3081_v19, %v3174_v34  ;;  %vm3512_vm11 = vmand %vm3434_vm7, %vm4772_vm15  ;;  %vm1148_vm13 = vcmp.lt.s32.totalorder %v3086_v20, %v3174_v34 }
 0x151   : > { %vm3530_vm7 = vmand %vm3460_vm2, %vm893_vm5  ;;  %vm1149_vm4 = vcmp.lt.s32.totalorder %v3081_v19, %v3202_v33  ;;  %vm1150_vm5 = vcmp.lt.s32.totalorder %v3086_v20, %v3202_v33 }
 0x152   : > { %vm3543_vm3 = vmand %vm3483_vm9, %vm894_vm1 }
 0x153   : > { %v3265_v45 = vpop.permute.xlu0 %576  ;;  %vm3549_vm2 = vmand %vm3496_vm8, %vm1147_vm12  ;;  %vm470_vm8 = vcmp.ge.s32.totalorder %v3067_v15, %v3033_v53 }
 0x154   : > { %v3290_v57 = vpop.permute.xlu1 %579  ;;  %vm663_vm15 = vcmp.lt.s32.totalorder %v3067_v15, %v3265_v45  ;;  %vm3564_vm9 = vmand %vm3512_vm11, %vm1148_vm13  ;;  %vm664_vm1 = vcmp.lt.s32.totalorder %v3069_v17, %v3265_v45  ;;  %vm471_vm13 = vcmp.ge.s32.totalorder %v3069_v17, %v3033_v53  ;;  %v1273_v53 = vsel %vm3450_vm10, 0.0, %v4678_v47 }
 0x155   : > { %vm3579_vm6 = vmand %vm3530_vm7, %vm1149_vm4  ;;  %vm665_vm11 = vcmp.lt.s32.totalorder %v3067_v15, %v3290_v57  ;;  %vm473_vm7 = vcmp.ge.s32.totalorder %v3069_v17, %v3035_v54  ;;  %vm666_vm4 = vcmp.lt.s32.totalorder %v3069_v17, %v3290_v57  ;;  %vm4791_vm10 = vcmp.ge.s32.totalorder %v3067_v15, %v3035_v54 }
 0x156   : > { %vm3596_vm0 = vmand %vm3543_vm3, %vm1150_vm5  ;;  %v1275_v54 = vsel %vm3549_vm2, 0.0, %v4678_v47  ;;  %v1276_v21 = vsel %vm3564_vm9, 0.0, %v4678_v47 }
 0x157   : > { %v3370_v5 = vpop.permute.xlu0 %808  ;;  %vm3609_vm12 = vmand %vm470_vm8, %vm663_vm15 }
 0x158   : > { %v3407_v16 = vpop.permute.xlu1 %811  ;;  %vm895_vm3 = vcmp.ge.s32.totalorder %v3081_v19, %v3370_v5  ;;  %vm3623_vm5 = vmand %vm471_vm13, %vm664_vm1  ;;  %vm896_vm15 = vcmp.ge.s32.totalorder %v3086_v20, %v3370_v5 }
 0x159   : > { %vm3640_vm1 = vmand %vm4791_vm10, %vm665_vm11  ;;  %vm897_vm8 = vcmp.ge.s32.totalorder %v3081_v19, %v3407_v16  ;;  %vm898_vm11 = vcmp.ge.s32.totalorder %v3086_v20, %v3407_v16  ;;  %v1277_v16 = vsel %vm3579_vm6, 0.0, %v4678_v47 }
 0x15a   : > { %vm3654_vm14 = vmand %vm473_vm7, %vm666_vm4 }
 0x15b   : > { %v3489_v18 = vpop.permute.xlu0 %1064  ;;  %vm3665_vm13 = vmand %vm3609_vm12, %vm895_vm3 }
 0x15c   : > { %v3516_v41 = vpop.permute.xlu1 %1067  ;;  %vm1151_vm7 = vcmp.lt.s32.totalorder %v3081_v19, %v3489_v18  ;;  %vm3681_vm12 = vmand %vm3623_vm5, %vm896_vm15  ;;  %vm1152_vm2 = vcmp.lt.s32.totalorder %v3086_v20, %v3489_v18 }
 0x15d   : > { %vm3697_vm4 = vmand %vm3640_vm1, %vm897_vm8  ;;  %vm1153_vm3 = vcmp.lt.s32.totalorder %v3081_v19, %v3516_v41  ;;  %vm1154_vm15 = vcmp.lt.s32.totalorder %v3086_v20, %v3516_v41 }
 0x15e   : > { %vm3710_vm9 = vmand %vm3654_vm14, %vm898_vm11  ;;  %vm474_vm14 = vcmp.ge.s32.totalorder %v3067_v15, %v3037_v55 }
 0x15f   : > { %vm3716_vm5 = vmand %vm3665_vm13, %vm1151_vm7  ;;  %vm475_vm13 = vcmp.ge.s32.totalorder %v3069_v17, %v3037_v55 }
 0x160   : > { %vm3730_vm1 = vmand %vm3681_vm12, %vm1152_vm2  ;;  %v1279_v41 = vsel %vm3716_vm5, 0.0, %v4678_v47 }
 0x161   : > { %vm3742_vm6 = vmand %vm3697_vm4, %vm1153_vm3 }
 0x183   : > { %v1564_v49 = vpop.f32.mrb[0].mxu0 }
 0x184   : > { %v3292_v58 = vadd.f32 %v1564_v49, %v1263_v48  ;;  %v1566_v60 = vpop.f32.mrb[1].mxu0 }
 0x185   : > { %v3315_v12 = vadd.f32 %v1566_v60, %v1264_v59  ;;  %v3570_v60 = vpop.permute.xlu0 %392 }
 0x186   : > { %vm476_vm2 = vcmp.ge.s32.totalorder %v3067_v15, %v3570_v60 }
 0x187   : > { %v1570_v2 = vpop.f32.mrb[2].mxu0  ;;  %v1755_v3 = vmax.f32 %v3292_v58, %v3315_v12 }
 0x188   : > { %v3372_v6 = vadd.f32 %v1570_v2, %v1265_v1  ;;  %v1572_v8 = vpop.f32.mrb[3].mxu0  ;;  %v583_v2 = vpop.permute.xlu1 %582 }
 0x189   : > { %v3390_v10 = vadd.f32 %v1572_v8, %v1266_v7  ;;  %1756 = vmax.xlane.f32.xlu1 %v1755_v3  ;;  %vm667_vm10 = vcmp.lt.s32.totalorder %v3067_v15, %v583_v2  ;;  %vm668_vm8 = vcmp.lt.s32.totalorder %v3069_v17, %v583_v2 }
 0x18a   : > { %vm731_vm12 = vmand %vm474_vm14, %vm667_vm10 }
 0x18b   : > { %v1576_v24 = vpop.f32.mrb[4].mxu0  ;;  %v1758_v26 = vmax.f32 %v3372_v6, %v3390_v10  ;;  %vm732_vm3 = vmand %vm475_vm13, %vm668_vm8 }
 0x18c   : > { %v3440_v29 = vadd.f32 %v1576_v24, %v1267_v23  ;;  %v1578_v31 = vpop.f32.mrb[5].mxu0  ;;  %v586_v24 = vpop.permute.xlu0 %585 }
 0x18d   : > { %v3466_v32 = vadd.f32 %v1578_v31, %v1268_v30  ;;  %1759 = vmax.xlane.f32.xlu0 %v1758_v26  ;;  %v815_v31 = vpop.permute.xlu1 %814  ;;  %vm669_vm11 = vcmp.lt.s32.totalorder %v3067_v15, %v586_v24 }
 0x18e   : > { %vm899_vm7 = vcmp.ge.s32.totalorder %v3081_v19, %v815_v31  ;;  %vm900_vm4 = vcmp.ge.s32.totalorder %v3086_v20, %v815_v31 }
 0x18f   : > { %v1582_v22 = vpop.f32.mrb[6].mxu0  ;;  %v1761_v39 = vmax.f32 %v3440_v29, %v3466_v32  ;;  %vm3791_vm5 = vmand %vm731_vm12, %vm899_vm7 }
 0x190   : > { %v3518_v42 = vadd.f32 %v1582_v22, %v1269_v52  ;;  %v1584_v44 = vpop.f32.mrb[7].mxu0  ;;  %v818_v40 = vpop.permute.xlu0 %817  ;;  %vm964_vm8 = vmand %vm732_vm3, %vm900_vm4 }
 0x191   : > { %v3534_v46 = vadd.f32 %v1584_v44, %v1270_v43  ;;  %1762 = vmax.xlane.f32.xlu1 %v1761_v39  ;;  %v1278_v44 = vsel %vm3596_vm0, 0.0, %v4678_v47  ;;  %vm3756_vm0 = vmand %vm3710_vm9, %vm1154_vm15  ;;  %vm670_vm9 = vcmp.lt.s32.totalorder %v3069_v17, %v586_v24  ;;  %vm902_vm7 = vcmp.ge.s32.totalorder %v3086_v20, %v818_v40 }
 0x192   : > { %vm3783_vm15 = vmand %vm476_vm2, %vm669_vm11  ;;  %vm901_vm11 = vcmp.ge.s32.totalorder %v3081_v19, %v818_v40 }
 0x193   : > { %v1588_v49 = vpop.f32.mrb[8].mxu0  ;;  %v1764_v56 = vmax.f32 %v3518_v42, %v3534_v46  ;;  %vm965_vm4 = vmand %vm3783_vm15, %vm901_vm11 }
 0x194   : > { %v3572_v50 = vadd.f32 %v1588_v49, %v1271_v28  ;;  %v1590_v62 = vpop.f32.mrb[9].mxu0  ;;  %v1071_v49 = vpop.permute.xlu1 %1070 }
 0x195   : > { %v3589_v0 = vadd.f32 %v1590_v62, %v1272_v61  ;;  %1765 = vmax.xlane.f32.xlu0 %v1764_v56  ;;  %v1280_v61 = vsel %vm3730_vm1, 0.0, %v4678_v47  ;;  %vm1155_vm10 = vcmp.lt.s32.totalorder %v3081_v19, %v1071_v49  ;;  %vm477_vm1 = vcmp.ge.s32.totalorder %v3069_v17, %v3570_v60  ;;  %v1074_v33 = vpop.permute.xlu0 %1073 }
 0x196   : > { %vm1156_vm14 = vcmp.lt.s32.totalorder %v3086_v20, %v1071_v49  ;;  %vm3809_vm13 = vmand %vm477_vm1, %vm670_vm9  ;;  %vm1157_vm2 = vcmp.lt.s32.totalorder %v3081_v19, %v1074_v33  ;;  %vm1158_vm3 = vcmp.lt.s32.totalorder %v3086_v20, %v1074_v33 }
 0x197   : > { %v1594_v3 = vpop.f32.mrb[10].mxu0  ;;  %v1767_v4 = vmax.f32 %v3572_v50, %v3589_v0  ;;  %vm1220_vm12 = vmand %vm964_vm8, %vm1156_vm14 }
 0x198   : > { %v3629_v8 = vadd.f32 %v1594_v3, %v1273_v53  ;;  %v1596_v13 = vpop.f32.mrb[11].mxu0  ;;  %v1281_v53 = vsel %vm3742_vm6, 0.0, %v4678_v47  ;;  %vm1219_vm6 = vmand %vm3791_vm5, %vm1155_vm10 }
 0x199   : > { %v3646_v14 = vadd.f32 %v1596_v13, %v1274_v9  ;;  %1768 = vmax.xlane.f32.xlu1 %v1767_v4  ;;  %v1282_v9 = vsel %vm3756_vm0, 0.0, %v4678_v47  ;;  %v1283_v23 = vsel %vm1219_vm6, 0.0, %v4678_v47  ;;  %vm966_vm0 = vmand %vm3809_vm13, %vm902_vm7 }
 0x19a   : > { %vm1221_vm9 = vmand %vm965_vm4, %vm1157_vm2 }
 0x19b   : > { %v1600_v57 = vpop.f32.mrb[12].mxu0  ;;  %v1770_v27 = vmax.f32 %v3629_v8, %v3646_v14  ;;  %vm1222_vm15 = vmand %vm966_vm0, %vm1158_vm3  ;;  %v1285_v31 = vsel %vm1221_vm9, 0.0, %v4678_v47 }
 0x19c   : > { %v3685_v51 = vadd.f32 %v1600_v57, %v1275_v54  ;;  %v1602_v35 = vpop.f32.mrb[13].mxu0  ;;  %v1284_v57 = vsel %vm1220_vm12, 0.0, %v4678_v47  ;;  %v1286_v18 = vsel %vm1222_vm15, 0.0, %v4678_v47  ;;  %v268_v47 = vld [vmem:[%s2840_s24 + $0x88] sm:$0xff] }
 0x19d   : > { %v3701_v37 = vadd.f32 %v1602_v35, %v1276_v21  ;;  %1771 = vmax.xlane.f32.xlu0 %v1770_v27 }
 0x19f   : > { %v1606_v52 = vpop.f32.mrb[14].mxu0  ;;  %v1773_v22 = vmax.f32 %v3685_v51, %v3701_v37 }
 0x1a0   : > { %v3735_v43 = vadd.f32 %v1606_v52, %v1277_v16  ;;  %v1608_v25 = vpop.f32.mrb[15].mxu0 }
 0x1a1   : > { %v3749_v48 = vadd.f32 %v1608_v25, %v1278_v44  ;;  %1774 = vmax.xlane.f32.xlu1 %v1773_v22  ;;  %v263_v25 = vld [vmem:[%s2840_s24 + $0x60] sm:$0xff] }
 0x1a2   : > { %v295_v49 = vshra.s32 %v263_v25, 16  ;;  %v327_v2 = vand.u32 65535, %v263_v25 }
 0x1a3   : > { %v1612_v56 = vpop.f32.mrb[16].mxu0  ;;  %v1776_v59 = vmax.f32 %v3735_v43, %v3749_v48 }
 0x1a4   : > { %v3776_v55 = vadd.f32 %v1612_v56, %v1279_v41  ;;  %v1614_v62 = vpop.f32.mrb[17].mxu0 }
 0x1a5   : > { %v3787_v1 = vadd.f32 %v1614_v62, %v1280_v61  ;;  %1777 = vmax.xlane.f32.xlu0 %v1776_v59  ;;  %v531_v59 = vadd.s32 %v2888_v36, %v295_v49  ;;  %v264_v62 = vld [vmem:[%s2840_s24 + $0x68] sm:$0xff] }
 0x1a6   : > { %v296_v33 = vshra.s32 %v264_v62, 16 }
 0x1a7   : > { %v1618_v3 = vpop.f32.mrb[18].mxu0  ;;  %v1779_v4 = vmax.f32 %v3776_v55, %v3787_v1 }
 0x1a8   : > { %v3814_v7 = vadd.f32 %v1618_v3, %v1281_v53  ;;  %v1620_v13 = vpop.f32.mrb[19].mxu0  ;;  %v532_v60 = vadd.s32 %v2888_v36, %v296_v33 }
 0x1a9   : > { %v3821_v45 = vadd.f32 %v1620_v13, %v1282_v9  ;;  %1780 = vmax.xlane.f32.xlu1 %v1779_v4  ;;  %v1019_v4 = vadd.s32 %v2888_v36, %v327_v2  ;;  %v265_v9 = vld [vmem:[%s2840_s24 + $0x70] sm:$0xff] }
 0x1ab   : > { %v1624_v24 = vpop.f32.mrb[20].mxu0  ;;  %v1782_v26 = vmax.f32 %v3814_v7, %v3821_v45 }
 0x1ac   : > { %v3832_v54 = vadd.f32 %v1624_v24, %v1283_v23  ;;  %v1626_v27 = vpop.f32.mrb[21].mxu0  ;;  %v297_v24 = vshra.s32 %v265_v9, 16 }
 0x1ad   : > { %v3835_v30 = vadd.f32 %v1626_v27, %v1284_v57  ;;  %1783 = vmax.xlane.f32.xlu0 %v1782_v26  ;;  %v328_v26 = vand.u32 65535, %v264_v62 }
 0x1af   : > { %v1630_v21 = vpop.f32.mrb[22].mxu0  ;;  %v1785_v35 = vmax.f32 %v3832_v54, %v3835_v30 }
 0x1b0   : > { %v3840_v5 = vadd.f32 %v1630_v21, %v1285_v31  ;;  %v1632_v38 = vpop.f32.mrb[23].mxu0  ;;  %v533_v31 = vadd.s32 %v2888_v36, %v297_v24  ;;  %v1020_v21 = vadd.s32 %v2888_v36, %v328_v26 }
 0x1b1   : > { %v3843_v16 = vadd.f32 %v1632_v38, %v1286_v18  ;;  %1786 = vmax.xlane.f32.xlu1 %v1785_v35  ;;  %v266_v18 = vld [vmem:[%s2840_s24 + $0x78] sm:$0xff] }
 0x1b2   : > { %v298_v25 = vshra.s32 %v266_v18, 16 }
 0x1b3   : > { %v1788_v52 = vmax.f32 %v3840_v5, %v3843_v16  ;;  %v3847_v22 = vpop.f32.mrb[24].mxu0 }
 0x1b4   : > { %v3849_v39 = vpop.f32.mrb[25].mxu0 }
 0x1b5   : > { %1789 = vmax.xlane.f32.xlu0 %v1788_v52  ;;  %v329_v52 = vand.u32 65535, %v265_v9 }
 0x1b7   : > { %v3851_v40 = vpop.f32.mrb[26].mxu0  ;;  %v1021_v62 = vadd.s32 %v2888_v36, %v329_v52 }
 0x1b8   : > { %v3853_v44 = vpop.f32.mrb[27].mxu0 }
 0x1bb   : > { %v3856_v34 = vpop.f32.mrb[28].mxu0 }
 0x1bc   : > { %v3858_v28 = vpop.f32.mrb[29].mxu0 }
 0x1bf   : > { %v3860_v41 = vpop.f32.mrb[30].mxu0 }
 0x1c0   : > { %v3862_v56 = vpop.f32.mrb[31].mxu0 }
 0x1c2   : > { %395 = vperm.xlu1 %2549, %v295_v49  }
 0x1c3   : > { %v3865_v61 = vpop.f32.mrb[32].mxu0 }
 0x1c4   : > { %v3868_v63 = vpop.f32.mrb[33].mxu0 }
 0x1c6   : > { %588 = vperm.xlu1 %2549, %v531_v59  }
 0x1c7   : > { %v3870_v53 = vpop.f32.mrb[34].mxu0 }
 0x1c8   : > { %v3872_v3 = vpop.f32.mrb[35].mxu0 }
 0x1ca   : > { %820 = vperm.xlu1 %2549, %v327_v2   ;;  %v534_v2 = vadd.s32 %v2888_v36, %v298_v25 }
 0x1cb   : > { %398 = vperm.xlu0 %2548, %v296_v33   ;;  %v3877_v13 = vpop.f32.mrb[36].mxu0  ;;  %v267_v33 = vld [vmem:[%s2840_s24 + $0x80] sm:$0xff] }
 0x1cc   : > { %v3879_v23 = vpop.f32.mrb[37].mxu0  ;;  %v299_v9 = vshra.s32 %v267_v33, 16 }
 0x1ce   : > { %1076 = vperm.xlu1 %2549, %v1019_v4  }
 0x1cf   : > { %591 = vperm.xlu0 %2548, %v532_v60   ;;  %v3881_v57 = vpop.f32.mrb[38].mxu0 }
 0x1d0   : > { %v3883_v27 = vpop.f32.mrb[39].mxu0 }
 0x1d2   : > { %401 = vperm.xlu1 %2549, %v297_v24   ;;  %v330_v24 = vand.u32 65535, %v266_v18  ;;  %v300_v18 = vshra.s32 %v268_v47, 16 }
 0x1d3   : > { %823 = vperm.xlu0 %2548, %v328_v26   ;;  %v3887_v35 = vpop.f32.mrb[40].mxu0 }
 0x1d4   : > { %v3890_v38 = vpop.f32.mrb[41].mxu0 }
 0x1d6   : > { %594 = vperm.xlu1 %2549, %v533_v31  }
 0x1d7   : > { %1079 = vperm.xlu0 %2548, %v1020_v21   ;;  %v3892_v49 = vpop.f32.mrb[42].mxu0  ;;  %v535_v21 = vadd.s32 %v2888_v36, %v299_v9 }
 0x1d8   : > { %4818 = vst [vmem:[#allocation4_spill] sm:$0xff] %v3892_v49  ;;  %v3894_v59 = vpop.f32.mrb[43].mxu0 }
 0x1d9   : > { %4819 = vst [vmem:[#allocation5_spill] sm:$0xff] %v3894_v59 }
 0x1da   : > { %826 = vperm.xlu1 %2549, %v329_v52   ;;  %v1022_v52 = vadd.s32 %v2888_v36, %v330_v24 }
 0x1db   : > { %404 = vperm.xlu0 %2548, %v298_v25   ;;  %v3899_v4 = vpop.f32.mrb[44].mxu0 }
 0x1dc   : > { %4820 = vst [vmem:[#allocation6_spill] sm:$0xff] %v3899_v4  ;;  %v3901_v60 = vpop.f32.mrb[45].mxu0 }
 0x1dd   : > { %4821 = vst [vmem:[#allocation7_spill] sm:$0xff] %v3901_v60 }
 0x1de   : > { %1082 = vperm.xlu1 %2549, %v1021_v62   ;;  %v331_v62 = vand.u32 65535, %v267_v33 }
 0x1df   : > { %597 = vperm.xlu0 %2548, %v534_v2   ;;  %v3903_v26 = vpop.f32.mrb[46].mxu0 }
 0x1e0   : > { %4822 = vst [vmem:[#allocation8_spill] sm:$0xff] %v3903_v26  ;;  %v3905_v31 = vpop.f32.mrb[47].mxu0 }
 0x1e1   : > { %4823 = vst [vmem:[#allocation9_spill] sm:$0xff] %v3905_v31  ;;  %v269_v31 = vld [vmem:[%s2840_s24 + $0x90] sm:$0xff] }
 0x1e2   : > { %407 = vperm.xlu1 %2549, %v299_v9   ;;  %v1023_v9 = vadd.s32 %v2888_v36, %v331_v62  ;;  %v301_v33 = vshra.s32 %v269_v31, 16 }
 0x1e3   : > { %829 = vperm.xlu0 %2548, %v330_v24   ;;  %v3909_v25 = vpop.f32.mrb[48].mxu0  ;;  %v536_v24 = vadd.s32 %v2888_v36, %v300_v18 }
 0x1e4   : > { %4824 = vst [vmem:[#allocation10_spill] sm:$0xff] %v3909_v25  ;;  %v3912_v11 = vpop.f32.mrb[49].mxu0 }
 0x1e5   : > { %4825 = vst [vmem:[#allocation11_spill] sm:$0xff] %v3912_v11  ;;  %v271_v11 = vld [vmem:[%s2840_s24 + $0xa0] sm:$0xff] }
 0x1e6   : > { %600 = vperm.xlu1 %2549, %v535_v21   ;;  %v332_v21 = vand.u32 65535, %v268_v47 }
 0x1e7   : > { %1085 = vperm.xlu0 %2548, %v1022_v52   ;;  %v3914_v2 = vpop.f32.mrb[50].mxu0 }
 0x1e8   : > { %4826 = vst [vmem:[#allocation12_spill] sm:$0xff] %v3914_v2  ;;  %v3916_v26 = vpop.f32.mrb[51].mxu0 }
 0x1e9   : > { %4827 = vst [vmem:[#allocation13_spill] sm:$0xff] %v3916_v26 }
 0x1ea   : > { %832 = vperm.xlu1 %2549, %v331_v62   ;;  %v537_v62 = vadd.s32 %v2888_v36, %v301_v33 }
 0x1eb   : > { %410 = vperm.xlu0 %2548, %v300_v18   ;;  %v3921_v25 = vpop.f32.mrb[52].mxu0  ;;  %v1024_v18 = vadd.s32 %v2888_v36, %v332_v21 }
 0x1ec   : > { %4828 = vst [vmem:[#allocation14_spill] sm:$0xff] %v3921_v25  ;;  %v3923_v60 = vpop.f32.mrb[53].mxu0  ;;  %v270_v25 = vld [vmem:[%s2840_s24 + $0x98] sm:$0xff] }
 0x1ed   : > { %4829 = vst [vmem:[#allocation15_spill] sm:$0xff] %v3923_v60  ;;  %v302_v47 = vshra.s32 %v270_v25, 16 }
 0x1ee   : > { %1088 = vperm.xlu1 %2549, %v1023_v9   ;;  %v333_v9 = vand.u32 65535, %v269_v31 }
 0x1ef   : > { %603 = vperm.xlu0 %2548, %v536_v24   ;;  %v3925_v52 = vpop.f32.mrb[54].mxu0 }
 0x1f0   : > { %4830 = vst [vmem:[#allocation16_spill] sm:$0xff] %v3925_v52  ;;  %v3927_v2 = vpop.f32.mrb[55].mxu0  ;;  %v538_v52 = vadd.s32 %v2888_v36, %v302_v47 }
 0x1f1   : > { %4831 = vst [vmem:[#allocation17_spill] sm:$0xff] %v3927_v2 }
 0x1f2   : > { %413 = vperm.xlu1 %2549, %v301_v33   ;;  %v1025_v33 = vadd.s32 %v2888_v36, %v333_v9 }
 0x1f3   : > { %835 = vperm.xlu0 %2548, %v332_v21   ;;  %v3931_v26 = vpop.f32.mrb[56].mxu0  ;;  %v272_v21 = vld [vmem:[%s2840_s24 + $0xa8] sm:$0xff] }
 0x1f4   : > { %4832 = vst [vmem:[#allocation18_spill] sm:$0xff] %v3931_v26  ;;  %v3934_v60 = vpop.f32.mrb[57].mxu0  ;;  %v304_v31 = vshra.s32 %v272_v21, 16 }
 0x1f5   : > { %4833 = vst [vmem:[#allocation19_spill] sm:$0xff] %v3934_v60  ;;  %v336_v60 = vand.u32 65535, %v272_v21 }
 0x1f6   : > { %606 = vperm.xlu1 %2549, %v537_v62   ;;  %v303_v62 = vshra.s32 %v271_v11, 16 }
 0x1f7   : > { %1091 = vperm.xlu0 %2548, %v1024_v18   ;;  %v3936_v24 = vpop.f32.mrb[58].mxu0  ;;  %v334_v18 = vand.u32 65535, %v270_v25  ;;  %v274_v25 = vld [vmem:[%s2840_s24 + $0xb8] sm:$0xff] }
 0x1f8   : > { %4834 = vst [vmem:[#allocation20_spill] sm:$0xff] %v3936_v24  ;;  %v3938_v2 = vpop.f32.mrb[59].mxu0 }
 0x1f9   : > { %4835 = vst [vmem:[#allocation21_spill] sm:$0xff] %v3938_v2 }
 0x1fa   : > { %838 = vperm.xlu1 %2549, %v333_v9   ;;  %v539_v9 = vadd.s32 %v2888_v36, %v303_v62 }
 0x1fb   : > { %416 = vperm.xlu0 %2548, %v302_v47   ;;  %v3944_v26 = vpop.f32.mrb[60].mxu0  ;;  %v1026_v47 = vadd.s32 %v2888_v36, %v334_v18 }
 0x1fc   : > { %4836 = vst [vmem:[#allocation22_spill] sm:$0xff] %v3944_v26  ;;  %v3946_v4 = vpop.f32.mrb[61].mxu0  ;;  %v335_v26 = vand.u32 65535, %v271_v11  ;;  %v1028_v11 = vadd.s32 %v2888_v36, %v336_v60 }
 0x1fd   : > { %4837 = vst [vmem:[#allocation23_spill] sm:$0xff] %v3946_v4  ;;  %v273_v4 = vld [vmem:[%s2840_s24 + $0xb0] sm:$0xff] }
 0x1fe   : > { %1094 = vperm.xlu1 %2549, %v1025_v33   ;;  %v1027_v33 = vadd.s32 %v2888_v36, %v335_v26 }
 0x1ff   : > { %609 = vperm.xlu0 %2548, %v538_v52   ;;  %v3948_v2 = vpop.f32.mrb[62].mxu0  ;;  %v540_v52 = vadd.s32 %v2888_v36, %v304_v31 }
 0x200   : > { %4838 = vst [vmem:[#allocation24_spill] sm:$0xff] %v3948_v2  ;;  %v3950_v24 = vpop.f32.mrb[63].mxu0  ;;  %v306_v2 = vshra.s32 %v274_v25, 16 }
 0x201   : > { %4839 = vst [vmem:[#allocation25_spill] sm:$0xff] %v3950_v24  ;;  %v305_v24 = vshra.s32 %v273_v4, 16 }
 0x202   : > { %422 = vperm.xlu1 %2549, %v304_v31   ;;  %v542_v49 = vadd.s32 %v2888_v36, %v306_v2 }
 0x203   : > { %841 = vperm.xlu0 %2548, %v334_v18   ;;  %v541_v59 = vadd.s32 %v2888_v36, %v305_v24 }
 0x206   : > { %612 = vperm.xlu1 %2549, %v539_v9  }
 0x207   : > { %1097 = vperm.xlu0 %2548, %v1026_v47  }
 0x20a   : > { %844 = vperm.xlu1 %2549, %v335_v26   ;;  %v337_v26 = vand.u32 65535, %v273_v4  ;;  %v275_v4 = vld [vmem:[%s2840_s24 + $0xc0] sm:$0xff] }
 0x20b   : > { %419 = vperm.xlu0 %2548, %v303_v62  }
 0x20e   : > { %1100 = vperm.xlu1 %2549, %v1027_v33   ;;  %v1029_v33 = vadd.s32 %v2888_v36, %v337_v26 }
 0x20f   : > { %615 = vperm.xlu0 %2548, %v540_v52  }
 0x212   : > { %428 = vperm.xlu1 %2549, %v306_v2  }
 0x213   : > { %847 = vperm.xlu0 %2548, %v336_v60  }
 0x216   : > { %v1757_v18 = vpop.xlane.xlu1 %1756  ;;  %618 = vperm.xlu1 %2549, %v541_v59   ;;  %v3967_v59 = vld [vmem:[%s2840_s24 + $0xc8] sm:$0xff] }
 0x217   : > { %v1851_v31 = vsub.f32 %v3292_v58, %v1757_v18  ;;  %v1852_v62 = vsub.f32 %v3315_v12, %v1757_v18  ;;  %1103 = vperm.xlu0 %2548, %v1028_v11   ;;  %v308_v18 = vshra.s32 %v3967_v59, 16 }
 0x219   : > { %v1915_v9 = vmul.f32 1.442695, %v1851_v31  ;;  %v1917_v47 = vmul.f32 1.442695, %v1852_v62  ;;  %v307_v31 = vshra.s32 %v275_v4, 16 }
 0x21a   : > { %850 = vperm.xlu1 %2549, %v337_v26   ;;  %v1760_v21 = vpop.xlane.xlu0 %1759 }
 0x21b   : > { %v1853_v52 = vsub.f32 %v3372_v6, %v1760_v21  ;;  %v1854_v60 = vsub.f32 %v3390_v10, %v1760_v21  ;;  %425 = vperm.xlu0 %2548, %v305_v24   ;;  %2550 = vpow2.f32 %v1915_v9  ;;  %v338_v24 = vand.u32 65535, %v274_v25 }
 0x21c   : > { %2552 = vpow2.f32 %v1917_v47  ;;  %v543_v9 = vadd.s32 %v2888_v36, %v307_v31 }
 0x21d   : > { %v1919_v58 = vmul.f32 1.442695, %v1853_v52  ;;  %v1921_v12 = vmul.f32 1.442695, %v1854_v60 }
 0x21e   : > { %v1763_v11 = vpop.xlane.xlu1 %1762  ;;  %1106 = vperm.xlu1 %2549, %v1029_v33   ;;  %v1030_v33 = vadd.s32 %v2888_v36, %v338_v24 }
 0x21f   : > { %2554 = vpow2.f32 %v1919_v58  ;;  %v1855_v6 = vsub.f32 %v3440_v29, %v1763_v11  ;;  %v1856_v10 = vsub.f32 %v3466_v32, %v1763_v11  ;;  %621 = vperm.xlu0 %2548, %v542_v49   ;;  %v339_v49 = vand.u32 65535, %v275_v4 }
 0x220   : > { %2556 = vpow2.f32 %v1921_v12 }
 0x221   : > { %v1923_v2 = vmul.f32 1.442695, %v1855_v6  ;;  %v1925_v26 = vmul.f32 1.442695, %v1856_v10  ;;  %v1031_v4 = vadd.s32 %v2888_v36, %v339_v49 }
 0x222   : > { %434 = vperm.xlu1 %2549, %v308_v18   ;;  %v1766_v62 = vpop.xlane.xlu0 %1765 }
 0x223   : > { %v1857_v47 = vsub.f32 %v3518_v42, %v1766_v62  ;;  %v1858_v21 = vsub.f32 %v3534_v46, %v1766_v62  ;;  %853 = vperm.xlu0 %2548, %v338_v24   ;;  %2558 = vpow2.f32 %v1923_v2  ;;  %v3984_v62 = vld [vmem:[%s2840_s24 + $0xd0] sm:$0xff] }
 0x224   : > { %2560 = vpow2.f32 %v1925_v26  ;;  %v544_v26 = vadd.s32 %v2888_v36, %v308_v18 }
 0x225   : > { %v1927_v29 = vmul.f32 1.442695, %v1857_v47  ;;  %v1929_v52 = vmul.f32 1.442695, %v1858_v21  ;;  %v2551_v25 = vpop.eup %2550 }
 0x226   : > { %v1769_v32 = vpop.xlane.xlu1 %1768  ;;  %624 = vperm.xlu1 %2549, %v543_v9   ;;  %v2553_v42 = vpop.eup %2552  ;;  %v3987_v9 = vld [vmem:[%s2840_s24 + $0xd8] sm:$0xff] }
 0x227   : > { %2562 = vpow2.f32 %v1927_v29  ;;  %v1859_v60 = vsub.f32 %v3572_v50, %v1769_v32  ;;  %v1860_v58 = vsub.f32 %v3589_v0, %v1769_v32  ;;  %1109 = vperm.xlu0 %2548, %v1030_v33   ;;  %v310_v18 = vshra.s32 %v3987_v9, 16 }
 0x228   : > { %2564 = vpow2.f32 %v1929_v52  ;;  %v340_v29 = vand.u32 65535, %v3967_v59 }
 0x229   : > { %v2555_v46 = vpop.eup %2554  ;;  %v1931_v12 = vmul.f32 1.442695, %v1859_v60  ;;  %v1933_v6 = vmul.f32 1.442695, %v1860_v58 }
 0x22a   : > { %v2557_v11 = vpop.eup %2556  ;;  %856 = vperm.xlu1 %2549, %v339_v49   ;;  %v1772_v10 = vpop.xlane.xlu0 %1771  ;;  %v2359_v24 = vpack.c.bf16 %v2555_v46, %v2551_v25 }
 0x22b   : > { %v1861_v2 = vsub.f32 %v3629_v8, %v1772_v10  ;;  %v1862_v50 = vsub.f32 %v3646_v14, %v1772_v10  ;;  %431 = vperm.xlu0 %2548, %v307_v31   ;;  %v2357_v0 = vpack.c.bf16 %v2557_v11, %v2553_v42  ;;  %2566 = vpow2.f32 %v1931_v12 }
 0x22c   : > { %2568 = vpow2.f32 %v1933_v6  ;;  %v309_v8 = vshra.s32 %v3984_v62, 16  ;;  %v1032_v12 = vadd.s32 %v2888_v36, %v340_v29 }
 0x22d   : > { %v1935_v47 = vmul.f32 1.442695, %v1861_v2  ;;  %v1937_v21 = vmul.f32 1.442695, %v1862_v50  ;;  %2358 = vmatprep.subr.bf16.mxu1 %v2357_v0  ;;  %2422 = vmatprep.subr.bf16.mxu0 %v2357_v0  ;;  %v2559_v14 = vpop.eup %2558 }
 0x22e   : > { %2360 = vmatpush1.bf16.xpose.msra.mxu1 %v2359_v24  ;;  %2424 = vmatpush1.bf16.xpose.msra.mxu0 %v2359_v24  ;;  %v1775_v33 = vpop.xlane.xlu1 %1774  ;;  %v2561_v52 = vpop.eup %2560  ;;  %v545_v46 = vadd.s32 %v2888_v36, %v309_v8 }
 0x22f   : > { %2570 = vpow2.f32 %v1935_v47  ;;  %v1863_v31 = vsub.f32 %v3685_v51, %v1775_v33  ;;  %1112 = vperm.xlu1 %2549, %v1031_v4   ;;  %627 = vperm.xlu0 %2548, %v544_v26   ;;  %v1864_v49 = vsub.f32 %v3701_v37, %v1775_v33 }
 0x230   : > { %2572 = vpow2.f32 %v1937_v21 }
 0x231   : > { %v2563_v32 = vpop.eup %2562  ;;  %v1939_v60 = vmul.f32 1.442695, %v1863_v31  ;;  %v1941_v6 = vmul.f32 1.442695, %v1864_v49  ;;  %v546_v31 = vadd.s32 %v2888_v36, %v310_v18 }
 0x232   : > { %v2565_v25 = vpop.eup %2564  ;;  %v1778_v58 = vpop.xlane.xlu0 %1777  ;;  %v2363_v42 = vpack.c.bf16 %v2563_v32, %v2559_v14  ;;  %v279_v32 = vld [vmem:[%s2840_s24 + $0xe0] sm:$0xff] }
 0x233   : > { %440 = vperm.xlu1 %2549, %v310_v18   ;;  %v1865_v51 = vsub.f32 %v3735_v43, %v1778_v58  ;;  %v1866_v11 = vsub.f32 %v3749_v48, %v1778_v58  ;;  %859 = vperm.xlu0 %2548, %v340_v29   ;;  %v2361_v59 = vpack.c.bf16 %v2565_v25, %v2561_v52  ;;  %2574 = vpow2.f32 %v1939_v60  ;;  %v4006_v52 = vld [vmem:[%s2840_s24 + $0xe8] sm:$0xff] }
 0x234   : > { %v341_v43 = vand.u32 65535, %v3984_v62  ;;  %v311_v58 = vshra.s32 %v279_v32, 16 }
 0x235   : > { %v1943_v10 = vmul.f32 1.442695, %v1865_v51  ;;  %v1945_v24 = vmul.f32 1.442695, %v1866_v11  ;;  %2362 = vmatprep.subr.bf16.mxu1 %v2361_v59  ;;  %2426 = vmatprep.subr.bf16.mxu0 %v2361_v59  ;;  %v2567_v4 = vpop.eup %2566 }
 0x236   : > { %2364 = vmatpush1.bf16.xpose.msra.mxu1 %v2363_v42  ;;  %2428 = vmatpush1.bf16.xpose.msra.mxu0 %v2363_v42  ;;  %v1781_v37 = vpop.xlane.xlu1 %1780  ;;  %v2569_v48 = vpop.eup %2568  ;;  %v1033_v14 = vadd.s32 %v2888_v36, %v341_v43 }
 0x237   : > { %2576 = vpow2.f32 %v1943_v10  ;;  %630 = vperm.xlu1 %2549, %v545_v46   ;;  %v1867_v2 = vsub.f32 %v3776_v55, %v1781_v37  ;;  %1115 = vperm.xlu0 %2548, %v1032_v12   ;;  %v1868_v0 = vsub.f32 %v3787_v1, %v1781_v37  ;;  %v547_v37 = vadd.s32 %v2888_v36, %v311_v58 }
 0x238   : > { %2578 = vpow2.f32 %v1945_v24 }
 0x239   : > { %v2571_v50 = vpop.eup %2570  ;;  %2580 = vpow2.f32 %v1941_v6  ;;  %v1947_v47 = vmul.f32 1.442695, %v1867_v2  ;;  %v1949_v49 = vmul.f32 1.442695, %v1868_v0 }
 0x23a   : > { %v2573_v26 = vpop.eup %2572  ;;  %v1784_v21 = vpop.xlane.xlu0 %1783  ;;  %v2367_v33 = vpack.c.bf16 %v2571_v50, %v2567_v4 }
 0x23b   : > { %862 = vperm.xlu1 %2549, %v341_v43   ;;  %v1869_v55 = vsub.f32 %v3814_v7, %v1784_v21  ;;  %v1870_v62 = vsub.f32 %v3821_v45, %v1784_v21  ;;  %437 = vperm.xlu0 %2548, %v309_v8   ;;  %v2365_v29 = vpack.c.bf16 %v2573_v26, %v2569_v48  ;;  %2582 = vpow2.f32 %v1947_v47 }
 0x23c   : > { %v312_v45 = vshra.s32 %v4006_v52, 16  ;;  %v342_v8 = vand.u32 65535, %v3987_v9 }
 0x23d   : > { %v1951_v1 = vmul.f32 1.442695, %v1869_v55  ;;  %v1953_v25 = vmul.f32 1.442695, %v1870_v62  ;;  %2366 = vmatprep.subr.bf16.mxu1 %v2365_v29  ;;  %2430 = vmatprep.subr.bf16.mxu0 %v2365_v29  ;;  %v2575_v18 = vpop.eup %2574  ;;  %v282_v62 = vld [vmem:[%s2840_s24 + $0xf8] sm:$0xff]  ;;  %v281_v29 = vld [vmem:[%s2840_s24 + $0xf0] sm:$0xff] }
 0x23e   : > { %2368 = vmatpush1.bf16.xpose.msra.mxu1 %v2367_v33  ;;  %2432 = vmatpush1.bf16.xpose.msra.mxu0 %v2367_v33  ;;  %v1787_v60 = vpop.xlane.xlu1 %1786  ;;  %v1034_v4 = vadd.s32 %v2888_v36, %v342_v8  ;;  %v548_v55 = vadd.s32 %v2888_v36, %v312_v45 }
 0x23f   : > { %2584 = vpow2.f32 %v1951_v1  ;;  %1118 = vperm.xlu1 %2549, %v1033_v14   ;;  %v1871_v7 = vsub.f32 %v3832_v54, %v1787_v60  ;;  %633 = vperm.xlu0 %2548, %v546_v31   ;;  %v1872_v46 = vsub.f32 %v3835_v30, %v1787_v60  ;;  %v344_v60 = vand.u32 65535, %v4006_v52 }
 0x240   : > { %2586 = vpow2.f32 %v1953_v25  ;;  %v314_v25 = vshra.s32 %v282_v62, 16  ;;  %v345_v52 = vand.u32 65535, %v281_v29 }
 0x241   : > { %v2577_v42 = vpop.eup %2576  ;;  %2588 = vpow2.f32 %v1949_v49  ;;  %v1955_v51 = vmul.f32 1.442695, %v1871_v7  ;;  %v1957_v2 = vmul.f32 1.442695, %v1872_v46  ;;  %v313_v7 = vshra.s32 %v281_v29, 16 }
 0x242   : > { %v2579_v12 = vpop.eup %2578  ;;  %v4013_v11 = vpop.permute.xlu1 %395  ;;  %v2371_v10 = vpack.c.bf16 %v2577_v42, %v2575_v18 }
 0x243   : > { %v1790_v59 = vpop.xlane.xlu0 %1789  ;;  %v2581_v6 = vpop.eup %2580  ;;  %446 = vperm.xlu1 %2549, %v312_v45   ;;  %865 = vperm.xlu0 %2548, %v342_v8   ;;  %2590 = vpow2.f32 %v1955_v51  ;;  %v549_v51 = vadd.s32 %v2888_v36, %v313_v7  ;;  %vm478_vm1 = vcmp.ge.s32.totalorder %v3067_v15, %v4013_v11  ;;  %vm479_vm14 = vcmp.ge.s32.totalorder %v3069_v17, %v4013_v11 }
 0x244   : > { %v1873_v54 = vsub.f32 %v3840_v5, %v1790_v59  ;;  %v1874_v9 = vsub.f32 %v3843_v16, %v1790_v59  ;;  %v2369_v24 = vpack.c.bf16 %v2579_v12, %v2581_v6  ;;  %v343_v16 = vand.u32 65535, %v279_v32 }
 0x245   : > { %v2583_v5 = vpop.eup %2582  ;;  %v1036_v59 = vadd.s32 %v2888_v36, %v344_v60  ;;  %v4842_v11 = vmov 0 }
 0x246   : > { %v1959_v30 = vmul.f32 1.442695, %v1873_v54  ;;  %v1961_v43 = vmul.f32 1.442695, %v1874_v9  ;;  %2370 = vmatprep.subr.bf16.mxu1 %v2369_v24  ;;  %2434 = vmatprep.subr.bf16.mxu0 %v2369_v24  ;;  %v4019_v48 = vpop.permute.xlu1 %588  ;;  %v1035_v31 = vadd.s32 %v2888_v36, %v343_v16  ;;  %v1037_v24 = vadd.s32 %v2888_v36, %v345_v52 }
 0x247   : > { %2372 = vmatpush1.bf16.xpose.msra.mxu1 %v2371_v10  ;;  %2436 = vmatpush1.bf16.xpose.msra.mxu0 %v2371_v10  ;;  %vm671_vm5 = vcmp.lt.s32.totalorder %v3067_v15, %v4019_v48  ;;  %vm672_vm10 = vcmp.lt.s32.totalorder %v3069_v17, %v4019_v48 }
 0x248   : > { %2592 = vpow2.f32 %v1959_v30  ;;  %636 = vperm.xlu1 %2549, %v547_v37   ;;  %1121 = vperm.xlu0 %2548, %v1034_v4   ;;  %v550_v37 = vadd.s32 %v2888_v36, %v314_v25  ;;  %v346_v30 = vand.u32 65535, %v282_v62  ;;  %vm735_vm11 = vmand %vm478_vm1, %vm671_vm5 }
 0x249   : > { %2594 = vpow2.f32 %v1961_v43  ;;  %v2585_v50 = vpop.eup %2584  ;;  %vm736_vm7 = vmand %vm479_vm14, %vm672_vm10 }
 0x24a   : > { %2596 = vpow2.f32 %v1957_v2  ;;  %v2587_v0 = vpop.eup %2586  ;;  %v4021_v26 = vpop.permute.xlu1 %820  ;;  %v2375_v33 = vpack.c.bf16 %v2585_v50, %v2583_v5  ;;  %v1038_v48 = vadd.s32 %v2888_v36, %v346_v30  ;;  %v4844_v36 = vmov 0 }
 0x24b   : > { %v4023_v47 = vpop.permute.xlu0 %398  ;;  %v2589_v21 = vpop.eup %2588  ;;  %vm903_vm8 = vcmp.ge.s32.totalorder %v3081_v19, %v4021_v26  ;;  %vm904_vm13 = vcmp.ge.s32.totalorder %v3086_v20, %v4021_v26  ;;  %v4846_v26 = vmov 0 }
 0x24c   : > { %868 = vperm.xlu1 %2549, %v343_v16   ;;  %443 = vperm.xlu0 %2548, %v311_v58   ;;  %v2373_v14 = vpack.c.bf16 %v2587_v0, %v2589_v21  ;;  %vm4063_vm12 = vmand %vm735_vm11, %vm903_vm8  ;;  %v4840_v16 = vmov 0  ;;  %vm480_vm3 = vcmp.ge.s32.totalorder %v3067_v15, %v4023_v47  ;;  %vm481_vm9 = vcmp.ge.s32.totalorder %v3069_v17, %v4023_v47 }
 0x24d   : > { %v2591_v1 = vpop.eup %2590  ;;  %v4841_v16 = vsel %vm4063_vm12, 4294967295, %v4840_v16  ;;  %vm4069_vm4 = vmand %vm736_vm7, %vm904_vm13 }
 0x24e   : > { %2374 = vmatprep.subr.bf16.mxu1 %v2373_v14  ;;  %2438 = vmatprep.subr.bf16.mxu0 %v2373_v14  ;;  %v4029_v32 = vpop.permute.xlu1 %1076  ;;  %v4843_v11 = vsel %vm4069_vm4, 4294967295, %v4842_v11  ;;  %v4850_v14 = vmov 0 }
 0x24f   : > { %v4031_v49 = vpop.permute.xlu0 %591  ;;  %2376 = vmatpush1.bf16.xpose.msra.mxu1 %v2375_v33  ;;  %2440 = vmatpush1.bf16.xpose.msra.mxu0 %v2375_v33 }
 0x250   : > { %1124 = vperm.xlu1 %2549, %v1035_v31   ;;  %639 = vperm.xlu0 %2548, %v548_v55   ;;  %vm673_vm6 = vcmp.lt.s32.totalorder %v3067_v15, %v4031_v49  ;;  %vm674_vm2 = vcmp.lt.s32.totalorder %v3069_v17, %v4031_v49  ;;  %v4853_v31 = vmov 0  ;;  %v4856_v55 = vmov 0 }
 0x251   : > { %vm737_vm15 = vmand %vm480_vm3, %vm673_vm6  ;;  %vm1160_vm3 = vcmp.lt.s32.totalorder %v3086_v20, %v4029_v32 }
 0x252   : > { %v2593_v8 = vpop.eup %2592  ;;  %v4034_v45 = vpop.permute.xlu1 %401  ;;  %vm738_vm10 = vmand %vm481_vm9, %vm674_vm2  ;;  %vm1159_vm2 = vcmp.lt.s32.totalorder %v3081_v19, %v4029_v32 }
 0x253   : > { %v2595_v18 = vpop.eup %2594  ;;  %v824_v58 = vpop.permute.xlu0 %823  ;;  %v2379_v46 = vpack.c.bf16 %v2593_v8, %v2591_v1  ;;  %vm482_vm11 = vcmp.ge.s32.totalorder %v3067_v15, %v4034_v45  ;;  %v4863_v1 = vmov 0  ;;  %v4868_v8 = vmov 0 }
 0x254   : > { %v2597_v42 = vpop.eup %2596  ;;  %452 = vperm.xlu1 %2549, %v314_v25   ;;  %871 = vperm.xlu0 %2548, %v344_v60   ;;  %vm905_vm0 = vcmp.ge.s32.totalorder %v3081_v19, %v824_v58  ;;  %vm906_vm5 = vcmp.ge.s32.totalorder %v3086_v20, %v824_v58  ;;  %v4866_v25 = vmov 0  ;;  %v4875_v58 = vmov 0 }
 0x255   : > { %v2377_v12 = vpack.c.bf16 %v2595_v18, %v2597_v42  ;;  %vm4080_vm8 = vmand %vm737_vm15, %vm905_vm0  ;;  %vm483_vm0 = vcmp.ge.s32.totalorder %v3069_v17, %v4034_v45  ;;  %v4870_v18 = vmov 0  ;;  %v4872_v45 = vmov 0 }
 0x256   : > { %v595_v6 = vpop.permute.xlu1 %594  ;;  %v4845_v36 = vsel %vm4080_vm8, 4294967295, %v4844_v36  ;;  %vm4087_vm13 = vmand %vm738_vm10, %vm906_vm5 }
 0x257   : > { %2378 = vmatprep.subr.bf16.mxu1 %v2377_v12  ;;  %2442 = vmatprep.subr.bf16.mxu0 %v2377_v12  ;;  %v4038_v54 = vpop.permute.xlu0 %1079  ;;  %vm675_vm1 = vcmp.lt.s32.totalorder %v3067_v15, %v595_v6  ;;  %vm676_vm14 = vcmp.lt.s32.totalorder %v3069_v17, %v595_v6  ;;  %v4847_v26 = vsel %vm4087_vm13, 4294967295, %v4846_v26 }
 0x258   : > { %2380 = vmatpush1.bf16.xpose.msra.mxu1 %v2379_v46  ;;  %2444 = vmatpush1.bf16.xpose.msra.mxu0 %v2379_v46  ;;  %vm739_vm9 = vmand %vm482_vm11, %vm675_vm1  ;;  %vm4852_vm1 = vnez %v4841_v16  ;;  %v4909_v16 = vld [vmem:[#allocation4_spill] sm:$0xff] }
 0x259   : > { %642 = vperm.xlu1 %2549, %v549_v51   ;;  %1127 = vperm.xlu0 %2548, %v1036_v59   ;;  %vm740_vm5 = vmand %vm483_vm0, %vm676_vm14  ;;  %vm4855_vm14 = vnez %v4843_v11  ;;  %v4879_v51 = vmov 0  ;;  %v4881_v59 = vmov -1e+30  }
 0x25a   : > { %v827_v10 = vpop.permute.xlu1 %826  ;;  %vm4114_vm11 = vmand %vm4852_vm1, %vm1159_vm2  ;;  %vm1161_vm2 = vcmp.lt.s32.totalorder %v3081_v19, %v4038_v54 }
 0x25b   : > { %v4040_v9 = vpop.permute.xlu0 %404  ;;  %vm907_vm7 = vcmp.ge.s32.totalorder %v3081_v19, %v827_v10  ;;  %vm908_vm6 = vcmp.ge.s32.totalorder %v3086_v20, %v827_v10  ;;  %v4854_v31 = vsel %vm4114_vm11, 4294967295, %v4853_v31 }
 0x25c   : > { %vm4101_vm13 = vmand %vm739_vm9, %vm907_vm7  ;;  %vm484_vm4 = vcmp.ge.s32.totalorder %v3067_v15, %v4040_v9 }
 0x25d   : > { %874 = vperm.xlu1 %2549, %v345_v52   ;;  %449 = vperm.xlu0 %2548, %v313_v7   ;;  %vm4105_vm8 = vmand %vm740_vm5, %vm908_vm6  ;;  %vm485_vm6 = vcmp.ge.s32.totalorder %v3069_v17, %v4040_v9  ;;  %vm1162_vm5 = vcmp.lt.s32.totalorder %v3086_v20, %v4038_v54 }
 0x25e   : > { %v4044_v4 = vpop.permute.xlu1 %1082  ;;  %v4851_v14 = vsel %vm4105_vm8, 4294967295, %v4850_v14  ;;  %vm4120_vm7 = vmand %vm4855_vm14, %vm1160_vm3  ;;  %vm4862_vm8 = vnez %v4845_v36 }
 0x25f   : > { %v598_v2 = vpop.permute.xlu0 %597  ;;  %v4857_v55 = vsel %vm4120_vm7, 4294967295, %v4856_v55 }
 0x260   : > { %vm677_vm15 = vcmp.lt.s32.totalorder %v3067_v15, %v598_v2  ;;  %vm678_vm10 = vcmp.lt.s32.totalorder %v3069_v17, %v598_v2 }
 0x261   : > { %1130 = vperm.xlu1 %2549, %v1037_v24   ;;  %645 = vperm.xlu0 %2548, %v550_v37   ;;  %vm741_vm0 = vmand %vm484_vm4, %vm677_vm15 }
 0x262   : > { %v4054_v43 = vpop.permute.xlu1 %407  ;;  %vm742_vm1 = vmand %vm485_vm6, %vm678_vm10 }
 0x263   : > { %v830_v5 = vpop.permute.xlu0 %829  ;;  %vm486_vm4 = vcmp.ge.s32.totalorder %v3067_v15, %v4054_v43  ;;  %vm4146_vm10 = vmand %vm4862_vm8, %vm1161_vm2  ;;  %vm1163_vm8 = vcmp.lt.s32.totalorder %v3081_v19, %v4044_v4  ;;  %vm1164_vm2 = vcmp.lt.s32.totalorder %v3086_v20, %v4044_v4 }
 0x264   : > { %vm909_vm12 = vcmp.ge.s32.totalorder %v3081_v19, %v830_v5  ;;  %vm910_vm9 = vcmp.ge.s32.totalorder %v3086_v20, %v830_v5  ;;  %v4864_v1 = vsel %vm4146_vm10, 4294967295, %v4863_v1 }
 0x265   : > { %877 = vperm.xlu0 %2548, %v346_v30   ;;  %vm4132_vm14 = vmand %vm741_vm0, %vm909_vm12  ;;  %vm4865_vm12 = vnez %v4847_v26  ;;  %vm487_vm0 = vcmp.ge.s32.totalorder %v3069_v17, %v4054_v43 }
 0x266   : > { %v601_v50 = vpop.permute.xlu1 %600  ;;  %vm4139_vm15 = vmand %vm742_vm1, %vm910_vm9 }
 0x267   : > { %v1086_v0 = vpop.permute.xlu0 %1085  ;;  %vm679_vm3 = vcmp.lt.s32.totalorder %v3067_v15, %v601_v50  ;;  %vm680_vm7 = vcmp.lt.s32.totalorder %v3069_v17, %v601_v50  ;;  %vm4152_vm6 = vmand %vm4865_vm12, %vm1162_vm5 }
 0x268   : > { %vm1165_vm11 = vcmp.lt.s32.totalorder %v3081_v19, %v1086_v0  ;;  %v4867_v25 = vsel %vm4152_vm6, 4294967295, %v4866_v25  ;;  %vm743_vm9 = vmand %vm486_vm4, %vm679_vm3  ;;  %vm1166_vm1 = vcmp.lt.s32.totalorder %v3086_v20, %v1086_v0 }
 0x269   : > { %1133 = vperm.xlu0 %2548, %v1038_v48   ;;  %vm744_vm10 = vmand %vm487_vm0, %vm680_vm7 }
 0x26a   : > { %v833_v47 = vpop.permute.xlu1 %832  ;;  %vm4166_vm12 = vmand %vm4132_vm14, %vm1165_vm11  ;;  %vm4874_vm11 = vnez %v4851_v14 }
 0x26b   : > { %v411_v21 = vpop.permute.xlu0 %410  ;;  %vm911_vm5 = vcmp.ge.s32.totalorder %v3081_v19, %v833_v47  ;;  %v4869_v8 = vsel %vm4166_vm12, 4294967295, %v4868_v8  ;;  %vm912_vm3 = vcmp.ge.s32.totalorder %v3086_v20, %v833_v47  ;;  %vm4173_vm4 = vmand %vm4139_vm15, %vm1166_vm1 }
 0x26c   : > { %v4871_v18 = vsel %vm4173_vm4, 4294967295, %v4870_v18  ;;  %vm4180_vm7 = vmand %vm4101_vm13, %vm1163_vm8  ;;  %vm488_vm13 = vcmp.ge.s32.totalorder %v3067_v15, %v411_v21 }
 0x26d   : > { %v4873_v45 = vsel %vm4180_vm7, 4294967295, %v4872_v45  ;;  %vm4186_vm14 = vmand %vm4874_vm11, %vm1164_vm2  ;;  %vm489_vm2 = vcmp.ge.s32.totalorder %v3069_v17, %v411_v21  ;;  %vm4882_vm7 = vnez %v4854_v31 }
 0x26e   : > { %v1089_v62 = vpop.permute.xlu1 %1088  ;;  %v4876_v58 = vsel %vm4186_vm14, 4294967295, %v4875_v58  ;;  %vm4190_vm0 = vmand %vm743_vm9, %vm911_vm5  ;;  %v1287_v6 = vsel %vm4882_vm7, 0.0, %v4881_v59 }
 0x26f   : > { %v604_v29 = vpop.permute.xlu0 %603  ;;  %vm4195_vm1 = vmand %vm744_vm10, %vm912_vm3  ;;  %vm1167_vm11 = vcmp.lt.s32.totalorder %v3081_v19, %v1089_v62  ;;  %vm1168_vm9 = vcmp.lt.s32.totalorder %v3086_v20, %v1089_v62  ;;  %vm4883_vm10 = vnez %v4857_v55  ;;  %v4236_v2 = vadd.f32 %v3847_v22, %v1287_v6 }
 0x270   : > { %vm681_vm6 = vcmp.lt.s32.totalorder %v3067_v15, %v604_v29  ;;  %vm682_vm15 = vcmp.lt.s32.totalorder %v3069_v17, %v604_v29  ;;  %v4880_v51 = vsel %vm4195_vm1, 4294967295, %v4879_v51  ;;  %v1288_v54 = vsel %vm4883_vm10, 0.0, %v4881_v59 }
 0x271   : > { %vm745_vm5 = vmand %vm488_vm13, %vm681_vm6  ;;  %vm4888_vm7 = vnez %v4880_v51  ;;  %v4239_v30 = vadd.f32 %v3849_v39, %v1288_v54 }
 0x272   : > { %v414_v60 = vpop.permute.xlu1 %413  ;;  %vm746_vm3 = vmand %vm489_vm2, %vm682_vm15 }
 0x273   : > { %v836_v7 = vpop.permute.xlu0 %835  ;;  %vm4219_vm6 = vmand %vm4190_vm0, %vm1167_vm11  ;;  %vm490_vm15 = vcmp.ge.s32.totalorder %v3067_v15, %v414_v60  ;;  %vm491_vm0 = vcmp.ge.s32.totalorder %v3069_v17, %v414_v60  ;;  %v1791_v47 = vmax.f32 %v4236_v2, %v4239_v30 }
 0x274   : > { %vm913_vm8 = vcmp.ge.s32.totalorder %v3081_v19, %v836_v7  ;;  %vm914_vm14 = vcmp.ge.s32.totalorder %v3086_v20, %v836_v7  ;;  %vm4225_vm13 = vmand %vm4888_vm7, %vm1168_vm9 }
 0x275   : > { %vm4212_vm12 = vmand %vm745_vm5, %vm913_vm8  ;;  %vm4896_vm5 = vnez %v4867_v25  ;;  %v1296_v25 = vsel %vm4225_vm13, 0.0, %v4881_v59 }
 0x276   : > { %v607_v46 = vpop.permute.xlu1 %606  ;;  %vm4230_vm8 = vmand %vm746_vm3, %vm914_vm14  ;;  %vm4895_vm14 = vnez %v4864_v1  ;;  %v1290_v22 = vsel %vm4896_vm5, 0.0, %v4881_v59  ;;  %vm4899_vm3 = vnez %v4869_v8  ;;  %vm4903_vm5 = vnez %v4873_v45 }
 0x277   : > { %v1092_v12 = vpop.permute.xlu0 %1091  ;;  %vm683_vm4 = vcmp.lt.s32.totalorder %v3067_v15, %v607_v46  ;;  %vm684_vm1 = vcmp.lt.s32.totalorder %v3069_v17, %v607_v46  ;;  %v1289_v5 = vsel %vm4895_vm14, 0.0, %v4881_v59  ;;  %v1293_v48 = vsel %vm4899_vm3, 0.0, %v4881_v59 }
 0x278   : > { %vm1169_vm2 = vcmp.lt.s32.totalorder %v3081_v19, %v1092_v12  ;;  %vm4242_vm11 = vmand %vm490_vm15, %vm683_vm4  ;;  %vm1170_vm9 = vcmp.lt.s32.totalorder %v3086_v20, %v1092_v12  ;;  %v4277_v36 = vadd.f32 %v3851_v40, %v1289_v5  ;;  %v4280_v26 = vadd.f32 %v3853_v44, %v1290_v22 }
 0x279   : > { %vm4255_vm10 = vmand %vm491_vm0, %vm684_vm1  ;;  %vm4902_vm1 = vnez %v4871_v18  ;;  %v1291_v21 = vsel %vm4903_vm5, 0.0, %v4881_v59  ;;  %v4294_v33 = vadd.f32 %v3860_v41, %v1293_v48  ;;  %v4353_v18 = vadd.f32 %v3868_v63, %v1296_v25  ;;  %v4912_v25 = vld [vmem:[#allocation7_spill] sm:$0xff] }
 0x27a   : > { %v839_v10 = vpop.permute.xlu1 %838  ;;  %vm4265_vm7 = vmand %vm4212_vm12, %vm1169_vm2  ;;  %v1294_v0 = vsel %vm4902_vm1, 0.0, %v4881_v59  ;;  %v4322_v29 = vadd.f32 %v3856_v34, %v1291_v21  ;;  %v1794_v34 = vmax.f32 %v4277_v36, %v4280_v26 }
 0x27b   : > { %v417_v9 = vpop.permute.xlu0 %416  ;;  %vm915_vm4 = vcmp.ge.s32.totalorder %v3081_v19, %v839_v10  ;;  %vm916_vm15 = vcmp.ge.s32.totalorder %v3086_v20, %v839_v10  ;;  %vm1234_vm0 = vmand %vm4230_vm8, %vm1170_vm9  ;;  %vm4904_vm8 = vnez %v4876_v58  ;;  %v4300_v44 = vadd.f32 %v3862_v56, %v1294_v0 }
 0x27c   : > { %vm979_vm12 = vmand %vm4242_vm11, %vm915_vm4  ;;  %v1292_v40 = vsel %vm4904_vm8, 0.0, %v4881_v59  ;;  %v1297_v14 = vsel %vm4265_vm7, 0.0, %v4881_v59  ;;  %v1298_v31 = vsel %vm1234_vm0, 0.0, %v4881_v59  ;;  %vm493_vm1 = vcmp.ge.s32.totalorder %v3069_v17, %v417_v9 }
 0x27d   : > { %vm980_vm9 = vmand %vm4255_vm10, %vm916_vm15  ;;  %vm492_vm10 = vcmp.ge.s32.totalorder %v3067_v15, %v417_v9  ;;  %v4325_v32 = vadd.f32 %v3858_v28, %v1292_v40  ;;  %v4330_v49 = vadd.f32 %v3870_v53, %v1297_v14  ;;  %v4333_v1 = vadd.f32 %v3872_v3, %v1298_v31 }
 0x27e   : > { %v1095_v11 = vpop.permute.xlu1 %1094  ;;  %v1295_v28 = vsel %vm4219_vm6, 0.0, %v4881_v59  ;;  %v1800_v53 = vmax.f32 %v4294_v33, %v4300_v44 }
 0x27f   : > { %v610_v50 = vpop.permute.xlu0 %609  ;;  %vm1171_vm14 = vcmp.lt.s32.totalorder %v3081_v19, %v1095_v11  ;;  %vm1172_vm2 = vcmp.lt.s32.totalorder %v3086_v20, %v1095_v11  ;;  %v1797_v3 = vmax.f32 %v4322_v29, %v4325_v32  ;;  %v4350_v8 = vadd.f32 %v3865_v61, %v1295_v28 }
 0x280   : > { %vm685_vm11 = vcmp.lt.s32.totalorder %v3067_v15, %v610_v50  ;;  %vm4306_vm4 = vmand %vm979_vm12, %vm1171_vm14  ;;  %vm686_vm3 = vcmp.lt.s32.totalorder %v3069_v17, %v610_v50  ;;  %v1806_v58 = vmax.f32 %v4330_v49, %v4333_v1 }
 0x281   : > { %vm4316_vm15 = vmand %vm980_vm9, %vm1172_vm2  ;;  %v1299_v42 = vsel %vm4306_vm4, 0.0, %v4881_v59 }
 0x282   : > { %v4311_v41 = vpop.permute.xlu1 %422  ;;  %vm749_vm0 = vmand %vm492_vm10, %vm685_vm11  ;;  %v1300_v46 = vsel %vm4316_vm15, 0.0, %v4881_v59 }
 0x283   : > { %v842_v62 = vpop.permute.xlu0 %841  ;;  %vm750_vm12 = vmand %vm493_vm1, %vm686_vm3  ;;  %v4381_v54 = vadd.f32 %v3879_v23, %v1300_v46 }
 0x284   : > { %vm917_vm7 = vcmp.ge.s32.totalorder %v3081_v19, %v842_v62  ;;  %vm918_vm14 = vcmp.ge.s32.totalorder %v3086_v20, %v842_v62  ;;  %v4911_v62 = vld [vmem:[#allocation6_spill] sm:$0xff] }
 0x285   : > { %1792 = vmax.xlane.f32.xlu1 %v1791_v47  ;;  %vm981_vm2 = vmand %vm749_vm0, %vm917_vm7  ;;  %v4910_v47 = vld [vmem:[#allocation5_spill] sm:$0xff] }
 0x286   : > { %v613_v60 = vpop.permute.xlu1 %612  ;;  %vm982_vm5 = vmand %vm750_vm12, %vm918_vm14 }
 0x287   : > { %v1098_v7 = vpop.permute.xlu0 %1097  ;;  %vm687_vm13 = vcmp.lt.s32.totalorder %v3067_v15, %v613_v60  ;;  %vm688_vm10 = vcmp.lt.s32.totalorder %v3069_v17, %v613_v60 }
 0x288   : > { %1795 = vmax.xlane.f32.xlu0 %v1794_v34  ;;  %vm1173_vm8 = vcmp.lt.s32.totalorder %v3081_v19, %v1098_v7  ;;  %vm1174_vm9 = vcmp.lt.s32.totalorder %v3086_v20, %v1098_v7 }
 0x289   : > { %1801 = vmax.xlane.f32.xlu1 %v1800_v53  ;;  %vm1237_vm11 = vmand %vm981_vm2, %vm1173_vm8 }
 0x28a   : > { %vm1238_vm6 = vmand %vm982_vm5, %vm1174_vm9  ;;  %v1301_v45 = vsel %vm1237_vm11, 0.0, %v4881_v59  ;;  %v845_v63 = vpop.permute.xlu1 %844 }
 0x28b   : > { %v1302_v61 = vsel %vm1238_vm6, 0.0, %v4881_v59  ;;  %v4366_v12 = vadd.f32 %v3881_v57, %v1301_v45  ;;  %v420_v51 = vpop.permute.xlu0 %419  ;;  %vm919_vm3 = vcmp.ge.s32.totalorder %v3081_v19, %v845_v63  ;;  %vm920_vm15 = vcmp.ge.s32.totalorder %v3086_v20, %v845_v63 }
 0x28c   : > { %v4370_v6 = vadd.f32 %v3883_v27, %v1302_v61  ;;  %1798 = vmax.xlane.f32.xlu0 %v1797_v3  ;;  %vm494_vm4 = vcmp.ge.s32.totalorder %v3067_v15, %v420_v51  ;;  %vm495_vm7 = vcmp.ge.s32.totalorder %v3069_v17, %v420_v51  ;;  %v4378_v57 = vadd.f32 %v3877_v13, %v1299_v42  ;;  %v4913_v42 = vld [vmem:[#allocation8_spill] sm:$0xff]  ;;  %v4914_v51 = vld [vmem:[#allocation9_spill] sm:$0xff] }
 0x28d   : > { %1807 = vmax.xlane.f32.xlu1 %v1806_v58  ;;  %vm751_vm1 = vmand %vm494_vm4, %vm687_vm13  ;;  %v1803_v27 = vmax.f32 %v4350_v8, %v4353_v18  ;;  %vm496_vm13 = vcmp.ge.s32.totalorder %v3067_v15, %v4311_v41  ;;  %vm497_vm4 = vcmp.ge.s32.totalorder %v3069_v17, %v4311_v41 }
 0x28e   : > { %vm752_vm0 = vmand %vm495_vm7, %vm688_vm10  ;;  %v1812_v52 = vmax.f32 %v4366_v12, %v4370_v6  ;;  %v1101_v10 = vpop.permute.xlu1 %1100  ;;  %v1809_v23 = vmax.f32 %v4378_v57, %v4381_v54 }
 0x28f   : > { %vm983_vm14 = vmand %vm751_vm1, %vm919_vm3  ;;  %v616_v9 = vpop.permute.xlu0 %615  ;;  %vm1175_vm2 = vcmp.lt.s32.totalorder %v3081_v19, %v1101_v10  ;;  %vm1176_vm5 = vcmp.lt.s32.totalorder %v3086_v20, %v1101_v10 }
 0x290   : > { %vm984_vm12 = vmand %vm752_vm0, %vm920_vm15  ;;  %1804 = vmax.xlane.f32.xlu0 %v1803_v27  ;;  %vm689_vm11 = vcmp.lt.s32.totalorder %v3067_v15, %v616_v9  ;;  %vm690_vm6 = vcmp.lt.s32.totalorder %v3069_v17, %v616_v9 }
 0x291   : > { %vm1239_vm8 = vmand %vm983_vm14, %vm1175_vm2  ;;  %1813 = vmax.xlane.f32.xlu1 %v1812_v52 }
 0x292   : > { %vm1240_vm9 = vmand %vm984_vm12, %vm1176_vm5  ;;  %v1303_v13 = vsel %vm1239_vm8, 0.0, %v4881_v59  ;;  %v429_v4 = vpop.permute.xlu1 %428 }
 0x293   : > { %v1304_v24 = vsel %vm1240_vm9, 0.0, %v4881_v59  ;;  %v4395_v37 = vadd.f32 %v3887_v35, %v1303_v13  ;;  %v848_v43 = vpop.permute.xlu0 %847  ;;  %vm753_vm10 = vmand %vm496_vm13, %vm689_vm11 }
 0x294   : > { %v4401_v5 = vadd.f32 %v3890_v38, %v1304_v24  ;;  %1810 = vmax.xlane.f32.xlu0 %v1809_v23  ;;  %vm921_vm3 = vcmp.ge.s32.totalorder %v3081_v19, %v848_v43  ;;  %vm922_vm15 = vcmp.ge.s32.totalorder %v3086_v20, %v848_v43  ;;  %vm754_vm7 = vmand %vm497_vm4, %vm690_vm6  ;;  %v4915_v24 = vld [vmem:[#allocation10_spill] sm:$0xff] }
 0x295   : > { %vm985_vm1 = vmand %vm753_vm10, %vm921_vm3 }
 0x296   : > { %v1815_v35 = vmax.f32 %v4395_v37, %v4401_v5  ;;  %v619_v22 = vpop.permute.xlu1 %618  ;;  %vm986_vm0 = vmand %vm754_vm7, %vm922_vm15 }
 0x297   : > { %v1104_v39 = vpop.permute.xlu0 %1103  ;;  %vm691_vm8 = vcmp.lt.s32.totalorder %v3067_v15, %v619_v22  ;;  %vm692_vm6 = vcmp.lt.s32.totalorder %v3069_v17, %v619_v22  ;;  %v4916_v22 = vld [vmem:[#allocation11_spill] sm:$0xff] }
 0x298   : > { %1816 = vmax.xlane.f32.xlu0 %v1815_v35  ;;  %vm1177_vm14 = vcmp.lt.s32.totalorder %v3081_v19, %v1104_v39  ;;  %vm1178_vm12 = vcmp.lt.s32.totalorder %v3086_v20, %v1104_v39 }
 0x299   : > { %vm1241_vm2 = vmand %vm985_vm1, %vm1177_vm14 }
 0x29a   : > { %vm1242_vm5 = vmand %vm986_vm0, %vm1178_vm12  ;;  %v1305_v38 = vsel %vm1241_vm2, 0.0, %v4881_v59  ;;  %v851_v50 = vpop.permute.xlu1 %850 }
 0x29b   : > { %v1306_v48 = vsel %vm1242_vm5, 0.0, %v4881_v59  ;;  %v4414_v11 = vadd.f32 %v4909_v16, %v1305_v38  ;;  %v426_v0 = vpop.permute.xlu0 %425  ;;  %vm923_vm9 = vcmp.ge.s32.totalorder %v3081_v19, %v851_v50  ;;  %vm924_vm13 = vcmp.ge.s32.totalorder %v3086_v20, %v851_v50 }
 0x29c   : > { %v4418_v21 = vadd.f32 %v4910_v47, %v1306_v48  ;;  %vm498_vm11 = vcmp.ge.s32.totalorder %v3067_v15, %v426_v0  ;;  %vm499_vm3 = vcmp.ge.s32.totalorder %v3069_v17, %v426_v0  ;;  %v4917_v47 = vld [vmem:[#allocation12_spill] sm:$0xff] }
 0x29d   : > { %vm755_vm4 = vmand %vm498_vm11, %vm691_vm8  ;;  %vm500_vm8 = vcmp.ge.s32.totalorder %v3067_v15, %v429_v4  ;;  %vm501_vm11 = vcmp.ge.s32.totalorder %v3069_v17, %v429_v4 }
 0x29e   : > { %vm756_vm10 = vmand %vm499_vm3, %vm692_vm6  ;;  %v1818_v40 = vmax.f32 %v4414_v11, %v4418_v21  ;;  %v1107_v14 = vpop.permute.xlu1 %1106 }
 0x29f   : > { %vm987_vm15 = vmand %vm755_vm4, %vm923_vm9  ;;  %v622_v31 = vpop.permute.xlu0 %621  ;;  %vm1179_vm1 = vcmp.lt.s32.totalorder %v3081_v19, %v1107_v14  ;;  %vm1180_vm0 = vcmp.lt.s32.totalorder %v3086_v20, %v1107_v14 }
 0x2a0   : > { %vm988_vm7 = vmand %vm756_vm10, %vm924_vm13  ;;  %1819 = vmax.xlane.f32.xlu1 %v1818_v40  ;;  %vm693_vm2 = vcmp.lt.s32.totalorder %v3067_v15, %v622_v31  ;;  %vm694_vm5 = vcmp.lt.s32.totalorder %v3069_v17, %v622_v31 }
 0x2a1   : > { %vm1243_vm14 = vmand %vm987_vm15, %vm1179_vm1 }
 0x2a2   : > { %vm1244_vm12 = vmand %vm988_vm7, %vm1180_vm0  ;;  %v1307_v55 = vsel %vm1243_vm14, 0.0, %v4881_v59  ;;  %v435_v34 = vpop.permute.xlu1 %434 }
 0x2a3   : > { %v1308_v41 = vsel %vm1244_vm12, 0.0, %v4881_v59  ;;  %v4433_v56 = vadd.f32 %v4911_v62, %v1307_v55  ;;  %v854_v28 = vpop.permute.xlu0 %853  ;;  %vm757_vm6 = vmand %vm500_vm8, %vm693_vm2  ;;  %v4918_v55 = vld [vmem:[#allocation13_spill] sm:$0xff] }
 0x2a4   : > { %v4438_v60 = vadd.f32 %v4912_v25, %v1308_v41  ;;  %vm925_vm9 = vcmp.ge.s32.totalorder %v3081_v19, %v854_v28  ;;  %vm926_vm13 = vcmp.ge.s32.totalorder %v3086_v20, %v854_v28  ;;  %vm758_vm3 = vmand %vm501_vm11, %vm694_vm5 }
 0x2a5   : > { %vm989_vm4 = vmand %vm757_vm6, %vm925_vm9 }
 0x2a6   : > { %v1821_v53 = vmax.f32 %v4433_v56, %v4438_v60  ;;  %v625_v7 = vpop.permute.xlu1 %624  ;;  %vm990_vm10 = vmand %vm758_vm3, %vm926_vm13 }
 0x2a7   : > { %v1110_v3 = vpop.permute.xlu0 %1109  ;;  %vm695_vm14 = vcmp.lt.s32.totalorder %v3067_v15, %v625_v7  ;;  %vm696_vm5 = vcmp.lt.s32.totalorder %v3069_v17, %v625_v7  ;;  %v4919_v7 = vld [vmem:[#allocation14_spill] sm:$0xff] }
 0x2a8   : > { %1822 = vmax.xlane.f32.xlu0 %v1821_v53  ;;  %vm1181_vm15 = vcmp.lt.s32.totalorder %v3081_v19, %v1110_v3  ;;  %vm1182_vm7 = vcmp.lt.s32.totalorder %v3086_v20, %v1110_v3 }
 0x2a9   : > { %vm1245_vm1 = vmand %vm989_vm4, %vm1181_vm15 }
 0x2aa   : > { %vm1246_vm0 = vmand %vm990_vm10, %vm1182_vm7  ;;  %v1309_v45 = vsel %vm1245_vm1, 0.0, %v4881_v59  ;;  %v857_v61 = vpop.permute.xlu1 %856 }
 0x2ab   : > { %v1310_v58 = vsel %vm1246_vm0, 0.0, %v4881_v59  ;;  %v4450_v46 = vadd.f32 %v4913_v42, %v1309_v45  ;;  %v432_v63 = vpop.permute.xlu0 %431  ;;  %vm927_vm12 = vcmp.ge.s32.totalorder %v3081_v19, %v857_v61  ;;  %vm928_vm8 = vcmp.ge.s32.totalorder %v3086_v20, %v857_v61  ;;  %v4920_v42 = vld [vmem:[#allocation15_spill] sm:$0xff] }
 0x2ac   : > { %v4454_v27 = vadd.f32 %v4914_v51, %v1310_v58  ;;  %vm502_vm2 = vcmp.ge.s32.totalorder %v3067_v15, %v432_v63  ;;  %vm503_vm9 = vcmp.ge.s32.totalorder %v3069_v17, %v432_v63 }
 0x2ad   : > { %vm759_vm11 = vmand %vm502_vm2, %vm695_vm14  ;;  %vm504_vm14 = vcmp.ge.s32.totalorder %v3067_v15, %v435_v34  ;;  %vm505_vm2 = vcmp.ge.s32.totalorder %v3069_v17, %v435_v34 }
 0x2ae   : > { %vm760_vm6 = vmand %vm503_vm9, %vm696_vm5  ;;  %v1824_v52 = vmax.f32 %v4450_v46, %v4454_v27  ;;  %v1113_v10 = vpop.permute.xlu1 %1112 }
 0x2af   : > { %vm991_vm13 = vmand %vm759_vm11, %vm927_vm12  ;;  %v628_v9 = vpop.permute.xlu0 %627  ;;  %vm1183_vm4 = vcmp.lt.s32.totalorder %v3081_v19, %v1113_v10  ;;  %vm1184_vm10 = vcmp.lt.s32.totalorder %v3086_v20, %v1113_v10 }
 0x2b0   : > { %vm992_vm3 = vmand %vm760_vm6, %vm928_vm8  ;;  %1825 = vmax.xlane.f32.xlu1 %v1824_v52  ;;  %vm697_vm1 = vcmp.lt.s32.totalorder %v3067_v15, %v628_v9  ;;  %vm698_vm0 = vcmp.lt.s32.totalorder %v3069_v17, %v628_v9 }
 0x2b1   : > { %vm1247_vm15 = vmand %vm991_vm13, %vm1183_vm4 }
 0x2b2   : > { %vm1248_vm7 = vmand %vm992_vm3, %vm1184_vm10  ;;  %v1311_v13 = vsel %vm1247_vm15, 0.0, %v4881_v59  ;;  %v441_v43 = vpop.permute.xlu1 %440 }
 0x2b3   : > { %v1312_v23 = vsel %vm1248_vm7, 0.0, %v4881_v59  ;;  %v4469_v4 = vadd.f32 %v4915_v24, %v1311_v13  ;;  %v860_v35 = vpop.permute.xlu0 %859  ;;  %vm761_vm5 = vmand %vm504_vm14, %vm697_vm1  ;;  %v4921_v13 = vld [vmem:[#allocation16_spill] sm:$0xff] }
 0x2b4   : > { %v4474_v39 = vadd.f32 %v4916_v22, %v1312_v23  ;;  %vm929_vm12 = vcmp.ge.s32.totalorder %v3081_v19, %v860_v35  ;;  %vm930_vm8 = vcmp.ge.s32.totalorder %v3086_v20, %v860_v35  ;;  %vm762_vm9 = vmand %vm505_vm2, %vm698_vm0  ;;  %v4922_v35 = vld [vmem:[#allocation17_spill] sm:$0xff] }
 0x2b5   : > { %vm993_vm11 = vmand %vm761_vm5, %vm929_vm12 }
 0x2b6   : > { %v1827_v38 = vmax.f32 %v4469_v4, %v4474_v39  ;;  %v631_v48 = vpop.permute.xlu1 %630  ;;  %vm994_vm6 = vmand %vm762_vm9, %vm930_vm8 }
 0x2b7   : > { %v1116_v16 = vpop.permute.xlu0 %1115  ;;  %vm699_vm15 = vcmp.lt.s32.totalorder %v3067_v15, %v631_v48  ;;  %vm700_vm0 = vcmp.lt.s32.totalorder %v3069_v17, %v631_v48 }
 0x2b8   : > { %1828 = vmax.xlane.f32.xlu0 %v1827_v38  ;;  %vm1185_vm13 = vcmp.lt.s32.totalorder %v3081_v19, %v1116_v16  ;;  %vm1186_vm3 = vcmp.lt.s32.totalorder %v3086_v20, %v1116_v16 }
 0x2b9   : > { %vm1249_vm4 = vmand %vm993_vm11, %vm1185_vm13 }
 0x2ba   : > { %vm1250_vm10 = vmand %vm994_vm6, %vm1186_vm3  ;;  %v1313_v50 = vsel %vm1249_vm4, 0.0, %v4881_v59  ;;  %v863_v14 = vpop.permute.xlu1 %862 }
 0x2bb   : > { %v1314_v0 = vsel %vm1250_vm10, 0.0, %v4881_v59  ;;  %v4486_v40 = vadd.f32 %v4917_v47, %v1313_v50  ;;  %v438_v31 = vpop.permute.xlu0 %437  ;;  %vm931_vm7 = vcmp.ge.s32.totalorder %v3081_v19, %v863_v14  ;;  %vm932_vm14 = vcmp.ge.s32.totalorder %v3086_v20, %v863_v14  ;;  %v4923_v47 = vld [vmem:[#allocation18_spill] sm:$0xff] }
 0x2bc   : > { %v4490_v41 = vadd.f32 %v4918_v55, %v1314_v0  ;;  %vm506_vm1 = vcmp.ge.s32.totalorder %v3067_v15, %v438_v31  ;;  %vm507_vm12 = vcmp.ge.s32.totalorder %v3069_v17, %v438_v31 }
 0x2bd   : > { %vm763_vm2 = vmand %vm506_vm1, %vm699_vm15  ;;  %vm508_vm15 = vcmp.ge.s32.totalorder %v3067_v15, %v441_v43  ;;  %vm509_vm1 = vcmp.ge.s32.totalorder %v3069_v17, %v441_v43 }
 0x2be   : > { %vm764_vm5 = vmand %vm507_vm12, %vm700_vm0  ;;  %v1830_v62 = vmax.f32 %v4486_v40, %v4490_v41  ;;  %v1119_v34 = vpop.permute.xlu1 %1118 }
 0x2bf   : > { %vm995_vm8 = vmand %vm763_vm2, %vm931_vm7  ;;  %v634_v28 = vpop.permute.xlu0 %633  ;;  %vm1187_vm11 = vcmp.lt.s32.totalorder %v3081_v19, %v1119_v34  ;;  %vm1188_vm6 = vcmp.lt.s32.totalorder %v3086_v20, %v1119_v34 }
 0x2c0   : > { %vm996_vm9 = vmand %vm764_vm5, %vm932_vm14  ;;  %1831 = vmax.xlane.f32.xlu1 %v1830_v62  ;;  %vm701_vm4 = vcmp.lt.s32.totalorder %v3067_v15, %v634_v28  ;;  %vm702_vm10 = vcmp.lt.s32.totalorder %v3069_v17, %v634_v28  ;;  %v4924_v62 = vld [vmem:[#allocation19_spill] sm:$0xff] }
 0x2c1   : > { %vm1251_vm13 = vmand %vm995_vm8, %vm1187_vm11 }
 0x2c2   : > { %vm1252_vm3 = vmand %vm996_vm9, %vm1188_vm6  ;;  %v1315_v25 = vsel %vm1251_vm13, 0.0, %v4881_v59  ;;  %v447_v45 = vpop.permute.xlu1 %446 }
 0x2c3   : > { %v1316_v53 = vsel %vm1252_vm3, 0.0, %v4881_v59  ;;  %v4504_v3 = vadd.f32 %v4919_v7, %v1315_v25  ;;  %v866_v58 = vpop.permute.xlu0 %865  ;;  %vm765_vm0 = vmand %vm508_vm15, %vm701_vm4 }
 0x2c4   : > { %v4508_v61 = vadd.f32 %v4920_v42, %v1316_v53  ;;  %vm933_vm7 = vcmp.ge.s32.totalorder %v3081_v19, %v866_v58  ;;  %vm934_vm14 = vcmp.ge.s32.totalorder %v3086_v20, %v866_v58  ;;  %vm766_vm12 = vmand %vm509_vm1, %vm702_vm10  ;;  %v4925_v58 = vld [vmem:[#allocation20_spill] sm:$0xff] }
 0x2c5   : > { %vm997_vm2 = vmand %vm765_vm0, %vm933_vm7 }
 0x2c6   : > { %v1833_v63 = vmax.f32 %v4504_v3, %v4508_v61  ;;  %vm998_vm5 = vmand %vm766_vm12, %vm934_vm14 }
 0x2c7   : > { %v637_v51 = vpop.permute.xlu1 %636  ;;  %v1122_v52 = vpop.permute.xlu0 %1121 }
 0x2c8   : > { %1834 = vmax.xlane.f32.xlu0 %v1833_v63  ;;  %vm1189_vm8 = vcmp.lt.s32.totalorder %v3081_v19, %v1122_v52  ;;  %vm1190_vm9 = vcmp.lt.s32.totalorder %v3086_v20, %v1122_v52  ;;  %vm703_vm13 = vcmp.lt.s32.totalorder %v3067_v15, %v637_v51  ;;  %vm704_vm10 = vcmp.lt.s32.totalorder %v3069_v17, %v637_v51  ;;  %v4926_v52 = vld [vmem:[#allocation21_spill] sm:$0xff] }
 0x2c9   : > { %vm1253_vm11 = vmand %vm997_vm2, %vm1189_vm8 }
 0x2ca   : > { %vm1254_vm6 = vmand %vm998_vm5, %vm1190_vm9  ;;  %v1317_v10 = vsel %vm1253_vm11, 0.0, %v4881_v59 }
 0x2cb   : > { %v1318_v9 = vsel %vm1254_vm6, 0.0, %v4881_v59  ;;  %v4522_v23 = vadd.f32 %v4921_v13, %v1317_v10  ;;  %v869_v24 = vpop.permute.xlu1 %868  ;;  %v444_v43 = vpop.permute.xlu0 %443 }
 0x2cc   : > { %v4526_v22 = vadd.f32 %v4922_v35, %v1318_v9  ;;  %vm935_vm3 = vcmp.ge.s32.totalorder %v3081_v19, %v869_v24  ;;  %vm510_vm4 = vcmp.ge.s32.totalorder %v3067_v15, %v444_v43  ;;  %vm936_vm15 = vcmp.ge.s32.totalorder %v3086_v20, %v869_v24 }
 0x2cd   : > { %vm511_vm7 = vcmp.ge.s32.totalorder %v3069_v17, %v444_v43  ;;  %vm767_vm1 = vmand %vm510_vm4, %vm703_vm13  ;;  %vm512_vm13 = vcmp.ge.s32.totalorder %v3067_v15, %v447_v45  ;;  %vm513_vm4 = vcmp.ge.s32.totalorder %v3069_v17, %v447_v45 }
 0x2ce   : > { %vm768_vm0 = vmand %vm511_vm7, %vm704_vm10  ;;  %v1836_v38 = vmax.f32 %v4522_v23, %v4526_v22 }
 0x2cf   : > { %v1125_v48 = vpop.permute.xlu1 %1124  ;;  %vm999_vm14 = vmand %vm767_vm1, %vm935_vm3  ;;  %v640_v16 = vpop.permute.xlu0 %639 }
 0x2d0   : > { %vm1000_vm12 = vmand %vm768_vm0, %vm936_vm15  ;;  %vm1191_vm2 = vcmp.lt.s32.totalorder %v3081_v19, %v1125_v48  ;;  %vm1192_vm5 = vcmp.lt.s32.totalorder %v3086_v20, %v1125_v48  ;;  %1837 = vmax.xlane.f32.xlu1 %v1836_v38  ;;  %vm705_vm11 = vcmp.lt.s32.totalorder %v3067_v15, %v640_v16  ;;  %vm706_vm6 = vcmp.lt.s32.totalorder %v3069_v17, %v640_v16  ;;  %v4927_v38 = vld [vmem:[#allocation22_spill] sm:$0xff] }
 0x2d1   : > { %vm1255_vm8 = vmand %vm999_vm14, %vm1191_vm2 }
 0x2d2   : > { %vm1256_vm9 = vmand %vm1000_vm12, %vm1192_vm5  ;;  %v1319_v50 = vsel %vm1255_vm8, 0.0, %v4881_v59 }
 0x2d3   : > { %v1320_v0 = vsel %vm1256_vm9, 0.0, %v4881_v59  ;;  %v4541_v14 = vadd.f32 %v4923_v47, %v1319_v50  ;;  %v453_v31 = vpop.permute.xlu1 %452  ;;  %v872_v55 = vpop.permute.xlu0 %871  ;;  %vm769_vm10 = vmand %vm512_vm13, %vm705_vm11  ;;  %v4928_v50 = vld [vmem:[#allocation23_spill] sm:$0xff] }
 0x2d4   : > { %v4546_v34 = vadd.f32 %v4924_v62, %v1320_v0  ;;  %vm937_vm3 = vcmp.ge.s32.totalorder %v3081_v19, %v872_v55  ;;  %vm938_vm15 = vcmp.ge.s32.totalorder %v3086_v20, %v872_v55  ;;  %vm770_vm7 = vmand %vm513_vm4, %vm706_vm6 }
 0x2d5   : > { %vm1001_vm1 = vmand %vm769_vm10, %vm937_vm3 }
 0x2d6   : > { %v1839_v28 = vmax.f32 %v4541_v14, %v4546_v34  ;;  %vm1002_vm0 = vmand %vm770_vm7, %vm938_vm15 }
 0x2d8   : > { %v643_v25 = vpop.permute.xlu1 %642  ;;  %v1128_v53 = vpop.permute.xlu0 %1127  ;;  %1840 = vmax.xlane.f32.xlu0 %v1839_v28  ;;  %v4930_v28 = vld [vmem:[#allocation25_spill] sm:$0xff] }
 0x2d9   : > { %vm1193_vm14 = vcmp.lt.s32.totalorder %v3081_v19, %v1128_v53  ;;  %vm1194_vm12 = vcmp.lt.s32.totalorder %v3086_v20, %v1128_v53  ;;  %vm707_vm8 = vcmp.lt.s32.totalorder %v3067_v15, %v643_v25  ;;  %vm708_vm6 = vcmp.lt.s32.totalorder %v3069_v17, %v643_v25 }
 0x2da   : > { %vm1257_vm2 = vmand %vm1001_vm1, %vm1193_vm14 }
 0x2db   : > { %vm1258_vm5 = vmand %vm1002_vm0, %vm1194_vm12  ;;  %v1321_v7 = vsel %vm1257_vm2, 0.0, %v4881_v59 }
 0x2dc   : > { %v1322_v45 = vsel %vm1258_vm5, 0.0, %v4881_v59  ;;  %v4558_v42 = vadd.f32 %v4925_v58, %v1321_v7  ;;  %v875_v63 = vpop.permute.xlu1 %874  ;;  %v450_v51 = vpop.permute.xlu0 %449  ;;  %v2741_v7 = vmov 1.0  }
 0x2dd   : > { %v4562_v10 = vadd.f32 %v4926_v52, %v1322_v45  ;;  %vm939_vm9 = vcmp.ge.s32.totalorder %v3081_v19, %v875_v63  ;;  %vm514_vm11 = vcmp.ge.s32.totalorder %v3067_v15, %v450_v51  ;;  %vm940_vm13 = vcmp.ge.s32.totalorder %v3086_v20, %v875_v63  ;;  %2178 = vmatprep.mubr.f32.mxu0 %v2741_v7 }
 0x2de   : > { %vm515_vm3 = vcmp.ge.s32.totalorder %v3069_v17, %v450_v51  ;;  %vm771_vm4 = vmand %vm514_vm11, %vm707_vm8  ;;  %vm516_vm8 = vcmp.ge.s32.totalorder %v3067_v15, %v453_v31  ;;  %vm517_vm11 = vcmp.ge.s32.totalorder %v3069_v17, %v453_v31  ;;  %v4929_v31 = vld [vmem:[#allocation24_spill] sm:$0xff] }
 0x2df   : > { %vm772_vm10 = vmand %vm515_vm3, %vm708_vm6  ;;  %v1842_v9 = vmax.f32 %v4558_v42, %v4562_v10 }
 0x2e0   : > { %v1131_v13 = vpop.permute.xlu1 %1130  ;;  %vm1003_vm15 = vmand %vm771_vm4, %vm939_vm9  ;;  %v646_v24 = vpop.permute.xlu0 %645 }
 0x2e1   : > { %vm1004_vm7 = vmand %vm772_vm10, %vm940_vm13  ;;  %vm1195_vm1 = vcmp.lt.s32.totalorder %v3081_v19, %v1131_v13  ;;  %vm1196_vm0 = vcmp.lt.s32.totalorder %v3086_v20, %v1131_v13  ;;  %1843 = vmax.xlane.f32.xlu1 %v1842_v9  ;;  %vm709_vm2 = vcmp.lt.s32.totalorder %v3067_v15, %v646_v24  ;;  %vm710_vm5 = vcmp.lt.s32.totalorder %v3069_v17, %v646_v24 }
 0x2e2   : > { %vm1259_vm14 = vmand %vm1003_vm15, %vm1195_vm1 }
 0x2e3   : > { %vm1260_vm12 = vmand %vm1004_vm7, %vm1196_vm0  ;;  %v1323_v43 = vsel %vm1259_vm14, 0.0, %v4881_v59 }
 0x2e4   : > { %v1324_v35 = vsel %vm1260_vm12, 0.0, %v4881_v59  ;;  %v4577_v48 = vadd.f32 %v4927_v38, %v1323_v43  ;;  %v878_v16 = vpop.permute.xlu0 %877  ;;  %vm773_vm6 = vmand %vm516_vm8, %vm709_vm2  ;;  %v2321_v38 = vld [vmem:[%s2825_s11 + $0x28] sm:$0xff] }
 0x2e5   : > { %v4582_v0 = vadd.f32 %v4928_v50, %v1324_v35  ;;  %vm941_vm9 = vcmp.ge.s32.totalorder %v3081_v19, %v878_v16  ;;  %vm942_vm13 = vcmp.ge.s32.totalorder %v3086_v20, %v878_v16  ;;  %vm774_vm3 = vmand %vm517_vm11, %vm710_vm5  ;;  %2107 = vmatprep.mubr.f32.mxu1 %v2321_v38 }
 0x2e6   : > { %vm1005_vm4 = vmand %vm773_vm6, %vm941_vm9 }
 0x2e7   : > { %v1845_v47 = vmax.f32 %v4577_v48, %v4582_v0  ;;  %vm1006_vm10 = vmand %vm774_vm3, %vm942_vm13 }
 0x2e8   : > { %v1134_v55 = vpop.permute.xlu0 %1133 }
 0x2e9   : > { %1846 = vmax.xlane.f32.xlu0 %v1845_v47  ;;  %vm1197_vm15 = vcmp.lt.s32.totalorder %v3081_v19, %v1134_v55  ;;  %vm1198_vm7 = vcmp.lt.s32.totalorder %v3086_v20, %v1134_v55 }
 0x2ea   : > { %vm1261_vm1 = vmand %vm1005_vm4, %vm1197_vm15 }
 0x2eb   : > { %vm1262_vm0 = vmand %vm1006_vm10, %vm1198_vm7  ;;  %v1325_v15 = vsel %vm1261_vm1, 0.0, %v4881_v59 }
 0x2ec   : > { %v1326_v17 = vsel %vm1262_vm0, 0.0, %v4881_v59  ;;  %v4594_v62 = vadd.f32 %v4929_v31, %v1325_v15 }
 0x2ed   : > { %v4597_v25 = vadd.f32 %v4930_v28, %v1326_v17 }
 0x2ef   : > { %v1848_v53 = vmax.f32 %v4594_v62, %v4597_v25 }
 0x2f1   : > { %1849 = vmax.xlane.f32.xlu1 %v1848_v53 }
 0x312   : > { %v1793_v19 = vpop.xlane.xlu1 %1792 }
 0x313   : > { %v1875_v20 = vsub.f32 %v4236_v2, %v1793_v19  ;;  %v1876_v45 = vsub.f32 %v4239_v30, %v1793_v19 }
 0x315   : > { %v1796_v59 = vpop.xlane.xlu0 %1795  ;;  %v1963_v52 = vmul.f32 1.442695, %v1875_v20  ;;  %v1965_v9 = vmul.f32 1.442695, %v1876_v45 }
 0x316   : > { %v1802_v58 = vpop.xlane.xlu1 %1801  ;;  %v1877_v63 = vsub.f32 %v4277_v36, %v1796_v59  ;;  %v1878_v51 = vsub.f32 %v4280_v26, %v1796_v59 }
 0x317   : > { %v1882_v13 = vsub.f32 %v4300_v44, %v1802_v58  ;;  %v1881_v47 = vsub.f32 %v4294_v33, %v1802_v58 }
 0x318   : > { %v1967_v24 = vmul.f32 1.442695, %v1877_v63  ;;  %v1969_v43 = vmul.f32 1.442695, %v1878_v51 }
 0x319   : > { %v1799_v35 = vpop.xlane.xlu0 %1798  ;;  %v1977_v30 = vmul.f32 1.442695, %v1882_v13  ;;  %v1975_v17 = vmul.f32 1.442695, %v1881_v47 }
 0x31a   : > { %2598 = vpow2.f32 %v1967_v24  ;;  %v1880_v2 = vsub.f32 %v4325_v32, %v1799_v35  ;;  %v1808_v16 = vpop.xlane.xlu1 %1807  ;;  %v1879_v36 = vsub.f32 %v4322_v29, %v1799_v35 }
 0x31b   : > { %2600 = vpow2.f32 %v1963_v52  ;;  %v1886_v55 = vsub.f32 %v4333_v1, %v1808_v16  ;;  %v1885_v1 = vsub.f32 %v4330_v49, %v1808_v16 }
 0x31c   : > { %2602 = vpow2.f32 %v1965_v9  ;;  %v1973_v26 = vmul.f32 1.442695, %v1880_v2  ;;  %v1971_v15 = vmul.f32 1.442695, %v1879_v36 }
 0x31d   : > { %2604 = vpow2.f32 %v1969_v43  ;;  %v1805_v50 = vpop.xlane.xlu0 %1804  ;;  %v1985_v28 = vmul.f32 1.442695, %v1886_v55  ;;  %v1983_v13 = vmul.f32 1.442695, %v1885_v1 }
 0x31e   : > { %v1884_v44 = vsub.f32 %v4353_v18, %v1805_v50  ;;  %2606 = vpow2.f32 %v1977_v30  ;;  %v1814_v19 = vpop.xlane.xlu1 %1813  ;;  %v1883_v29 = vsub.f32 %v4350_v8, %v1805_v50 }
 0x31f   : > { %2608 = vpow2.f32 %v1973_v26  ;;  %v1890_v59 = vsub.f32 %v4370_v6, %v1814_v19  ;;  %v1889_v38 = vsub.f32 %v4366_v12, %v1814_v19 }
 0x320   : > { %v1981_v32 = vmul.f32 1.442695, %v1884_v44  ;;  %2610 = vpow2.f32 %v1971_v15  ;;  %v1979_v63 = vmul.f32 1.442695, %v1883_v29 }
 0x321   : > { %v1811_v31 = vpop.xlane.xlu0 %1810  ;;  %v1993_v24 = vmul.f32 1.442695, %v1890_v59  ;;  %v1991_v44 = vmul.f32 1.442695, %v1889_v38 }
 0x322   : > { %2612 = vpow2.f32 %v1981_v32  ;;  %v1888_v33 = vsub.f32 %v4381_v54, %v1811_v31  ;;  %v1887_v54 = vsub.f32 %v4378_v57, %v1811_v31 }
 0x323   : > { %2614 = vpow2.f32 %v1975_v17 }
 0x324   : > { %v2599_v53 = vpop.eup %2598  ;;  %2616 = vpow2.f32 %v1985_v28  ;;  %v1989_v52 = vmul.f32 1.442695, %v1888_v33  ;;  %v1987_v26 = vmul.f32 1.442695, %v1887_v54 }
 0x325   : > { %v2601_v20 = vpop.eup %2600  ;;  %2618 = vpow2.f32 %v1979_v63  ;;  %v1817_v49 = vpop.xlane.xlu0 %1816 }
 0x326   : > { %v2603_v45 = vpop.eup %2602  ;;  %v2383_v58 = vpack.c.bf16 %v2599_v53, %v2601_v20  ;;  %2620 = vpow2.f32 %v1989_v52  ;;  %v1892_v16 = vsub.f32 %v4401_v5, %v1817_v49  ;;  %v1891_v5 = vsub.f32 %v4395_v37, %v1817_v49 }
 0x327   : > { %v2605_v18 = vpop.eup %2604  ;;  %2622 = vpow2.f32 %v1983_v13 }
 0x328   : > { %v2381_v51 = vpack.c.bf16 %v2605_v18, %v2603_v45  ;;  %v2607_v9 = vpop.eup %2606  ;;  %2624 = vpow2.f32 %v1993_v24  ;;  %v1997_v15 = vmul.f32 1.442695, %v1892_v16  ;;  %v1995_v20 = vmul.f32 1.442695, %v1891_v5 }
 0x329   : > { %v2609_v8 = vpop.eup %2608  ;;  %2626 = vpow2.f32 %v1987_v26 }
 0x32a   : > { %2382 = vmatprep.subr.bf16.mxu1 %v2381_v51  ;;  %2446 = vmatprep.subr.bf16.mxu0 %v2381_v51  ;;  %v2385_v43 = vpack.c.bf16 %v2607_v9, %v2609_v8  ;;  %v2611_v6 = vpop.eup %2610 }
 0x32b   : > { %2384 = vmatpush1.bf16.xpose.msra.mxu1 %v2383_v58  ;;  %2448 = vmatpush1.bf16.xpose.msra.mxu0 %v2383_v58 }
 0x32c   : > { %2386 = vmatprep.subr.bf16.mxu1 %v2385_v43  ;;  %2450 = vmatprep.subr.bf16.mxu0 %v2385_v43  ;;  %v2613_v30 = vpop.eup %2612 }
 0x32d   : > { %v1820_v35 = vpop.xlane.xlu1 %1819  ;;  %v2615_v36 = vpop.eup %2614 }
 0x32e   : > { %v1894_v2 = vsub.f32 %v4418_v21, %v1820_v35  ;;  %v2617_v50 = vpop.eup %2616  ;;  %v2387_v47 = vpack.c.bf16 %v2615_v36, %v2611_v6  ;;  %v1893_v12 = vsub.f32 %v4414_v11, %v1820_v35 }
 0x32f   : > { %v2389_v55 = vpack.c.bf16 %v2617_v50, %v2613_v30  ;;  %v2619_v21 = vpop.eup %2618 }
 0x330   : > { %v2001_v57 = vmul.f32 1.442695, %v1894_v2  ;;  %v2621_v17 = vpop.eup %2620  ;;  %v1999_v28 = vmul.f32 1.442695, %v1893_v12 }
 0x331   : > { %v2623_v31 = vpop.eup %2622 }
 0x332   : > { %2628 = vpow2.f32 %v2001_v57  ;;  %v2625_v53 = vpop.eup %2624  ;;  %v2391_v29 = vpack.c.bf16 %v2623_v31, %v2619_v21 }
 0x333   : > { %2388 = vmatpush1.bf16.xpose.msra.mxu1 %v2387_v47  ;;  %2452 = vmatpush1.bf16.xpose.msra.mxu0 %v2387_v47  ;;  %2630 = vpow2.f32 %v1991_v44  ;;  %v2393_v33 = vpack.c.bf16 %v2625_v53, %v2621_v17  ;;  %v2627_v1 = vpop.eup %2626 }
 0x334   : > { %2390 = vmatprep.subr.bf16.mxu1 %v2389_v55  ;;  %2454 = vmatprep.subr.bf16.mxu0 %v2389_v55  ;;  %2632 = vpow2.f32 %v1997_v15 }
 0x335   : > { %v1823_v32 = vpop.xlane.xlu0 %1822  ;;  %2634 = vpow2.f32 %v1999_v28 }
 0x336   : > { %v1896_v19 = vsub.f32 %v4438_v60, %v1823_v32  ;;  %v1895_v11 = vsub.f32 %v4433_v56, %v1823_v32  ;;  %2636 = vpow2.f32 %v1995_v20 }
 0x338   : > { %v2005_v45 = vmul.f32 1.442695, %v1896_v19  ;;  %v2003_v63 = vmul.f32 1.442695, %v1895_v11 }
 0x33a   : > { %2638 = vpow2.f32 %v2005_v45 }
 0x33b   : > { %2392 = vmatpush1.bf16.xpose.msra.mxu1 %v2391_v29  ;;  %2456 = vmatpush1.bf16.xpose.msra.mxu0 %v2391_v29 }
 0x33c   : > { %2394 = vmatprep.subr.bf16.mxu1 %v2393_v33  ;;  %2458 = vmatprep.subr.bf16.mxu0 %v2393_v33  ;;  %v2629_v58 = vpop.eup %2628 }
 0x33d   : > { %v1826_v37 = vpop.xlane.xlu1 %1825  ;;  %v2631_v60 = vpop.eup %2630 }
 0x33e   : > { %v1897_v18 = vsub.f32 %v4450_v46, %v1826_v37  ;;  %v1898_v59 = vsub.f32 %v4454_v27, %v1826_v37  ;;  %v2633_v9 = vpop.eup %2632  ;;  %v2395_v13 = vpack.c.bf16 %v2631_v60, %v2627_v1 }
 0x33f   : > { %v2397_v56 = vpack.c.bf16 %v2629_v58, %v2633_v9  ;;  %v2635_v46 = vpop.eup %2634 }
 0x340   : > { %v2007_v51 = vmul.f32 1.442695, %v1897_v18  ;;  %v2009_v52 = vmul.f32 1.442695, %v1898_v59  ;;  %v2637_v24 = vpop.eup %2636 }
 0x341   : > { %v2399_v49 = vpack.c.bf16 %v2635_v46, %v2637_v24 }
 0x342   : > { %2640 = vpow2.f32 %v2007_v51 }
 0x343   : > { %2642 = vpow2.f32 %v2009_v52  ;;  %2396 = vmatpush1.bf16.xpose.msra.mxu1 %v2395_v13  ;;  %2460 = vmatpush1.bf16.xpose.msra.mxu0 %v2395_v13 }
 0x344   : > { %2644 = vpow2.f32 %v2003_v63  ;;  %2398 = vmatprep.subr.bf16.mxu1 %v2397_v56  ;;  %2462 = vmatprep.subr.bf16.mxu0 %v2397_v56  ;;  %v2639_v43 = vpop.eup %2638 }
 0x345   : > { %v1829_v8 = vpop.xlane.xlu0 %1828 }
 0x346   : > { %v1899_v27 = vsub.f32 %v4469_v4, %v1829_v8  ;;  %v1900_v54 = vsub.f32 %v4474_v39, %v1829_v8 }
 0x348   : > { %v2011_v6 = vmul.f32 1.442695, %v1899_v27  ;;  %v2013_v2 = vmul.f32 1.442695, %v1900_v54 }
 0x34a   : > { %2646 = vpow2.f32 %v2011_v6 }
 0x34b   : > { %2400 = vmatpush1.bf16.xpose.msra.mxu1 %v2399_v49  ;;  %2464 = vmatpush1.bf16.xpose.msra.mxu0 %v2399_v49  ;;  %2648 = vpow2.f32 %v2013_v2  ;;  %v2320_v2 = vld [vmem:[%s2825_s11 + $0x20] sm:$0xff] }
 0x34c   : > { %v2641_v35 = vpop.eup %2640 }
 0x34d   : > { %v2643_v38 = vpop.eup %2642  ;;  %v1832_v30 = vpop.xlane.xlu1 %1831 }
 0x34e   : > { %v2645_v16 = vpop.eup %2644  ;;  %v1901_v36 = vsub.f32 %v4486_v40, %v1832_v30  ;;  %v1902_v26 = vsub.f32 %v4490_v41, %v1832_v30  ;;  %v2401_v50 = vpack.c.bf16 %v2643_v38, %v2639_v43 }
 0x34f   : > { %v2403_v57 = vpack.c.bf16 %v2641_v35, %v2645_v16 }
 0x350   : > { %v2015_v4 = vmul.f32 1.442695, %v1901_v36  ;;  %v2017_v47 = vmul.f32 1.442695, %v1902_v26  ;;  %2402 = vmatprep.subr.bf16.mxu1 %v2401_v50  ;;  %2466 = vmatprep.subr.bf16.mxu0 %v2401_v50 }
 0x352   : > { %2650 = vpow2.f32 %v2015_v4  ;;  %v4931_v4 = vld [vmem:[#allocation3_spill] sm:$0xff] }
 0x353   : > { %2652 = vpow2.f32 %v2017_v47  ;;  %2404 = vmatpush1.bf16.xpose.msra.mxu1 %v2403_v57  ;;  %2468 = vmatpush1.bf16.xpose.msra.mxu0 %v2403_v57 }
 0x354   : > { %v2647_v55 = vpop.eup %2646 }
 0x355   : > { %v1835_v39 = vpop.xlane.xlu0 %1834  ;;  %v2649_v15 = vpop.eup %2648 }
 0x356   : > { %v1903_v44 = vsub.f32 %v4504_v3, %v1835_v39  ;;  %v1904_v40 = vsub.f32 %v4508_v61, %v1835_v39 }
 0x358   : > { %v2019_v21 = vmul.f32 1.442695, %v1903_v44  ;;  %v2021_v32 = vmul.f32 1.442695, %v1904_v40 }
 0x35a   : > { %2654 = vpow2.f32 %v2019_v21 }
 0x35b   : > { %2656 = vpow2.f32 %v2021_v32 }
 0x35c   : > { %v2651_v41 = vpop.eup %2650 }
 0x35d   : > { %v2653_v12 = vpop.eup %2652  ;;  %v2407_v5 = vpack.c.bf16 %v2651_v41, %v2647_v55  ;;  %v1838_v17 = vpop.xlane.xlu1 %1837 }
 0x35e   : > { %v2405_v31 = vpack.c.bf16 %v2653_v12, %v2649_v15  ;;  %v1905_v28 = vsub.f32 %v4522_v23, %v1838_v17  ;;  %v1906_v53 = vsub.f32 %v4526_v22, %v1838_v17 }
 0x360   : > { %2406 = vmatprep.subr.bf16.mxu1 %v2405_v31  ;;  %2470 = vmatprep.subr.bf16.mxu0 %v2405_v31  ;;  %v2023_v19 = vmul.f32 1.442695, %v1905_v28  ;;  %v2025_v3 = vmul.f32 1.442695, %v1906_v53 }
 0x361   : > { %2408 = vmatpush1.bf16.xpose.msra.mxu1 %v2407_v5  ;;  %2472 = vmatpush1.bf16.xpose.msra.mxu0 %v2407_v5 }
 0x362   : > { %2658 = vpow2.f32 %v2023_v19 }
 0x363   : > { %2660 = vpow2.f32 %v2025_v3 }
 0x364   : > { %v2655_v33 = vpop.eup %2654 }
 0x365   : > { %v1841_v61 = vpop.xlane.xlu0 %1840  ;;  %v2657_v11 = vpop.eup %2656 }
 0x366   : > { %v1907_v29 = vsub.f32 %v4541_v14, %v1841_v61  ;;  %v1908_v20 = vsub.f32 %v4546_v34, %v1841_v61 }
 0x368   : > { %v2027_v45 = vmul.f32 1.442695, %v1907_v29  ;;  %v2029_v37 = vmul.f32 1.442695, %v1908_v20 }
 0x36a   : > { %2662 = vpow2.f32 %v2027_v45 }
 0x36b   : > { %2664 = vpow2.f32 %v2029_v37 }
 0x36c   : > { %v2659_v23 = vpop.eup %2658 }
 0x36d   : > { %v2661_v22 = vpop.eup %2660  ;;  %v2411_v18 = vpack.c.bf16 %v2659_v23, %v2655_v33 }
 0x36e   : > { %v1844_v1 = vpop.xlane.xlu1 %1843  ;;  %v2409_v60 = vpack.c.bf16 %v2661_v22, %v2657_v11 }
 0x36f   : > { %v1909_v59 = vsub.f32 %v4558_v42, %v1844_v1  ;;  %v1910_v58 = vsub.f32 %v4562_v10, %v1844_v1 }
 0x370   : > { %2410 = vmatprep.subr.bf16.mxu1 %v2409_v60  ;;  %2474 = vmatprep.subr.bf16.mxu0 %v2409_v60 }
 0x371   : > { %v2031_v63 = vmul.f32 1.442695, %v1909_v59  ;;  %v2033_v51 = vmul.f32 1.442695, %v1910_v58  ;;  %2412 = vmatpush1.bf16.xpose.msra.mxu1 %v2411_v18  ;;  %2476 = vmatpush1.bf16.xpose.msra.mxu0 %v2411_v18 }
 0x373   : > { %2666 = vpow2.f32 %v2031_v63 }
 0x374   : > { %2668 = vpow2.f32 %v2033_v51  ;;  %v2663_v9 = vpop.eup %2662 }
 0x375   : > { %v2665_v42 = vpop.eup %2664 }
 0x376   : > { %v1847_v14 = vpop.xlane.xlu0 %1846 }
 0x377   : > { %v1911_v34 = vsub.f32 %v4577_v48, %v1847_v14  ;;  %v1912_v52 = vsub.f32 %v4582_v0, %v1847_v14 }
 0x379   : > { %v2035_v10 = vmul.f32 1.442695, %v1911_v34  ;;  %v2037_v8 = vmul.f32 1.442695, %v1912_v52 }
 0x37b   : > { %2670 = vpow2.f32 %v2035_v10 }
 0x37c   : > { %2672 = vpow2.f32 %v2037_v8 }
 0x37d   : > { %v2667_v13 = vpop.eup %2666 }
 0x37e   : > { %v2669_v56 = vpop.eup %2668  ;;  %v1850_v46 = vpop.xlane.xlu1 %1849  ;;  %v2415_v24 = vpack.c.bf16 %v2667_v13, %v2663_v9 }
 0x37f   : > { %v1913_v27 = vsub.f32 %v4594_v62, %v1850_v46  ;;  %v1914_v54 = vsub.f32 %v4597_v25, %v1850_v46  ;;  %v2413_v49 = vpack.c.bf16 %v2669_v56, %v2665_v42 }
 0x381   : > { %v2039_v43 = vmul.f32 1.442695, %v1913_v27  ;;  %v2041_v35 = vmul.f32 1.442695, %v1914_v54  ;;  %2414 = vmatprep.subr.bf16.mxu1 %v2413_v49  ;;  %2478 = vmatprep.subr.bf16.mxu0 %v2413_v49 }
 0x382   : > { %2416 = vmatpush1.bf16.xpose.msra.mxu1 %v2415_v24  ;;  %2480 = vmatpush1.bf16.xpose.msra.mxu0 %v2415_v24 }
 0x383   : > { %2674 = vpow2.f32 %v2039_v43 }
 0x384   : > { %2676 = vpow2.f32 %v2041_v35 }
 0x385   : > { %v2671_v48 = vpop.eup %2670 }
 0x386   : > { %v2673_v0 = vpop.eup %2672 }
 0x38d   : > { %v2675_v6 = vpop.eup %2674 }
 0x38e   : > { %v2677_v62 = vpop.eup %2676  ;;  %v2419_v38 = vpack.c.bf16 %v2675_v6, %v2671_v48 }
 0x38f   : > { %v2417_v25 = vpack.c.bf16 %v2677_v62, %v2673_v0 }
 0x391   : > { %2418 = vmatprep.subr.bf16.mxu1 %v2417_v25  ;;  %2482 = vmatprep.subr.bf16.mxu0 %v2417_v25 }
 0x392   : > { %2420 = vmatpush1.bf16.xpose.msra.mxu1 %v2419_v38  ;;  %2484 = vmatpush1.bf16.xpose.msra.mxu0 %v2419_v38 }
 0x399   : > { %2179 = vmatmul.mubr.f32.vlgmr.msra.gmra.mrb[64].mxu0 %v2741_v7  ;;  %2108 = vmatmul.mubr.f32.vlgmr.msra.gmra.mrb[0].mxu1 %v2320_v2 }
 0x46c   : > { %v2180_v30 = vpop.f32.mrb[64].mxu0  ;;  %v2109_v16 = vpop.f32.mrb[0].mxu1 }
 0x46d   : > { %2678 = vrcp.f32 %v2180_v30  ;;  %v2182_v36 = vpop.f32.mrb[65].mxu0  ;;  %v2111_v26 = vpop.f32.mrb[1].mxu1 }
 0x46e   : > { %2680 = vrcp.f32 %v2182_v36 }
 0x477   : > { %v2679_v50 = vpop.eup %2678 }
 0x478   : > { %v2681_v57 = vpop.eup %2680  ;;  %v2190_v47 = vrot.slane %v2679_v50, %v4931_v4 }
 0x479   : > { %v2194_v7 = vrot.slane %v2681_v57, %v4931_v4 }
 0x47a   : > { %v2195_v39 = vmul.f32 %v2190_v47, %v2109_v16 }
 0x47b   : > { %v2196_v44 = vmul.f32 %v2194_v7, %v2111_v26 }
 0x47c   : > { %2197 = vst [vmem:[%s246_s7] sm:$0xff] %v2195_v39 }
 0x47d   : > { %2198 = vst [vmem:[%s246_s7 + $0x8] sm:$0xff] %v2196_v44 }
 0x47e PF: > { %s13_s18 = sadd.s32 1, %s2736_s18   ;;  %s4932_s12 = smov %s2716_s13 }
 0x47f   : > { %p10_p0 = scmp.ge.s32.totalorder %s13_s18, 8   ;;  %s4933_s13 = smov %s2813_s25 }
 0x480   : > { %s4934_s14 = smov %s2728_s16  ;;  %s4935_s15 = smov %s2732_s17 }
 0x481   : > { %s4936_s16 = smov %s4939_s19  ;;  %s4937_s17 = smov %s4943_s20 }
 0x482   :  { %12 = sbr.rel (!%p10_p0) target bundleno = 4 (0x4), region = 95 }

</bundles_post_ra>
